<compile_context>
chip_gen: v6e
topology: v6e:2x2x1
jax: 0.10.0
libtpu: 0.0.40
codegen_flags: <defaults>
</compile_context>

<pallas_src>
import jax
import jax.numpy as jnp
from jax.experimental import pallas as pl
from jax.experimental.pallas import tpu as pltpu


def _respose_kernel(wbb_ref, bbb_ref, wh_ref, bh_ref, x_ref, k_ref, grid_ref,
                    out_ref):
    """Processes one batch tile of TB images.

    wbb_ref:  (Cf*Cin,)     SMEM  backbone 1x1-conv weight, [f, c] flattened
    bbb_ref:  (Cf,)         SMEM  backbone bias
    wh_ref:   (2*Cf,)       SMEM  [w_xy (Cf); w_d (Cf)] head weights
    bh_ref:   (2,)          SMEM  [b_xy, b_d] head biases
    x_ref:    (Cin, TB, HW) VMEM  bf16 images, HW lane-dense, batch on sublanes
    k_ref:    (TB, 1)       VMEM  focal-length style k values
    grid_ref: (2, HW)       VMEM  precomputed [x-coord; y-coord] grids
    out_ref:  (TB, 128)     VMEM  lanes 0..2 = (coord_x, coord_y, depth)
    """
    Cin, TB, HW = x_ref.shape
    Cf = bbb_ref.shape[0]

    # Upcast each channel slab once (v5e VPU has no bf16 elementwise).
    xs = [x_ref[c].astype(jnp.float32) for c in range(Cin)]

    # Fused backbone (1x1 conv + ReLU) and root head (Cf -> [heatmap, depth]):
    # a K=Cin=4 contraction feeds <3% of the MXU, so run it on the VPU and
    # contract straight into the two head channels without materializing fm.
    hm = jnp.zeros((TB, HW), jnp.float32)   # xy heatmap logits
    dv = jnp.zeros((TB, HW), jnp.float32)   # depth feature map
    for f in range(Cf):
        acc = xs[0] * wbb_ref[f * Cin]
        for c in range(1, Cin):
            acc = acc + xs[c] * wbb_ref[f * Cin + c]
        fm_f = jnp.maximum(acc + bbb_ref[f], 0.0)
        hm = hm + fm_f * wh_ref[f]
        dv = dv + fm_f * wh_ref[Cf + f]
    hm = hm + bh_ref[0]

    # Spatial softmax + soft-argmax: one image per sublane, HW on lanes.
    m = jnp.max(hm, axis=1, keepdims=True)
    e = jnp.exp(hm - m)
    denom = jnp.sum(e, axis=1, keepdims=True)
    r = pl.reciprocal(denom, approx=True)
    inv = r * (2.0 - denom * r)             # one Newton step -> f32 accuracy
    coord_x = jnp.sum(e * grid_ref[0:1, :], axis=1, keepdims=True) * inv
    coord_y = jnp.sum(e * grid_ref[1:2, :], axis=1, keepdims=True) * inv

    # Depth: global-average-pool commutes with the (linear) depth 1x1 conv.
    gamma = jnp.sum(dv, axis=1, keepdims=True) * (1.0 / HW) + bh_ref[1]
    depth = gamma * k_ref[...]              # (TB, 1)

    # Lane-dense pack: one full (TB, 128) unmasked store; wrapper slices [:3].
    lane = jax.lax.broadcasted_iota(jnp.int32, (TB, 128), 1)
    out_ref[...] = jnp.where(lane == 0, coord_x,
                             jnp.where(lane == 1, coord_y,
                                       jnp.where(lane == 2, depth, 0.0)))


def _round_up(v, m):
    return ((v + m - 1) // m) * m


def respose_net_forward(input_img, k_value, params, target=None, block_b=64):
    """Mirrors ResPoseNet.forward (NCHW input, optional target dict)."""
    B, Cin, H, Wd = input_img.shape
    HW = H * Wd
    Cf = params["w_bb"].shape[1]

    # Batch tile: multiple of 16 (bf16 sublane packing), capped by block_b and
    # by the padded batch; when the batch is big enough, keep >=2 grid steps so
    # the "parallel" axis can shard across v7x's two TensorCores.
    TB = min(max(16, (block_b // 16) * 16), _round_up(B, 16))
    if B > 16 and pl.cdiv(B, TB) < 2:
        TB = max(16, _round_up((B + 1) // 2, 16))
    G = pl.cdiv(B, TB)
    B_pad = G * TB

    # Images: (Cin, B_pad, HW) bf16 -- HW lane-dense, batch on sublanes.
    x = jnp.transpose(input_img.reshape(B, Cin, HW), (1, 0, 2))
    x = x.astype(jnp.bfloat16)
    if B_pad != B:
        x = jnp.pad(x, ((0, 0), (0, B_pad - B), (0, 0)))

    k = k_value.reshape(-1, 1).astype(jnp.float32)
    if B_pad != B:
        k = jnp.pad(k, ((0, B_pad - B), (0, 0)), constant_values=1.0)

    # Precomputed soft-argmax coordinate grids (replaces in-kernel iota+div/mod).
    s = jnp.arange(HW, dtype=jnp.int32)
    coord_grid = jnp.stack([(s % Wd).astype(jnp.float32),
                            (s // Wd).astype(jnp.float32)], axis=0)   # (2, HW)

    # Scalar-path weights (SMEM, flattened 1-D to avoid 2-D SMEM padding).
    wbb_s = params["w_bb"].astype(jnp.float32).T.reshape(-1)          # (Cf*Cin,)
    bbb_s = params["b_bb"].astype(jnp.float32).reshape(-1)            # (Cf,)
    wh_s = jnp.concatenate([params["w_xy"].astype(jnp.float32).reshape(-1),
                            params["w_d"].astype(jnp.float32).reshape(-1)])
    bh_s = jnp.concatenate([params["b_xy"].astype(jnp.float32).reshape(-1),
                            params["b_d"].astype(jnp.float32).reshape(-1)])

    # VMEM budget: double-buffered blocks + live f32 slabs inside the body.
    est = (2 * Cin * TB * HW * 2          # double-buffered bf16 image block
           + 2 * TB * 128 * 4             # double-buffered output block
           + 2 * (TB + 2 * HW) * 4        # k + coordinate-grid blocks
           + 10 * TB * HW * 4)            # live f32 slabs in the body
    vmem_limit = int(min(max(2 * est, 32 << 20), 48 << 20))  # fits v7x 64 MiB

    out = pl.pallas_call(
        _respose_kernel,
        out_shape=jax.ShapeDtypeStruct((B_pad, 128), jnp.float32),
        grid_spec=pltpu.PrefetchScalarGridSpec(
            num_scalar_prefetch=0,
            grid=(G,),
            in_specs=[
                pl.BlockSpec(memory_space=pltpu.MemorySpace.SMEM),   # wbb
                pl.BlockSpec(memory_space=pltpu.MemorySpace.SMEM),   # bbb
                pl.BlockSpec(memory_space=pltpu.MemorySpace.SMEM),   # head W
                pl.BlockSpec(memory_space=pltpu.MemorySpace.SMEM),   # head b
                pl.BlockSpec((Cin, TB, HW), lambda g: (0, g, 0)),    # images
                pl.BlockSpec((TB, 1), lambda g: (g, 0)),             # k values
                pl.BlockSpec((2, HW), lambda g: (0, 0)),             # coord grid
            ],
            out_specs=pl.BlockSpec((TB, 128), lambda g: (g, 0)),
        ),
        compiler_params=pltpu.CompilerParams(
            dimension_semantics=("parallel",),
            vmem_limit_bytes=vmem_limit),
    )(wbb_s, bbb_s, wh_s, bh_s, x, k, coord_grid)
    coord = out[:B, :3]

    if target is None:
        return coord

    # Loss branch of ResPoseNet.forward (tiny elementwise glue).
    loss = jnp.abs(coord - target["coord"]) * target["vis"]
    loss = (loss[:, 0] + loss[:, 1]
            + loss[:, 2] * target["have_depth"].reshape(-1)) / 3.0
    return loss


def respose_net_reference(input_img, k_value, params):
    """Pure-JAX f32 reference matching the kernel semantics."""
    B, Cin, H, Wd = input_img.shape
    hi = jax.lax.Precision.HIGHEST
    x = jnp.transpose(input_img, (0, 2, 3, 1)).reshape(B, H * Wd, Cin)
    x = x.astype(jnp.float32)
    fm = jnp.maximum(
        jnp.einsum("bpc,cf->bpf", x, params["w_bb"], precision=hi)
        + params["b_bb"], 0.0)
    hm = (jnp.einsum("bpf,fo->bpo", fm, params["w_xy"], precision=hi)
          + params["b_xy"])[..., 0]                                  # (B, HW)
    p = jax.nn.softmax(hm, axis=-1)
    s = jnp.arange(H * Wd)
    coord_x = jnp.sum(p * (s % Wd).astype(jnp.float32), axis=-1)
    coord_y = jnp.sum(p * (s // Wd).astype(jnp.float32), axis=-1)
    feat = jnp.mean(fm, axis=1)
    gamma = (jnp.einsum("bf,fo->bo", feat, params["w_d"], precision=hi)
             + params["b_d"])[:, 0]
    depth = gamma * k_value.reshape(-1)
    return jnp.stack([coord_x, coord_y, depth], axis=1)


if __name__ == "__main__":
    B, Cin, H, W = 2, 4, 16, 16
    Cf = 32

    key = jax.random.PRNGKey(0)
    ks = jax.random.split(key, 8)
    params = {
        "w_bb": jax.random.normal(ks[0], (Cin, Cf), jnp.float32) * 0.2,
        "b_bb": jax.random.normal(ks[1], (1, Cf), jnp.float32) * 0.05,
        "w_xy": jax.random.normal(ks[2], (Cf, 1), jnp.float32) * 0.2,
        "b_xy": jax.random.normal(ks[3], (1, 1), jnp.float32) * 0.05,
        "w_d": jax.random.normal(ks[4], (Cf, 1), jnp.float32) * 0.2,
        "b_d": jax.random.normal(ks[5], (1, 1), jnp.float32) * 0.05,
    }
    input_img = jax.random.normal(ks[6], (B, Cin, H, W), jnp.float32)
    k_value = jax.random.uniform(ks[7], (B,), jnp.float32,
                                 minval=500.0, maxval=2000.0)

    # target=None path -> coord of shape (B, 3)
    coord = respose_net_forward(input_img, k_value, params)
    coord = jax.block_until_ready(coord)

    # Reference fed the same bf16-quantized image stream the kernel DMAs
    # (the kernel keeps all accumulation/softmax math in f32).
    ref = respose_net_reference(
        input_img.astype(jnp.bfloat16).astype(jnp.float32), k_value, params)
    assert coord.shape == (B, 3)
    assert jnp.allclose(coord, ref, rtol=1e-3, atol=1e-3), (coord, ref)

    # target path -> per-sample loss of shape (B,)
    target = {
        "coord": ref + 0.5,
        "vis": jnp.ones((B, 3), jnp.float32),
        "have_depth": jnp.ones((B, 1), jnp.float32),
    }
    loss = respose_net_forward(input_img, k_value, params, target=target)
    loss = jax.block_until_ready(loss)
    assert loss.shape == (B,)

    print("KERNEL_OK")
</pallas_src>

<mosaic_0001>
module attributes {stable_mosaic.version = 11 : i64} {
  func.func @_respose_kernel(%arg0: i32, %arg1: memref<128xf32, #tpu.memory_space<smem>>, %arg2: memref<32xf32, #tpu.memory_space<smem>>, %arg3: memref<64xf32, #tpu.memory_space<smem>>, %arg4: memref<2xf32, #tpu.memory_space<smem>>, %arg5: memref<4x16x256xbf16, #tpu.memory_space<vmem>>, %arg6: memref<16x1xf32, #tpu.memory_space<vmem>>, %arg7: memref<2x256xf32, #tpu.memory_space<vmem>>, %arg8: memref<16x128xf32, #tpu.memory_space<vmem>>) attributes {dimension_semantics = [#tpu.dimension_semantics<parallel>], iteration_bounds = array<i64: 1>, scalar_prefetch = 0 : i64, scratch_operands = 0 : i64, tpu.core_type = #tpu.core_type<tc>, window_params = [{transform_indices = @transform_0, window_bounds = array<i64: 128>}, {transform_indices = @transform_1, window_bounds = array<i64: 32>}, {transform_indices = @transform_2, window_bounds = array<i64: 64>}, {transform_indices = @transform_3, window_bounds = array<i64: 2>}, {transform_indices = @transform_4, window_bounds = array<i64: 4, 16, 256>}, {transform_indices = @transform_5, window_bounds = array<i64: 16, 1>}, {pipeline_mode = #tpu.pipeline_mode<synchronous>, transform_indices = @transform_6, window_bounds = array<i64: 2, 256>}, {transform_indices = @transform_7, window_bounds = array<i64: 16, 128>}]} {
    %c0 = arith.constant 0 : index
    %c0_0 = arith.constant 0 : index
    %c0_1 = arith.constant 0 : index
    %0 = vector.load %arg5[%c0, %c0_0, %c0_1] : memref<4x16x256xbf16, #tpu.memory_space<vmem>>, vector<1x16x256xbf16>
    %1 = vector.shape_cast %0 : vector<1x16x256xbf16> to vector<16x256xbf16>
    %2 = arith.extf %1 : vector<16x256xbf16> to vector<16x256xf32>
    %c1 = arith.constant 1 : index
    %c0_2 = arith.constant 0 : index
    %c0_3 = arith.constant 0 : index
    %3 = vector.load %arg5[%c1, %c0_2, %c0_3] : memref<4x16x256xbf16, #tpu.memory_space<vmem>>, vector<1x16x256xbf16>
    %4 = vector.shape_cast %3 : vector<1x16x256xbf16> to vector<16x256xbf16>
    %5 = arith.extf %4 : vector<16x256xbf16> to vector<16x256xf32>
    %c2 = arith.constant 2 : index
    %c0_4 = arith.constant 0 : index
    %c0_5 = arith.constant 0 : index
    %6 = vector.load %arg5[%c2, %c0_4, %c0_5] : memref<4x16x256xbf16, #tpu.memory_space<vmem>>, vector<1x16x256xbf16>
    %7 = vector.shape_cast %6 : vector<1x16x256xbf16> to vector<16x256xbf16>
    %8 = arith.extf %7 : vector<16x256xbf16> to vector<16x256xf32>
    %c3 = arith.constant 3 : index
    %c0_6 = arith.constant 0 : index
    %c0_7 = arith.constant 0 : index
    %9 = vector.load %arg5[%c3, %c0_6, %c0_7] : memref<4x16x256xbf16, #tpu.memory_space<vmem>>, vector<1x16x256xbf16>
    %10 = vector.shape_cast %9 : vector<1x16x256xbf16> to vector<16x256xbf16>
    %11 = arith.extf %10 : vector<16x256xbf16> to vector<16x256xf32>
    %cst = arith.constant 0.000000e+00 : f32
    %12 = vector.broadcast %cst : f32 to vector<16x256xf32>
    %cst_8 = arith.constant 0.000000e+00 : f32
    %13 = vector.broadcast %cst_8 : f32 to vector<16x256xf32>
    %c0_9 = arith.constant 0 : index
    %14 = memref.load %arg1[%c0_9] : memref<128xf32, #tpu.memory_space<smem>>
    %15 = vector.broadcast %14 : f32 to vector<16x256xf32>
    %16 = arith.mulf %2, %15 : vector<16x256xf32>
    %c1_10 = arith.constant 1 : index
    %17 = memref.load %arg1[%c1_10] : memref<128xf32, #tpu.memory_space<smem>>
    %18 = vector.broadcast %17 : f32 to vector<16x256xf32>
    %19 = arith.mulf %5, %18 : vector<16x256xf32>
    %20 = arith.addf %16, %19 : vector<16x256xf32>
    %c2_11 = arith.constant 2 : index
    %21 = memref.load %arg1[%c2_11] : memref<128xf32, #tpu.memory_space<smem>>
    %22 = vector.broadcast %21 : f32 to vector<16x256xf32>
    %23 = arith.mulf %8, %22 : vector<16x256xf32>
    %24 = arith.addf %20, %23 : vector<16x256xf32>
    %c3_12 = arith.constant 3 : index
    %25 = memref.load %arg1[%c3_12] : memref<128xf32, #tpu.memory_space<smem>>
    %26 = vector.broadcast %25 : f32 to vector<16x256xf32>
    %27 = arith.mulf %11, %26 : vector<16x256xf32>
    %28 = arith.addf %24, %27 : vector<16x256xf32>
    %c0_13 = arith.constant 0 : index
    %29 = memref.load %arg2[%c0_13] : memref<32xf32, #tpu.memory_space<smem>>
    %30 = vector.broadcast %29 : f32 to vector<16x256xf32>
    %31 = arith.addf %28, %30 : vector<16x256xf32>
    %cst_14 = arith.constant 0.000000e+00 : f32
    %32 = vector.broadcast %cst_14 : f32 to vector<16x256xf32>
    %33 = arith.maximumf %31, %32 : vector<16x256xf32>
    %c0_15 = arith.constant 0 : index
    %34 = memref.load %arg3[%c0_15] : memref<64xf32, #tpu.memory_space<smem>>
    %35 = vector.broadcast %34 : f32 to vector<16x256xf32>
    %36 = arith.mulf %33, %35 : vector<16x256xf32>
    %37 = arith.addf %12, %36 : vector<16x256xf32>
    %c32 = arith.constant 32 : index
    %38 = memref.load %arg3[%c32] : memref<64xf32, #tpu.memory_space<smem>>
    %39 = vector.broadcast %38 : f32 to vector<16x256xf32>
    %40 = arith.mulf %33, %39 : vector<16x256xf32>
    %41 = arith.addf %13, %40 : vector<16x256xf32>
    %c4 = arith.constant 4 : index
    %42 = memref.load %arg1[%c4] : memref<128xf32, #tpu.memory_space<smem>>
    %43 = vector.broadcast %42 : f32 to vector<16x256xf32>
    %44 = arith.mulf %2, %43 : vector<16x256xf32>
    %c5 = arith.constant 5 : index
    %45 = memref.load %arg1[%c5] : memref<128xf32, #tpu.memory_space<smem>>
    %46 = vector.broadcast %45 : f32 to vector<16x256xf32>
    %47 = arith.mulf %5, %46 : vector<16x256xf32>
    %48 = arith.addf %44, %47 : vector<16x256xf32>
    %c6 = arith.constant 6 : index
    %49 = memref.load %arg1[%c6] : memref<128xf32, #tpu.memory_space<smem>>
    %50 = vector.broadcast %49 : f32 to vector<16x256xf32>
    %51 = arith.mulf %8, %50 : vector<16x256xf32>
    %52 = arith.addf %48, %51 : vector<16x256xf32>
    %c7 = arith.constant 7 : index
    %53 = memref.load %arg1[%c7] : memref<128xf32, #tpu.memory_space<smem>>
    %54 = vector.broadcast %53 : f32 to vector<16x256xf32>
    %55 = arith.mulf %11, %54 : vector<16x256xf32>
    %56 = arith.addf %52, %55 : vector<16x256xf32>
    %c1_16 = arith.constant 1 : index
    %57 = memref.load %arg2[%c1_16] : memref<32xf32, #tpu.memory_space<smem>>
    %58 = vector.broadcast %57 : f32 to vector<16x256xf32>
    %59 = arith.addf %56, %58 : vector<16x256xf32>
    %cst_17 = arith.constant 0.000000e+00 : f32
    %60 = vector.broadcast %cst_17 : f32 to vector<16x256xf32>
    %61 = arith.maximumf %59, %60 : vector<16x256xf32>
    %c1_18 = arith.constant 1 : index
    %62 = memref.load %arg3[%c1_18] : memref<64xf32, #tpu.memory_space<smem>>
    %63 = vector.broadcast %62 : f32 to vector<16x256xf32>
    %64 = arith.mulf %61, %63 : vector<16x256xf32>
    %65 = arith.addf %37, %64 : vector<16x256xf32>
    %c33 = arith.constant 33 : index
    %66 = memref.load %arg3[%c33] : memref<64xf32, #tpu.memory_space<smem>>
    %67 = vector.broadcast %66 : f32 to vector<16x256xf32>
    %68 = arith.mulf %61, %67 : vector<16x256xf32>
    %69 = arith.addf %41, %68 : vector<16x256xf32>
    %c8 = arith.constant 8 : index
    %70 = memref.load %arg1[%c8] : memref<128xf32, #tpu.memory_space<smem>>
    %71 = vector.broadcast %70 : f32 to vector<16x256xf32>
    %72 = arith.mulf %2, %71 : vector<16x256xf32>
    %c9 = arith.constant 9 : index
    %73 = memref.load %arg1[%c9] : memref<128xf32, #tpu.memory_space<smem>>
    %74 = vector.broadcast %73 : f32 to vector<16x256xf32>
    %75 = arith.mulf %5, %74 : vector<16x256xf32>
    %76 = arith.addf %72, %75 : vector<16x256xf32>
    %c10 = arith.constant 10 : index
    %77 = memref.load %arg1[%c10] : memref<128xf32, #tpu.memory_space<smem>>
    %78 = vector.broadcast %77 : f32 to vector<16x256xf32>
    %79 = arith.mulf %8, %78 : vector<16x256xf32>
    %80 = arith.addf %76, %79 : vector<16x256xf32>
    %c11 = arith.constant 11 : index
    %81 = memref.load %arg1[%c11] : memref<128xf32, #tpu.memory_space<smem>>
    %82 = vector.broadcast %81 : f32 to vector<16x256xf32>
    %83 = arith.mulf %11, %82 : vector<16x256xf32>
    %84 = arith.addf %80, %83 : vector<16x256xf32>
    %c2_19 = arith.constant 2 : index
    %85 = memref.load %arg2[%c2_19] : memref<32xf32, #tpu.memory_space<smem>>
    %86 = vector.broadcast %85 : f32 to vector<16x256xf32>
    %87 = arith.addf %84, %86 : vector<16x256xf32>
    %cst_20 = arith.constant 0.000000e+00 : f32
    %88 = vector.broadcast %cst_20 : f32 to vector<16x256xf32>
    %89 = arith.maximumf %87, %88 : vector<16x256xf32>
    %c2_21 = arith.constant 2 : index
    %90 = memref.load %arg3[%c2_21] : memref<64xf32, #tpu.memory_space<smem>>
    %91 = vector.broadcast %90 : f32 to vector<16x256xf32>
    %92 = arith.mulf %89, %91 : vector<16x256xf32>
    %93 = arith.addf %65, %92 : vector<16x256xf32>
    %c34 = arith.constant 34 : index
    %94 = memref.load %arg3[%c34] : memref<64xf32, #tpu.memory_space<smem>>
    %95 = vector.broadcast %94 : f32 to vector<16x256xf32>
    %96 = arith.mulf %89, %95 : vector<16x256xf32>
    %97 = arith.addf %69, %96 : vector<16x256xf32>
    %c12 = arith.constant 12 : index
    %98 = memref.load %arg1[%c12] : memref<128xf32, #tpu.memory_space<smem>>
    %99 = vector.broadcast %98 : f32 to vector<16x256xf32>
    %100 = arith.mulf %2, %99 : vector<16x256xf32>
    %c13 = arith.constant 13 : index
    %101 = memref.load %arg1[%c13] : memref<128xf32, #tpu.memory_space<smem>>
    %102 = vector.broadcast %101 : f32 to vector<16x256xf32>
    %103 = arith.mulf %5, %102 : vector<16x256xf32>
    %104 = arith.addf %100, %103 : vector<16x256xf32>
    %c14 = arith.constant 14 : index
    %105 = memref.load %arg1[%c14] : memref<128xf32, #tpu.memory_space<smem>>
    %106 = vector.broadcast %105 : f32 to vector<16x256xf32>
    %107 = arith.mulf %8, %106 : vector<16x256xf32>
    %108 = arith.addf %104, %107 : vector<16x256xf32>
    %c15 = arith.constant 15 : index
    %109 = memref.load %arg1[%c15] : memref<128xf32, #tpu.memory_space<smem>>
    %110 = vector.broadcast %109 : f32 to vector<16x256xf32>
    %111 = arith.mulf %11, %110 : vector<16x256xf32>
    %112 = arith.addf %108, %111 : vector<16x256xf32>
    %c3_22 = arith.constant 3 : index
    %113 = memref.load %arg2[%c3_22] : memref<32xf32, #tpu.memory_space<smem>>
    %114 = vector.broadcast %113 : f32 to vector<16x256xf32>
    %115 = arith.addf %112, %114 : vector<16x256xf32>
    %cst_23 = arith.constant 0.000000e+00 : f32
    %116 = vector.broadcast %cst_23 : f32 to vector<16x256xf32>
    %117 = arith.maximumf %115, %116 : vector<16x256xf32>
    %c3_24 = arith.constant 3 : index
    %118 = memref.load %arg3[%c3_24] : memref<64xf32, #tpu.memory_space<smem>>
    %119 = vector.broadcast %118 : f32 to vector<16x256xf32>
    %120 = arith.mulf %117, %119 : vector<16x256xf32>
    %121 = arith.addf %93, %120 : vector<16x256xf32>
    %c35 = arith.constant 35 : index
    %122 = memref.load %arg3[%c35] : memref<64xf32, #tpu.memory_space<smem>>
    %123 = vector.broadcast %122 : f32 to vector<16x256xf32>
    %124 = arith.mulf %117, %123 : vector<16x256xf32>
    %125 = arith.addf %97, %124 : vector<16x256xf32>
    %c16 = arith.constant 16 : index
    %126 = memref.load %arg1[%c16] : memref<128xf32, #tpu.memory_space<smem>>
    %127 = vector.broadcast %126 : f32 to vector<16x256xf32>
    %128 = arith.mulf %2, %127 : vector<16x256xf32>
    %c17 = arith.constant 17 : index
    %129 = memref.load %arg1[%c17] : memref<128xf32, #tpu.memory_space<smem>>
    %130 = vector.broadcast %129 : f32 to vector<16x256xf32>
    %131 = arith.mulf %5, %130 : vector<16x256xf32>
    %132 = arith.addf %128, %131 : vector<16x256xf32>
    %c18 = arith.constant 18 : index
    %133 = memref.load %arg1[%c18] : memref<128xf32, #tpu.memory_space<smem>>
    %134 = vector.broadcast %133 : f32 to vector<16x256xf32>
    %135 = arith.mulf %8, %134 : vector<16x256xf32>
    %136 = arith.addf %132, %135 : vector<16x256xf32>
    %c19 = arith.constant 19 : index
    %137 = memref.load %arg1[%c19] : memref<128xf32, #tpu.memory_space<smem>>
    %138 = vector.broadcast %137 : f32 to vector<16x256xf32>
    %139 = arith.mulf %11, %138 : vector<16x256xf32>
    %140 = arith.addf %136, %139 : vector<16x256xf32>
    %c4_25 = arith.constant 4 : index
    %141 = memref.load %arg2[%c4_25] : memref<32xf32, #tpu.memory_space<smem>>
    %142 = vector.broadcast %141 : f32 to vector<16x256xf32>
    %143 = arith.addf %140, %142 : vector<16x256xf32>
    %cst_26 = arith.constant 0.000000e+00 : f32
    %144 = vector.broadcast %cst_26 : f32 to vector<16x256xf32>
    %145 = arith.maximumf %143, %144 : vector<16x256xf32>
    %c4_27 = arith.constant 4 : index
    %146 = memref.load %arg3[%c4_27] : memref<64xf32, #tpu.memory_space<smem>>
    %147 = vector.broadcast %146 : f32 to vector<16x256xf32>
    %148 = arith.mulf %145, %147 : vector<16x256xf32>
    %149 = arith.addf %121, %148 : vector<16x256xf32>
    %c36 = arith.constant 36 : index
    %150 = memref.load %arg3[%c36] : memref<64xf32, #tpu.memory_space<smem>>
    %151 = vector.broadcast %150 : f32 to vector<16x256xf32>
    %152 = arith.mulf %145, %151 : vector<16x256xf32>
    %153 = arith.addf %125, %152 : vector<16x256xf32>
    %c20 = arith.constant 20 : index
    %154 = memref.load %arg1[%c20] : memref<128xf32, #tpu.memory_space<smem>>
    %155 = vector.broadcast %154 : f32 to vector<16x256xf32>
    %156 = arith.mulf %2, %155 : vector<16x256xf32>
    %c21 = arith.constant 21 : index
    %157 = memref.load %arg1[%c21] : memref<128xf32, #tpu.memory_space<smem>>
    %158 = vector.broadcast %157 : f32 to vector<16x256xf32>
    %159 = arith.mulf %5, %158 : vector<16x256xf32>
    %160 = arith.addf %156, %159 : vector<16x256xf32>
    %c22 = arith.constant 22 : index
    %161 = memref.load %arg1[%c22] : memref<128xf32, #tpu.memory_space<smem>>
    %162 = vector.broadcast %161 : f32 to vector<16x256xf32>
    %163 = arith.mulf %8, %162 : vector<16x256xf32>
    %164 = arith.addf %160, %163 : vector<16x256xf32>
    %c23 = arith.constant 23 : index
    %165 = memref.load %arg1[%c23] : memref<128xf32, #tpu.memory_space<smem>>
    %166 = vector.broadcast %165 : f32 to vector<16x256xf32>
    %167 = arith.mulf %11, %166 : vector<16x256xf32>
    %168 = arith.addf %164, %167 : vector<16x256xf32>
    %c5_28 = arith.constant 5 : index
    %169 = memref.load %arg2[%c5_28] : memref<32xf32, #tpu.memory_space<smem>>
    %170 = vector.broadcast %169 : f32 to vector<16x256xf32>
    %171 = arith.addf %168, %170 : vector<16x256xf32>
    %cst_29 = arith.constant 0.000000e+00 : f32
    %172 = vector.broadcast %cst_29 : f32 to vector<16x256xf32>
    %173 = arith.maximumf %171, %172 : vector<16x256xf32>
    %c5_30 = arith.constant 5 : index
    %174 = memref.load %arg3[%c5_30] : memref<64xf32, #tpu.memory_space<smem>>
    %175 = vector.broadcast %174 : f32 to vector<16x256xf32>
    %176 = arith.mulf %173, %175 : vector<16x256xf32>
    %177 = arith.addf %149, %176 : vector<16x256xf32>
    %c37 = arith.constant 37 : index
    %178 = memref.load %arg3[%c37] : memref<64xf32, #tpu.memory_space<smem>>
    %179 = vector.broadcast %178 : f32 to vector<16x256xf32>
    %180 = arith.mulf %173, %179 : vector<16x256xf32>
    %181 = arith.addf %153, %180 : vector<16x256xf32>
    %c24 = arith.constant 24 : index
    %182 = memref.load %arg1[%c24] : memref<128xf32, #tpu.memory_space<smem>>
    %183 = vector.broadcast %182 : f32 to vector<16x256xf32>
    %184 = arith.mulf %2, %183 : vector<16x256xf32>
    %c25 = arith.constant 25 : index
    %185 = memref.load %arg1[%c25] : memref<128xf32, #tpu.memory_space<smem>>
    %186 = vector.broadcast %185 : f32 to vector<16x256xf32>
    %187 = arith.mulf %5, %186 : vector<16x256xf32>
    %188 = arith.addf %184, %187 : vector<16x256xf32>
    %c26 = arith.constant 26 : index
    %189 = memref.load %arg1[%c26] : memref<128xf32, #tpu.memory_space<smem>>
    %190 = vector.broadcast %189 : f32 to vector<16x256xf32>
    %191 = arith.mulf %8, %190 : vector<16x256xf32>
    %192 = arith.addf %188, %191 : vector<16x256xf32>
    %c27 = arith.constant 27 : index
    %193 = memref.load %arg1[%c27] : memref<128xf32, #tpu.memory_space<smem>>
    %194 = vector.broadcast %193 : f32 to vector<16x256xf32>
    %195 = arith.mulf %11, %194 : vector<16x256xf32>
    %196 = arith.addf %192, %195 : vector<16x256xf32>
    %c6_31 = arith.constant 6 : index
    %197 = memref.load %arg2[%c6_31] : memref<32xf32, #tpu.memory_space<smem>>
    %198 = vector.broadcast %197 : f32 to vector<16x256xf32>
    %199 = arith.addf %196, %198 : vector<16x256xf32>
    %cst_32 = arith.constant 0.000000e+00 : f32
    %200 = vector.broadcast %cst_32 : f32 to vector<16x256xf32>
    %201 = arith.maximumf %199, %200 : vector<16x256xf32>
    %c6_33 = arith.constant 6 : index
    %202 = memref.load %arg3[%c6_33] : memref<64xf32, #tpu.memory_space<smem>>
    %203 = vector.broadcast %202 : f32 to vector<16x256xf32>
    %204 = arith.mulf %201, %203 : vector<16x256xf32>
    %205 = arith.addf %177, %204 : vector<16x256xf32>
    %c38 = arith.constant 38 : index
    %206 = memref.load %arg3[%c38] : memref<64xf32, #tpu.memory_space<smem>>
    %207 = vector.broadcast %206 : f32 to vector<16x256xf32>
    %208 = arith.mulf %201, %207 : vector<16x256xf32>
    %209 = arith.addf %181, %208 : vector<16x256xf32>
    %c28 = arith.constant 28 : index
    %210 = memref.load %arg1[%c28] : memref<128xf32, #tpu.memory_space<smem>>
    %211 = vector.broadcast %210 : f32 to vector<16x256xf32>
    %212 = arith.mulf %2, %211 : vector<16x256xf32>
    %c29 = arith.constant 29 : index
    %213 = memref.load %arg1[%c29] : memref<128xf32, #tpu.memory_space<smem>>
    %214 = vector.broadcast %213 : f32 to vector<16x256xf32>
    %215 = arith.mulf %5, %214 : vector<16x256xf32>
    %216 = arith.addf %212, %215 : vector<16x256xf32>
    %c30 = arith.constant 30 : index
    %217 = memref.load %arg1[%c30] : memref<128xf32, #tpu.memory_space<smem>>
    %218 = vector.broadcast %217 : f32 to vector<16x256xf32>
    %219 = arith.mulf %8, %218 : vector<16x256xf32>
    %220 = arith.addf %216, %219 : vector<16x256xf32>
    %c31 = arith.constant 31 : index
    %221 = memref.load %arg1[%c31] : memref<128xf32, #tpu.memory_space<smem>>
    %222 = vector.broadcast %221 : f32 to vector<16x256xf32>
    %223 = arith.mulf %11, %222 : vector<16x256xf32>
    %224 = arith.addf %220, %223 : vector<16x256xf32>
    %c7_34 = arith.constant 7 : index
    %225 = memref.load %arg2[%c7_34] : memref<32xf32, #tpu.memory_space<smem>>
    %226 = vector.broadcast %225 : f32 to vector<16x256xf32>
    %227 = arith.addf %224, %226 : vector<16x256xf32>
    %cst_35 = arith.constant 0.000000e+00 : f32
    %228 = vector.broadcast %cst_35 : f32 to vector<16x256xf32>
    %229 = arith.maximumf %227, %228 : vector<16x256xf32>
    %c7_36 = arith.constant 7 : index
    %230 = memref.load %arg3[%c7_36] : memref<64xf32, #tpu.memory_space<smem>>
    %231 = vector.broadcast %230 : f32 to vector<16x256xf32>
    %232 = arith.mulf %229, %231 : vector<16x256xf32>
    %233 = arith.addf %205, %232 : vector<16x256xf32>
    %c39 = arith.constant 39 : index
    %234 = memref.load %arg3[%c39] : memref<64xf32, #tpu.memory_space<smem>>
    %235 = vector.broadcast %234 : f32 to vector<16x256xf32>
    %236 = arith.mulf %229, %235 : vector<16x256xf32>
    %237 = arith.addf %209, %236 : vector<16x256xf32>
    %c32_37 = arith.constant 32 : index
    %238 = memref.load %arg1[%c32_37] : memref<128xf32, #tpu.memory_space<smem>>
    %239 = vector.broadcast %238 : f32 to vector<16x256xf32>
    %240 = arith.mulf %2, %239 : vector<16x256xf32>
    %c33_38 = arith.constant 33 : index
    %241 = memref.load %arg1[%c33_38] : memref<128xf32, #tpu.memory_space<smem>>
    %242 = vector.broadcast %241 : f32 to vector<16x256xf32>
    %243 = arith.mulf %5, %242 : vector<16x256xf32>
    %244 = arith.addf %240, %243 : vector<16x256xf32>
    %c34_39 = arith.constant 34 : index
    %245 = memref.load %arg1[%c34_39] : memref<128xf32, #tpu.memory_space<smem>>
    %246 = vector.broadcast %245 : f32 to vector<16x256xf32>
    %247 = arith.mulf %8, %246 : vector<16x256xf32>
    %248 = arith.addf %244, %247 : vector<16x256xf32>
    %c35_40 = arith.constant 35 : index
    %249 = memref.load %arg1[%c35_40] : memref<128xf32, #tpu.memory_space<smem>>
    %250 = vector.broadcast %249 : f32 to vector<16x256xf32>
    %251 = arith.mulf %11, %250 : vector<16x256xf32>
    %252 = arith.addf %248, %251 : vector<16x256xf32>
    %c8_41 = arith.constant 8 : index
    %253 = memref.load %arg2[%c8_41] : memref<32xf32, #tpu.memory_space<smem>>
    %254 = vector.broadcast %253 : f32 to vector<16x256xf32>
    %255 = arith.addf %252, %254 : vector<16x256xf32>
    %cst_42 = arith.constant 0.000000e+00 : f32
    %256 = vector.broadcast %cst_42 : f32 to vector<16x256xf32>
    %257 = arith.maximumf %255, %256 : vector<16x256xf32>
    %c8_43 = arith.constant 8 : index
    %258 = memref.load %arg3[%c8_43] : memref<64xf32, #tpu.memory_space<smem>>
    %259 = vector.broadcast %258 : f32 to vector<16x256xf32>
    %260 = arith.mulf %257, %259 : vector<16x256xf32>
    %261 = arith.addf %233, %260 : vector<16x256xf32>
    %c40 = arith.constant 40 : index
    %262 = memref.load %arg3[%c40] : memref<64xf32, #tpu.memory_space<smem>>
    %263 = vector.broadcast %262 : f32 to vector<16x256xf32>
    %264 = arith.mulf %257, %263 : vector<16x256xf32>
    %265 = arith.addf %237, %264 : vector<16x256xf32>
    %c36_44 = arith.constant 36 : index
    %266 = memref.load %arg1[%c36_44] : memref<128xf32, #tpu.memory_space<smem>>
    %267 = vector.broadcast %266 : f32 to vector<16x256xf32>
    %268 = arith.mulf %2, %267 : vector<16x256xf32>
    %c37_45 = arith.constant 37 : index
    %269 = memref.load %arg1[%c37_45] : memref<128xf32, #tpu.memory_space<smem>>
    %270 = vector.broadcast %269 : f32 to vector<16x256xf32>
    %271 = arith.mulf %5, %270 : vector<16x256xf32>
    %272 = arith.addf %268, %271 : vector<16x256xf32>
    %c38_46 = arith.constant 38 : index
    %273 = memref.load %arg1[%c38_46] : memref<128xf32, #tpu.memory_space<smem>>
    %274 = vector.broadcast %273 : f32 to vector<16x256xf32>
    %275 = arith.mulf %8, %274 : vector<16x256xf32>
    %276 = arith.addf %272, %275 : vector<16x256xf32>
    %c39_47 = arith.constant 39 : index
    %277 = memref.load %arg1[%c39_47] : memref<128xf32, #tpu.memory_space<smem>>
    %278 = vector.broadcast %277 : f32 to vector<16x256xf32>
    %279 = arith.mulf %11, %278 : vector<16x256xf32>
    %280 = arith.addf %276, %279 : vector<16x256xf32>
    %c9_48 = arith.constant 9 : index
    %281 = memref.load %arg2[%c9_48] : memref<32xf32, #tpu.memory_space<smem>>
    %282 = vector.broadcast %281 : f32 to vector<16x256xf32>
    %283 = arith.addf %280, %282 : vector<16x256xf32>
    %cst_49 = arith.constant 0.000000e+00 : f32
    %284 = vector.broadcast %cst_49 : f32 to vector<16x256xf32>
    %285 = arith.maximumf %283, %284 : vector<16x256xf32>
    %c9_50 = arith.constant 9 : index
    %286 = memref.load %arg3[%c9_50] : memref<64xf32, #tpu.memory_space<smem>>
    %287 = vector.broadcast %286 : f32 to vector<16x256xf32>
    %288 = arith.mulf %285, %287 : vector<16x256xf32>
    %289 = arith.addf %261, %288 : vector<16x256xf32>
    %c41 = arith.constant 41 : index
    %290 = memref.load %arg3[%c41] : memref<64xf32, #tpu.memory_space<smem>>
    %291 = vector.broadcast %290 : f32 to vector<16x256xf32>
    %292 = arith.mulf %285, %291 : vector<16x256xf32>
    %293 = arith.addf %265, %292 : vector<16x256xf32>
    %c40_51 = arith.constant 40 : index
    %294 = memref.load %arg1[%c40_51] : memref<128xf32, #tpu.memory_space<smem>>
    %295 = vector.broadcast %294 : f32 to vector<16x256xf32>
    %296 = arith.mulf %2, %295 : vector<16x256xf32>
    %c41_52 = arith.constant 41 : index
    %297 = memref.load %arg1[%c41_52] : memref<128xf32, #tpu.memory_space<smem>>
    %298 = vector.broadcast %297 : f32 to vector<16x256xf32>
    %299 = arith.mulf %5, %298 : vector<16x256xf32>
    %300 = arith.addf %296, %299 : vector<16x256xf32>
    %c42 = arith.constant 42 : index
    %301 = memref.load %arg1[%c42] : memref<128xf32, #tpu.memory_space<smem>>
    %302 = vector.broadcast %301 : f32 to vector<16x256xf32>
    %303 = arith.mulf %8, %302 : vector<16x256xf32>
    %304 = arith.addf %300, %303 : vector<16x256xf32>
    %c43 = arith.constant 43 : index
    %305 = memref.load %arg1[%c43] : memref<128xf32, #tpu.memory_space<smem>>
    %306 = vector.broadcast %305 : f32 to vector<16x256xf32>
    %307 = arith.mulf %11, %306 : vector<16x256xf32>
    %308 = arith.addf %304, %307 : vector<16x256xf32>
    %c10_53 = arith.constant 10 : index
    %309 = memref.load %arg2[%c10_53] : memref<32xf32, #tpu.memory_space<smem>>
    %310 = vector.broadcast %309 : f32 to vector<16x256xf32>
    %311 = arith.addf %308, %310 : vector<16x256xf32>
    %cst_54 = arith.constant 0.000000e+00 : f32
    %312 = vector.broadcast %cst_54 : f32 to vector<16x256xf32>
    %313 = arith.maximumf %311, %312 : vector<16x256xf32>
    %c10_55 = arith.constant 10 : index
    %314 = memref.load %arg3[%c10_55] : memref<64xf32, #tpu.memory_space<smem>>
    %315 = vector.broadcast %314 : f32 to vector<16x256xf32>
    %316 = arith.mulf %313, %315 : vector<16x256xf32>
    %317 = arith.addf %289, %316 : vector<16x256xf32>
    %c42_56 = arith.constant 42 : index
    %318 = memref.load %arg3[%c42_56] : memref<64xf32, #tpu.memory_space<smem>>
    %319 = vector.broadcast %318 : f32 to vector<16x256xf32>
    %320 = arith.mulf %313, %319 : vector<16x256xf32>
    %321 = arith.addf %293, %320 : vector<16x256xf32>
    %c44 = arith.constant 44 : index
    %322 = memref.load %arg1[%c44] : memref<128xf32, #tpu.memory_space<smem>>
    %323 = vector.broadcast %322 : f32 to vector<16x256xf32>
    %324 = arith.mulf %2, %323 : vector<16x256xf32>
    %c45 = arith.constant 45 : index
    %325 = memref.load %arg1[%c45] : memref<128xf32, #tpu.memory_space<smem>>
    %326 = vector.broadcast %325 : f32 to vector<16x256xf32>
    %327 = arith.mulf %5, %326 : vector<16x256xf32>
    %328 = arith.addf %324, %327 : vector<16x256xf32>
    %c46 = arith.constant 46 : index
    %329 = memref.load %arg1[%c46] : memref<128xf32, #tpu.memory_space<smem>>
    %330 = vector.broadcast %329 : f32 to vector<16x256xf32>
    %331 = arith.mulf %8, %330 : vector<16x256xf32>
    %332 = arith.addf %328, %331 : vector<16x256xf32>
    %c47 = arith.constant 47 : index
    %333 = memref.load %arg1[%c47] : memref<128xf32, #tpu.memory_space<smem>>
    %334 = vector.broadcast %333 : f32 to vector<16x256xf32>
    %335 = arith.mulf %11, %334 : vector<16x256xf32>
    %336 = arith.addf %332, %335 : vector<16x256xf32>
    %c11_57 = arith.constant 11 : index
    %337 = memref.load %arg2[%c11_57] : memref<32xf32, #tpu.memory_space<smem>>
    %338 = vector.broadcast %337 : f32 to vector<16x256xf32>
    %339 = arith.addf %336, %338 : vector<16x256xf32>
    %cst_58 = arith.constant 0.000000e+00 : f32
    %340 = vector.broadcast %cst_58 : f32 to vector<16x256xf32>
    %341 = arith.maximumf %339, %340 : vector<16x256xf32>
    %c11_59 = arith.constant 11 : index
    %342 = memref.load %arg3[%c11_59] : memref<64xf32, #tpu.memory_space<smem>>
    %343 = vector.broadcast %342 : f32 to vector<16x256xf32>
    %344 = arith.mulf %341, %343 : vector<16x256xf32>
    %345 = arith.addf %317, %344 : vector<16x256xf32>
    %c43_60 = arith.constant 43 : index
    %346 = memref.load %arg3[%c43_60] : memref<64xf32, #tpu.memory_space<smem>>
    %347 = vector.broadcast %346 : f32 to vector<16x256xf32>
    %348 = arith.mulf %341, %347 : vector<16x256xf32>
    %349 = arith.addf %321, %348 : vector<16x256xf32>
    %c48 = arith.constant 48 : index
    %350 = memref.load %arg1[%c48] : memref<128xf32, #tpu.memory_space<smem>>
    %351 = vector.broadcast %350 : f32 to vector<16x256xf32>
    %352 = arith.mulf %2, %351 : vector<16x256xf32>
    %c49 = arith.constant 49 : index
    %353 = memref.load %arg1[%c49] : memref<128xf32, #tpu.memory_space<smem>>
    %354 = vector.broadcast %353 : f32 to vector<16x256xf32>
    %355 = arith.mulf %5, %354 : vector<16x256xf32>
    %356 = arith.addf %352, %355 : vector<16x256xf32>
    %c50 = arith.constant 50 : index
    %357 = memref.load %arg1[%c50] : memref<128xf32, #tpu.memory_space<smem>>
    %358 = vector.broadcast %357 : f32 to vector<16x256xf32>
    %359 = arith.mulf %8, %358 : vector<16x256xf32>
    %360 = arith.addf %356, %359 : vector<16x256xf32>
    %c51 = arith.constant 51 : index
    %361 = memref.load %arg1[%c51] : memref<128xf32, #tpu.memory_space<smem>>
    %362 = vector.broadcast %361 : f32 to vector<16x256xf32>
    %363 = arith.mulf %11, %362 : vector<16x256xf32>
    %364 = arith.addf %360, %363 : vector<16x256xf32>
    %c12_61 = arith.constant 12 : index
    %365 = memref.load %arg2[%c12_61] : memref<32xf32, #tpu.memory_space<smem>>
    %366 = vector.broadcast %365 : f32 to vector<16x256xf32>
    %367 = arith.addf %364, %366 : vector<16x256xf32>
    %cst_62 = arith.constant 0.000000e+00 : f32
    %368 = vector.broadcast %cst_62 : f32 to vector<16x256xf32>
    %369 = arith.maximumf %367, %368 : vector<16x256xf32>
    %c12_63 = arith.constant 12 : index
    %370 = memref.load %arg3[%c12_63] : memref<64xf32, #tpu.memory_space<smem>>
    %371 = vector.broadcast %370 : f32 to vector<16x256xf32>
    %372 = arith.mulf %369, %371 : vector<16x256xf32>
    %373 = arith.addf %345, %372 : vector<16x256xf32>
    %c44_64 = arith.constant 44 : index
    %374 = memref.load %arg3[%c44_64] : memref<64xf32, #tpu.memory_space<smem>>
    %375 = vector.broadcast %374 : f32 to vector<16x256xf32>
    %376 = arith.mulf %369, %375 : vector<16x256xf32>
    %377 = arith.addf %349, %376 : vector<16x256xf32>
    %c52 = arith.constant 52 : index
    %378 = memref.load %arg1[%c52] : memref<128xf32, #tpu.memory_space<smem>>
    %379 = vector.broadcast %378 : f32 to vector<16x256xf32>
    %380 = arith.mulf %2, %379 : vector<16x256xf32>
    %c53 = arith.constant 53 : index
    %381 = memref.load %arg1[%c53] : memref<128xf32, #tpu.memory_space<smem>>
    %382 = vector.broadcast %381 : f32 to vector<16x256xf32>
    %383 = arith.mulf %5, %382 : vector<16x256xf32>
    %384 = arith.addf %380, %383 : vector<16x256xf32>
    %c54 = arith.constant 54 : index
    %385 = memref.load %arg1[%c54] : memref<128xf32, #tpu.memory_space<smem>>
    %386 = vector.broadcast %385 : f32 to vector<16x256xf32>
    %387 = arith.mulf %8, %386 : vector<16x256xf32>
    %388 = arith.addf %384, %387 : vector<16x256xf32>
    %c55 = arith.constant 55 : index
    %389 = memref.load %arg1[%c55] : memref<128xf32, #tpu.memory_space<smem>>
    %390 = vector.broadcast %389 : f32 to vector<16x256xf32>
    %391 = arith.mulf %11, %390 : vector<16x256xf32>
    %392 = arith.addf %388, %391 : vector<16x256xf32>
    %c13_65 = arith.constant 13 : index
    %393 = memref.load %arg2[%c13_65] : memref<32xf32, #tpu.memory_space<smem>>
    %394 = vector.broadcast %393 : f32 to vector<16x256xf32>
    %395 = arith.addf %392, %394 : vector<16x256xf32>
    %cst_66 = arith.constant 0.000000e+00 : f32
    %396 = vector.broadcast %cst_66 : f32 to vector<16x256xf32>
    %397 = arith.maximumf %395, %396 : vector<16x256xf32>
    %c13_67 = arith.constant 13 : index
    %398 = memref.load %arg3[%c13_67] : memref<64xf32, #tpu.memory_space<smem>>
    %399 = vector.broadcast %398 : f32 to vector<16x256xf32>
    %400 = arith.mulf %397, %399 : vector<16x256xf32>
    %401 = arith.addf %373, %400 : vector<16x256xf32>
    %c45_68 = arith.constant 45 : index
    %402 = memref.load %arg3[%c45_68] : memref<64xf32, #tpu.memory_space<smem>>
    %403 = vector.broadcast %402 : f32 to vector<16x256xf32>
    %404 = arith.mulf %397, %403 : vector<16x256xf32>
    %405 = arith.addf %377, %404 : vector<16x256xf32>
    %c56 = arith.constant 56 : index
    %406 = memref.load %arg1[%c56] : memref<128xf32, #tpu.memory_space<smem>>
    %407 = vector.broadcast %406 : f32 to vector<16x256xf32>
    %408 = arith.mulf %2, %407 : vector<16x256xf32>
    %c57 = arith.constant 57 : index
    %409 = memref.load %arg1[%c57] : memref<128xf32, #tpu.memory_space<smem>>
    %410 = vector.broadcast %409 : f32 to vector<16x256xf32>
    %411 = arith.mulf %5, %410 : vector<16x256xf32>
    %412 = arith.addf %408, %411 : vector<16x256xf32>
    %c58 = arith.constant 58 : index
    %413 = memref.load %arg1[%c58] : memref<128xf32, #tpu.memory_space<smem>>
    %414 = vector.broadcast %413 : f32 to vector<16x256xf32>
    %415 = arith.mulf %8, %414 : vector<16x256xf32>
    %416 = arith.addf %412, %415 : vector<16x256xf32>
    %c59 = arith.constant 59 : index
    %417 = memref.load %arg1[%c59] : memref<128xf32, #tpu.memory_space<smem>>
    %418 = vector.broadcast %417 : f32 to vector<16x256xf32>
    %419 = arith.mulf %11, %418 : vector<16x256xf32>
    %420 = arith.addf %416, %419 : vector<16x256xf32>
    %c14_69 = arith.constant 14 : index
    %421 = memref.load %arg2[%c14_69] : memref<32xf32, #tpu.memory_space<smem>>
    %422 = vector.broadcast %421 : f32 to vector<16x256xf32>
    %423 = arith.addf %420, %422 : vector<16x256xf32>
    %cst_70 = arith.constant 0.000000e+00 : f32
    %424 = vector.broadcast %cst_70 : f32 to vector<16x256xf32>
    %425 = arith.maximumf %423, %424 : vector<16x256xf32>
    %c14_71 = arith.constant 14 : index
    %426 = memref.load %arg3[%c14_71] : memref<64xf32, #tpu.memory_space<smem>>
    %427 = vector.broadcast %426 : f32 to vector<16x256xf32>
    %428 = arith.mulf %425, %427 : vector<16x256xf32>
    %429 = arith.addf %401, %428 : vector<16x256xf32>
    %c46_72 = arith.constant 46 : index
    %430 = memref.load %arg3[%c46_72] : memref<64xf32, #tpu.memory_space<smem>>
    %431 = vector.broadcast %430 : f32 to vector<16x256xf32>
    %432 = arith.mulf %425, %431 : vector<16x256xf32>
    %433 = arith.addf %405, %432 : vector<16x256xf32>
    %c60 = arith.constant 60 : index
    %434 = memref.load %arg1[%c60] : memref<128xf32, #tpu.memory_space<smem>>
    %435 = vector.broadcast %434 : f32 to vector<16x256xf32>
    %436 = arith.mulf %2, %435 : vector<16x256xf32>
    %c61 = arith.constant 61 : index
    %437 = memref.load %arg1[%c61] : memref<128xf32, #tpu.memory_space<smem>>
    %438 = vector.broadcast %437 : f32 to vector<16x256xf32>
    %439 = arith.mulf %5, %438 : vector<16x256xf32>
    %440 = arith.addf %436, %439 : vector<16x256xf32>
    %c62 = arith.constant 62 : index
    %441 = memref.load %arg1[%c62] : memref<128xf32, #tpu.memory_space<smem>>
    %442 = vector.broadcast %441 : f32 to vector<16x256xf32>
    %443 = arith.mulf %8, %442 : vector<16x256xf32>
    %444 = arith.addf %440, %443 : vector<16x256xf32>
    %c63 = arith.constant 63 : index
    %445 = memref.load %arg1[%c63] : memref<128xf32, #tpu.memory_space<smem>>
    %446 = vector.broadcast %445 : f32 to vector<16x256xf32>
    %447 = arith.mulf %11, %446 : vector<16x256xf32>
    %448 = arith.addf %444, %447 : vector<16x256xf32>
    %c15_73 = arith.constant 15 : index
    %449 = memref.load %arg2[%c15_73] : memref<32xf32, #tpu.memory_space<smem>>
    %450 = vector.broadcast %449 : f32 to vector<16x256xf32>
    %451 = arith.addf %448, %450 : vector<16x256xf32>
    %cst_74 = arith.constant 0.000000e+00 : f32
    %452 = vector.broadcast %cst_74 : f32 to vector<16x256xf32>
    %453 = arith.maximumf %451, %452 : vector<16x256xf32>
    %c15_75 = arith.constant 15 : index
    %454 = memref.load %arg3[%c15_75] : memref<64xf32, #tpu.memory_space<smem>>
    %455 = vector.broadcast %454 : f32 to vector<16x256xf32>
    %456 = arith.mulf %453, %455 : vector<16x256xf32>
    %457 = arith.addf %429, %456 : vector<16x256xf32>
    %c47_76 = arith.constant 47 : index
    %458 = memref.load %arg3[%c47_76] : memref<64xf32, #tpu.memory_space<smem>>
    %459 = vector.broadcast %458 : f32 to vector<16x256xf32>
    %460 = arith.mulf %453, %459 : vector<16x256xf32>
    %461 = arith.addf %433, %460 : vector<16x256xf32>
    %c64 = arith.constant 64 : index
    %462 = memref.load %arg1[%c64] : memref<128xf32, #tpu.memory_space<smem>>
    %463 = vector.broadcast %462 : f32 to vector<16x256xf32>
    %464 = arith.mulf %2, %463 : vector<16x256xf32>
    %c65 = arith.constant 65 : index
    %465 = memref.load %arg1[%c65] : memref<128xf32, #tpu.memory_space<smem>>
    %466 = vector.broadcast %465 : f32 to vector<16x256xf32>
    %467 = arith.mulf %5, %466 : vector<16x256xf32>
    %468 = arith.addf %464, %467 : vector<16x256xf32>
    %c66 = arith.constant 66 : index
    %469 = memref.load %arg1[%c66] : memref<128xf32, #tpu.memory_space<smem>>
    %470 = vector.broadcast %469 : f32 to vector<16x256xf32>
    %471 = arith.mulf %8, %470 : vector<16x256xf32>
    %472 = arith.addf %468, %471 : vector<16x256xf32>
    %c67 = arith.constant 67 : index
    %473 = memref.load %arg1[%c67] : memref<128xf32, #tpu.memory_space<smem>>
    %474 = vector.broadcast %473 : f32 to vector<16x256xf32>
    %475 = arith.mulf %11, %474 : vector<16x256xf32>
    %476 = arith.addf %472, %475 : vector<16x256xf32>
    %c16_77 = arith.constant 16 : index
    %477 = memref.load %arg2[%c16_77] : memref<32xf32, #tpu.memory_space<smem>>
    %478 = vector.broadcast %477 : f32 to vector<16x256xf32>
    %479 = arith.addf %476, %478 : vector<16x256xf32>
    %cst_78 = arith.constant 0.000000e+00 : f32
    %480 = vector.broadcast %cst_78 : f32 to vector<16x256xf32>
    %481 = arith.maximumf %479, %480 : vector<16x256xf32>
    %c16_79 = arith.constant 16 : index
    %482 = memref.load %arg3[%c16_79] : memref<64xf32, #tpu.memory_space<smem>>
    %483 = vector.broadcast %482 : f32 to vector<16x256xf32>
    %484 = arith.mulf %481, %483 : vector<16x256xf32>
    %485 = arith.addf %457, %484 : vector<16x256xf32>
    %c48_80 = arith.constant 48 : index
    %486 = memref.load %arg3[%c48_80] : memref<64xf32, #tpu.memory_space<smem>>
    %487 = vector.broadcast %486 : f32 to vector<16x256xf32>
    %488 = arith.mulf %481, %487 : vector<16x256xf32>
    %489 = arith.addf %461, %488 : vector<16x256xf32>
    %c68 = arith.constant 68 : index
    %490 = memref.load %arg1[%c68] : memref<128xf32, #tpu.memory_space<smem>>
    %491 = vector.broadcast %490 : f32 to vector<16x256xf32>
    %492 = arith.mulf %2, %491 : vector<16x256xf32>
    %c69 = arith.constant 69 : index
    %493 = memref.load %arg1[%c69] : memref<128xf32, #tpu.memory_space<smem>>
    %494 = vector.broadcast %493 : f32 to vector<16x256xf32>
    %495 = arith.mulf %5, %494 : vector<16x256xf32>
    %496 = arith.addf %492, %495 : vector<16x256xf32>
    %c70 = arith.constant 70 : index
    %497 = memref.load %arg1[%c70] : memref<128xf32, #tpu.memory_space<smem>>
    %498 = vector.broadcast %497 : f32 to vector<16x256xf32>
    %499 = arith.mulf %8, %498 : vector<16x256xf32>
    %500 = arith.addf %496, %499 : vector<16x256xf32>
    %c71 = arith.constant 71 : index
    %501 = memref.load %arg1[%c71] : memref<128xf32, #tpu.memory_space<smem>>
    %502 = vector.broadcast %501 : f32 to vector<16x256xf32>
    %503 = arith.mulf %11, %502 : vector<16x256xf32>
    %504 = arith.addf %500, %503 : vector<16x256xf32>
    %c17_81 = arith.constant 17 : index
    %505 = memref.load %arg2[%c17_81] : memref<32xf32, #tpu.memory_space<smem>>
    %506 = vector.broadcast %505 : f32 to vector<16x256xf32>
    %507 = arith.addf %504, %506 : vector<16x256xf32>
    %cst_82 = arith.constant 0.000000e+00 : f32
    %508 = vector.broadcast %cst_82 : f32 to vector<16x256xf32>
    %509 = arith.maximumf %507, %508 : vector<16x256xf32>
    %c17_83 = arith.constant 17 : index
    %510 = memref.load %arg3[%c17_83] : memref<64xf32, #tpu.memory_space<smem>>
    %511 = vector.broadcast %510 : f32 to vector<16x256xf32>
    %512 = arith.mulf %509, %511 : vector<16x256xf32>
    %513 = arith.addf %485, %512 : vector<16x256xf32>
    %c49_84 = arith.constant 49 : index
    %514 = memref.load %arg3[%c49_84] : memref<64xf32, #tpu.memory_space<smem>>
    %515 = vector.broadcast %514 : f32 to vector<16x256xf32>
    %516 = arith.mulf %509, %515 : vector<16x256xf32>
    %517 = arith.addf %489, %516 : vector<16x256xf32>
    %c72 = arith.constant 72 : index
    %518 = memref.load %arg1[%c72] : memref<128xf32, #tpu.memory_space<smem>>
    %519 = vector.broadcast %518 : f32 to vector<16x256xf32>
    %520 = arith.mulf %2, %519 : vector<16x256xf32>
    %c73 = arith.constant 73 : index
    %521 = memref.load %arg1[%c73] : memref<128xf32, #tpu.memory_space<smem>>
    %522 = vector.broadcast %521 : f32 to vector<16x256xf32>
    %523 = arith.mulf %5, %522 : vector<16x256xf32>
    %524 = arith.addf %520, %523 : vector<16x256xf32>
    %c74 = arith.constant 74 : index
    %525 = memref.load %arg1[%c74] : memref<128xf32, #tpu.memory_space<smem>>
    %526 = vector.broadcast %525 : f32 to vector<16x256xf32>
    %527 = arith.mulf %8, %526 : vector<16x256xf32>
    %528 = arith.addf %524, %527 : vector<16x256xf32>
    %c75 = arith.constant 75 : index
    %529 = memref.load %arg1[%c75] : memref<128xf32, #tpu.memory_space<smem>>
    %530 = vector.broadcast %529 : f32 to vector<16x256xf32>
    %531 = arith.mulf %11, %530 : vector<16x256xf32>
    %532 = arith.addf %528, %531 : vector<16x256xf32>
    %c18_85 = arith.constant 18 : index
    %533 = memref.load %arg2[%c18_85] : memref<32xf32, #tpu.memory_space<smem>>
    %534 = vector.broadcast %533 : f32 to vector<16x256xf32>
    %535 = arith.addf %532, %534 : vector<16x256xf32>
    %cst_86 = arith.constant 0.000000e+00 : f32
    %536 = vector.broadcast %cst_86 : f32 to vector<16x256xf32>
    %537 = arith.maximumf %535, %536 : vector<16x256xf32>
    %c18_87 = arith.constant 18 : index
    %538 = memref.load %arg3[%c18_87] : memref<64xf32, #tpu.memory_space<smem>>
    %539 = vector.broadcast %538 : f32 to vector<16x256xf32>
    %540 = arith.mulf %537, %539 : vector<16x256xf32>
    %541 = arith.addf %513, %540 : vector<16x256xf32>
    %c50_88 = arith.constant 50 : index
    %542 = memref.load %arg3[%c50_88] : memref<64xf32, #tpu.memory_space<smem>>
    %543 = vector.broadcast %542 : f32 to vector<16x256xf32>
    %544 = arith.mulf %537, %543 : vector<16x256xf32>
    %545 = arith.addf %517, %544 : vector<16x256xf32>
    %c76 = arith.constant 76 : index
    %546 = memref.load %arg1[%c76] : memref<128xf32, #tpu.memory_space<smem>>
    %547 = vector.broadcast %546 : f32 to vector<16x256xf32>
    %548 = arith.mulf %2, %547 : vector<16x256xf32>
    %c77 = arith.constant 77 : index
    %549 = memref.load %arg1[%c77] : memref<128xf32, #tpu.memory_space<smem>>
    %550 = vector.broadcast %549 : f32 to vector<16x256xf32>
    %551 = arith.mulf %5, %550 : vector<16x256xf32>
    %552 = arith.addf %548, %551 : vector<16x256xf32>
    %c78 = arith.constant 78 : index
    %553 = memref.load %arg1[%c78] : memref<128xf32, #tpu.memory_space<smem>>
    %554 = vector.broadcast %553 : f32 to vector<16x256xf32>
    %555 = arith.mulf %8, %554 : vector<16x256xf32>
    %556 = arith.addf %552, %555 : vector<16x256xf32>
    %c79 = arith.constant 79 : index
    %557 = memref.load %arg1[%c79] : memref<128xf32, #tpu.memory_space<smem>>
    %558 = vector.broadcast %557 : f32 to vector<16x256xf32>
    %559 = arith.mulf %11, %558 : vector<16x256xf32>
    %560 = arith.addf %556, %559 : vector<16x256xf32>
    %c19_89 = arith.constant 19 : index
    %561 = memref.load %arg2[%c19_89] : memref<32xf32, #tpu.memory_space<smem>>
    %562 = vector.broadcast %561 : f32 to vector<16x256xf32>
    %563 = arith.addf %560, %562 : vector<16x256xf32>
    %cst_90 = arith.constant 0.000000e+00 : f32
    %564 = vector.broadcast %cst_90 : f32 to vector<16x256xf32>
    %565 = arith.maximumf %563, %564 : vector<16x256xf32>
    %c19_91 = arith.constant 19 : index
    %566 = memref.load %arg3[%c19_91] : memref<64xf32, #tpu.memory_space<smem>>
    %567 = vector.broadcast %566 : f32 to vector<16x256xf32>
    %568 = arith.mulf %565, %567 : vector<16x256xf32>
    %569 = arith.addf %541, %568 : vector<16x256xf32>
    %c51_92 = arith.constant 51 : index
    %570 = memref.load %arg3[%c51_92] : memref<64xf32, #tpu.memory_space<smem>>
    %571 = vector.broadcast %570 : f32 to vector<16x256xf32>
    %572 = arith.mulf %565, %571 : vector<16x256xf32>
    %573 = arith.addf %545, %572 : vector<16x256xf32>
    %c80 = arith.constant 80 : index
    %574 = memref.load %arg1[%c80] : memref<128xf32, #tpu.memory_space<smem>>
    %575 = vector.broadcast %574 : f32 to vector<16x256xf32>
    %576 = arith.mulf %2, %575 : vector<16x256xf32>
    %c81 = arith.constant 81 : index
    %577 = memref.load %arg1[%c81] : memref<128xf32, #tpu.memory_space<smem>>
    %578 = vector.broadcast %577 : f32 to vector<16x256xf32>
    %579 = arith.mulf %5, %578 : vector<16x256xf32>
    %580 = arith.addf %576, %579 : vector<16x256xf32>
    %c82 = arith.constant 82 : index
    %581 = memref.load %arg1[%c82] : memref<128xf32, #tpu.memory_space<smem>>
    %582 = vector.broadcast %581 : f32 to vector<16x256xf32>
    %583 = arith.mulf %8, %582 : vector<16x256xf32>
    %584 = arith.addf %580, %583 : vector<16x256xf32>
    %c83 = arith.constant 83 : index
    %585 = memref.load %arg1[%c83] : memref<128xf32, #tpu.memory_space<smem>>
    %586 = vector.broadcast %585 : f32 to vector<16x256xf32>
    %587 = arith.mulf %11, %586 : vector<16x256xf32>
    %588 = arith.addf %584, %587 : vector<16x256xf32>
    %c20_93 = arith.constant 20 : index
    %589 = memref.load %arg2[%c20_93] : memref<32xf32, #tpu.memory_space<smem>>
    %590 = vector.broadcast %589 : f32 to vector<16x256xf32>
    %591 = arith.addf %588, %590 : vector<16x256xf32>
    %cst_94 = arith.constant 0.000000e+00 : f32
    %592 = vector.broadcast %cst_94 : f32 to vector<16x256xf32>
    %593 = arith.maximumf %591, %592 : vector<16x256xf32>
    %c20_95 = arith.constant 20 : index
    %594 = memref.load %arg3[%c20_95] : memref<64xf32, #tpu.memory_space<smem>>
    %595 = vector.broadcast %594 : f32 to vector<16x256xf32>
    %596 = arith.mulf %593, %595 : vector<16x256xf32>
    %597 = arith.addf %569, %596 : vector<16x256xf32>
    %c52_96 = arith.constant 52 : index
    %598 = memref.load %arg3[%c52_96] : memref<64xf32, #tpu.memory_space<smem>>
    %599 = vector.broadcast %598 : f32 to vector<16x256xf32>
    %600 = arith.mulf %593, %599 : vector<16x256xf32>
    %601 = arith.addf %573, %600 : vector<16x256xf32>
    %c84 = arith.constant 84 : index
    %602 = memref.load %arg1[%c84] : memref<128xf32, #tpu.memory_space<smem>>
    %603 = vector.broadcast %602 : f32 to vector<16x256xf32>
    %604 = arith.mulf %2, %603 : vector<16x256xf32>
    %c85 = arith.constant 85 : index
    %605 = memref.load %arg1[%c85] : memref<128xf32, #tpu.memory_space<smem>>
    %606 = vector.broadcast %605 : f32 to vector<16x256xf32>
    %607 = arith.mulf %5, %606 : vector<16x256xf32>
    %608 = arith.addf %604, %607 : vector<16x256xf32>
    %c86 = arith.constant 86 : index
    %609 = memref.load %arg1[%c86] : memref<128xf32, #tpu.memory_space<smem>>
    %610 = vector.broadcast %609 : f32 to vector<16x256xf32>
    %611 = arith.mulf %8, %610 : vector<16x256xf32>
    %612 = arith.addf %608, %611 : vector<16x256xf32>
    %c87 = arith.constant 87 : index
    %613 = memref.load %arg1[%c87] : memref<128xf32, #tpu.memory_space<smem>>
    %614 = vector.broadcast %613 : f32 to vector<16x256xf32>
    %615 = arith.mulf %11, %614 : vector<16x256xf32>
    %616 = arith.addf %612, %615 : vector<16x256xf32>
    %c21_97 = arith.constant 21 : index
    %617 = memref.load %arg2[%c21_97] : memref<32xf32, #tpu.memory_space<smem>>
    %618 = vector.broadcast %617 : f32 to vector<16x256xf32>
    %619 = arith.addf %616, %618 : vector<16x256xf32>
    %cst_98 = arith.constant 0.000000e+00 : f32
    %620 = vector.broadcast %cst_98 : f32 to vector<16x256xf32>
    %621 = arith.maximumf %619, %620 : vector<16x256xf32>
    %c21_99 = arith.constant 21 : index
    %622 = memref.load %arg3[%c21_99] : memref<64xf32, #tpu.memory_space<smem>>
    %623 = vector.broadcast %622 : f32 to vector<16x256xf32>
    %624 = arith.mulf %621, %623 : vector<16x256xf32>
    %625 = arith.addf %597, %624 : vector<16x256xf32>
    %c53_100 = arith.constant 53 : index
    %626 = memref.load %arg3[%c53_100] : memref<64xf32, #tpu.memory_space<smem>>
    %627 = vector.broadcast %626 : f32 to vector<16x256xf32>
    %628 = arith.mulf %621, %627 : vector<16x256xf32>
    %629 = arith.addf %601, %628 : vector<16x256xf32>
    %c88 = arith.constant 88 : index
    %630 = memref.load %arg1[%c88] : memref<128xf32, #tpu.memory_space<smem>>
    %631 = vector.broadcast %630 : f32 to vector<16x256xf32>
    %632 = arith.mulf %2, %631 : vector<16x256xf32>
    %c89 = arith.constant 89 : index
    %633 = memref.load %arg1[%c89] : memref<128xf32, #tpu.memory_space<smem>>
    %634 = vector.broadcast %633 : f32 to vector<16x256xf32>
    %635 = arith.mulf %5, %634 : vector<16x256xf32>
    %636 = arith.addf %632, %635 : vector<16x256xf32>
    %c90 = arith.constant 90 : index
    %637 = memref.load %arg1[%c90] : memref<128xf32, #tpu.memory_space<smem>>
    %638 = vector.broadcast %637 : f32 to vector<16x256xf32>
    %639 = arith.mulf %8, %638 : vector<16x256xf32>
    %640 = arith.addf %636, %639 : vector<16x256xf32>
    %c91 = arith.constant 91 : index
    %641 = memref.load %arg1[%c91] : memref<128xf32, #tpu.memory_space<smem>>
    %642 = vector.broadcast %641 : f32 to vector<16x256xf32>
    %643 = arith.mulf %11, %642 : vector<16x256xf32>
    %644 = arith.addf %640, %643 : vector<16x256xf32>
    %c22_101 = arith.constant 22 : index
    %645 = memref.load %arg2[%c22_101] : memref<32xf32, #tpu.memory_space<smem>>
    %646 = vector.broadcast %645 : f32 to vector<16x256xf32>
    %647 = arith.addf %644, %646 : vector<16x256xf32>
    %cst_102 = arith.constant 0.000000e+00 : f32
    %648 = vector.broadcast %cst_102 : f32 to vector<16x256xf32>
    %649 = arith.maximumf %647, %648 : vector<16x256xf32>
    %c22_103 = arith.constant 22 : index
    %650 = memref.load %arg3[%c22_103] : memref<64xf32, #tpu.memory_space<smem>>
    %651 = vector.broadcast %650 : f32 to vector<16x256xf32>
    %652 = arith.mulf %649, %651 : vector<16x256xf32>
    %653 = arith.addf %625, %652 : vector<16x256xf32>
    %c54_104 = arith.constant 54 : index
    %654 = memref.load %arg3[%c54_104] : memref<64xf32, #tpu.memory_space<smem>>
    %655 = vector.broadcast %654 : f32 to vector<16x256xf32>
    %656 = arith.mulf %649, %655 : vector<16x256xf32>
    %657 = arith.addf %629, %656 : vector<16x256xf32>
    %c92 = arith.constant 92 : index
    %658 = memref.load %arg1[%c92] : memref<128xf32, #tpu.memory_space<smem>>
    %659 = vector.broadcast %658 : f32 to vector<16x256xf32>
    %660 = arith.mulf %2, %659 : vector<16x256xf32>
    %c93 = arith.constant 93 : index
    %661 = memref.load %arg1[%c93] : memref<128xf32, #tpu.memory_space<smem>>
    %662 = vector.broadcast %661 : f32 to vector<16x256xf32>
    %663 = arith.mulf %5, %662 : vector<16x256xf32>
    %664 = arith.addf %660, %663 : vector<16x256xf32>
    %c94 = arith.constant 94 : index
    %665 = memref.load %arg1[%c94] : memref<128xf32, #tpu.memory_space<smem>>
    %666 = vector.broadcast %665 : f32 to vector<16x256xf32>
    %667 = arith.mulf %8, %666 : vector<16x256xf32>
    %668 = arith.addf %664, %667 : vector<16x256xf32>
    %c95 = arith.constant 95 : index
    %669 = memref.load %arg1[%c95] : memref<128xf32, #tpu.memory_space<smem>>
    %670 = vector.broadcast %669 : f32 to vector<16x256xf32>
    %671 = arith.mulf %11, %670 : vector<16x256xf32>
    %672 = arith.addf %668, %671 : vector<16x256xf32>
    %c23_105 = arith.constant 23 : index
    %673 = memref.load %arg2[%c23_105] : memref<32xf32, #tpu.memory_space<smem>>
    %674 = vector.broadcast %673 : f32 to vector<16x256xf32>
    %675 = arith.addf %672, %674 : vector<16x256xf32>
    %cst_106 = arith.constant 0.000000e+00 : f32
    %676 = vector.broadcast %cst_106 : f32 to vector<16x256xf32>
    %677 = arith.maximumf %675, %676 : vector<16x256xf32>
    %c23_107 = arith.constant 23 : index
    %678 = memref.load %arg3[%c23_107] : memref<64xf32, #tpu.memory_space<smem>>
    %679 = vector.broadcast %678 : f32 to vector<16x256xf32>
    %680 = arith.mulf %677, %679 : vector<16x256xf32>
    %681 = arith.addf %653, %680 : vector<16x256xf32>
    %c55_108 = arith.constant 55 : index
    %682 = memref.load %arg3[%c55_108] : memref<64xf32, #tpu.memory_space<smem>>
    %683 = vector.broadcast %682 : f32 to vector<16x256xf32>
    %684 = arith.mulf %677, %683 : vector<16x256xf32>
    %685 = arith.addf %657, %684 : vector<16x256xf32>
    %c96 = arith.constant 96 : index
    %686 = memref.load %arg1[%c96] : memref<128xf32, #tpu.memory_space<smem>>
    %687 = vector.broadcast %686 : f32 to vector<16x256xf32>
    %688 = arith.mulf %2, %687 : vector<16x256xf32>
    %c97 = arith.constant 97 : index
    %689 = memref.load %arg1[%c97] : memref<128xf32, #tpu.memory_space<smem>>
    %690 = vector.broadcast %689 : f32 to vector<16x256xf32>
    %691 = arith.mulf %5, %690 : vector<16x256xf32>
    %692 = arith.addf %688, %691 : vector<16x256xf32>
    %c98 = arith.constant 98 : index
    %693 = memref.load %arg1[%c98] : memref<128xf32, #tpu.memory_space<smem>>
    %694 = vector.broadcast %693 : f32 to vector<16x256xf32>
    %695 = arith.mulf %8, %694 : vector<16x256xf32>
    %696 = arith.addf %692, %695 : vector<16x256xf32>
    %c99 = arith.constant 99 : index
    %697 = memref.load %arg1[%c99] : memref<128xf32, #tpu.memory_space<smem>>
    %698 = vector.broadcast %697 : f32 to vector<16x256xf32>
    %699 = arith.mulf %11, %698 : vector<16x256xf32>
    %700 = arith.addf %696, %699 : vector<16x256xf32>
    %c24_109 = arith.constant 24 : index
    %701 = memref.load %arg2[%c24_109] : memref<32xf32, #tpu.memory_space<smem>>
    %702 = vector.broadcast %701 : f32 to vector<16x256xf32>
    %703 = arith.addf %700, %702 : vector<16x256xf32>
    %cst_110 = arith.constant 0.000000e+00 : f32
    %704 = vector.broadcast %cst_110 : f32 to vector<16x256xf32>
    %705 = arith.maximumf %703, %704 : vector<16x256xf32>
    %c24_111 = arith.constant 24 : index
    %706 = memref.load %arg3[%c24_111] : memref<64xf32, #tpu.memory_space<smem>>
    %707 = vector.broadcast %706 : f32 to vector<16x256xf32>
    %708 = arith.mulf %705, %707 : vector<16x256xf32>
    %709 = arith.addf %681, %708 : vector<16x256xf32>
    %c56_112 = arith.constant 56 : index
    %710 = memref.load %arg3[%c56_112] : memref<64xf32, #tpu.memory_space<smem>>
    %711 = vector.broadcast %710 : f32 to vector<16x256xf32>
    %712 = arith.mulf %705, %711 : vector<16x256xf32>
    %713 = arith.addf %685, %712 : vector<16x256xf32>
    %c100 = arith.constant 100 : index
    %714 = memref.load %arg1[%c100] : memref<128xf32, #tpu.memory_space<smem>>
    %715 = vector.broadcast %714 : f32 to vector<16x256xf32>
    %716 = arith.mulf %2, %715 : vector<16x256xf32>
    %c101 = arith.constant 101 : index
    %717 = memref.load %arg1[%c101] : memref<128xf32, #tpu.memory_space<smem>>
    %718 = vector.broadcast %717 : f32 to vector<16x256xf32>
    %719 = arith.mulf %5, %718 : vector<16x256xf32>
    %720 = arith.addf %716, %719 : vector<16x256xf32>
    %c102 = arith.constant 102 : index
    %721 = memref.load %arg1[%c102] : memref<128xf32, #tpu.memory_space<smem>>
    %722 = vector.broadcast %721 : f32 to vector<16x256xf32>
    %723 = arith.mulf %8, %722 : vector<16x256xf32>
    %724 = arith.addf %720, %723 : vector<16x256xf32>
    %c103 = arith.constant 103 : index
    %725 = memref.load %arg1[%c103] : memref<128xf32, #tpu.memory_space<smem>>
    %726 = vector.broadcast %725 : f32 to vector<16x256xf32>
    %727 = arith.mulf %11, %726 : vector<16x256xf32>
    %728 = arith.addf %724, %727 : vector<16x256xf32>
    %c25_113 = arith.constant 25 : index
    %729 = memref.load %arg2[%c25_113] : memref<32xf32, #tpu.memory_space<smem>>
    %730 = vector.broadcast %729 : f32 to vector<16x256xf32>
    %731 = arith.addf %728, %730 : vector<16x256xf32>
    %cst_114 = arith.constant 0.000000e+00 : f32
    %732 = vector.broadcast %cst_114 : f32 to vector<16x256xf32>
    %733 = arith.maximumf %731, %732 : vector<16x256xf32>
    %c25_115 = arith.constant 25 : index
    %734 = memref.load %arg3[%c25_115] : memref<64xf32, #tpu.memory_space<smem>>
    %735 = vector.broadcast %734 : f32 to vector<16x256xf32>
    %736 = arith.mulf %733, %735 : vector<16x256xf32>
    %737 = arith.addf %709, %736 : vector<16x256xf32>
    %c57_116 = arith.constant 57 : index
    %738 = memref.load %arg3[%c57_116] : memref<64xf32, #tpu.memory_space<smem>>
    %739 = vector.broadcast %738 : f32 to vector<16x256xf32>
    %740 = arith.mulf %733, %739 : vector<16x256xf32>
    %741 = arith.addf %713, %740 : vector<16x256xf32>
    %c104 = arith.constant 104 : index
    %742 = memref.load %arg1[%c104] : memref<128xf32, #tpu.memory_space<smem>>
    %743 = vector.broadcast %742 : f32 to vector<16x256xf32>
    %744 = arith.mulf %2, %743 : vector<16x256xf32>
    %c105 = arith.constant 105 : index
    %745 = memref.load %arg1[%c105] : memref<128xf32, #tpu.memory_space<smem>>
    %746 = vector.broadcast %745 : f32 to vector<16x256xf32>
    %747 = arith.mulf %5, %746 : vector<16x256xf32>
    %748 = arith.addf %744, %747 : vector<16x256xf32>
    %c106 = arith.constant 106 : index
    %749 = memref.load %arg1[%c106] : memref<128xf32, #tpu.memory_space<smem>>
    %750 = vector.broadcast %749 : f32 to vector<16x256xf32>
    %751 = arith.mulf %8, %750 : vector<16x256xf32>
    %752 = arith.addf %748, %751 : vector<16x256xf32>
    %c107 = arith.constant 107 : index
    %753 = memref.load %arg1[%c107] : memref<128xf32, #tpu.memory_space<smem>>
    %754 = vector.broadcast %753 : f32 to vector<16x256xf32>
    %755 = arith.mulf %11, %754 : vector<16x256xf32>
    %756 = arith.addf %752, %755 : vector<16x256xf32>
    %c26_117 = arith.constant 26 : index
    %757 = memref.load %arg2[%c26_117] : memref<32xf32, #tpu.memory_space<smem>>
    %758 = vector.broadcast %757 : f32 to vector<16x256xf32>
    %759 = arith.addf %756, %758 : vector<16x256xf32>
    %cst_118 = arith.constant 0.000000e+00 : f32
    %760 = vector.broadcast %cst_118 : f32 to vector<16x256xf32>
    %761 = arith.maximumf %759, %760 : vector<16x256xf32>
    %c26_119 = arith.constant 26 : index
    %762 = memref.load %arg3[%c26_119] : memref<64xf32, #tpu.memory_space<smem>>
    %763 = vector.broadcast %762 : f32 to vector<16x256xf32>
    %764 = arith.mulf %761, %763 : vector<16x256xf32>
    %765 = arith.addf %737, %764 : vector<16x256xf32>
    %c58_120 = arith.constant 58 : index
    %766 = memref.load %arg3[%c58_120] : memref<64xf32, #tpu.memory_space<smem>>
    %767 = vector.broadcast %766 : f32 to vector<16x256xf32>
    %768 = arith.mulf %761, %767 : vector<16x256xf32>
    %769 = arith.addf %741, %768 : vector<16x256xf32>
    %c108 = arith.constant 108 : index
    %770 = memref.load %arg1[%c108] : memref<128xf32, #tpu.memory_space<smem>>
    %771 = vector.broadcast %770 : f32 to vector<16x256xf32>
    %772 = arith.mulf %2, %771 : vector<16x256xf32>
    %c109 = arith.constant 109 : index
    %773 = memref.load %arg1[%c109] : memref<128xf32, #tpu.memory_space<smem>>
    %774 = vector.broadcast %773 : f32 to vector<16x256xf32>
    %775 = arith.mulf %5, %774 : vector<16x256xf32>
    %776 = arith.addf %772, %775 : vector<16x256xf32>
    %c110 = arith.constant 110 : index
    %777 = memref.load %arg1[%c110] : memref<128xf32, #tpu.memory_space<smem>>
    %778 = vector.broadcast %777 : f32 to vector<16x256xf32>
    %779 = arith.mulf %8, %778 : vector<16x256xf32>
    %780 = arith.addf %776, %779 : vector<16x256xf32>
    %c111 = arith.constant 111 : index
    %781 = memref.load %arg1[%c111] : memref<128xf32, #tpu.memory_space<smem>>
    %782 = vector.broadcast %781 : f32 to vector<16x256xf32>
    %783 = arith.mulf %11, %782 : vector<16x256xf32>
    %784 = arith.addf %780, %783 : vector<16x256xf32>
    %c27_121 = arith.constant 27 : index
    %785 = memref.load %arg2[%c27_121] : memref<32xf32, #tpu.memory_space<smem>>
    %786 = vector.broadcast %785 : f32 to vector<16x256xf32>
    %787 = arith.addf %784, %786 : vector<16x256xf32>
    %cst_122 = arith.constant 0.000000e+00 : f32
    %788 = vector.broadcast %cst_122 : f32 to vector<16x256xf32>
    %789 = arith.maximumf %787, %788 : vector<16x256xf32>
    %c27_123 = arith.constant 27 : index
    %790 = memref.load %arg3[%c27_123] : memref<64xf32, #tpu.memory_space<smem>>
    %791 = vector.broadcast %790 : f32 to vector<16x256xf32>
    %792 = arith.mulf %789, %791 : vector<16x256xf32>
    %793 = arith.addf %765, %792 : vector<16x256xf32>
    %c59_124 = arith.constant 59 : index
    %794 = memref.load %arg3[%c59_124] : memref<64xf32, #tpu.memory_space<smem>>
    %795 = vector.broadcast %794 : f32 to vector<16x256xf32>
    %796 = arith.mulf %789, %795 : vector<16x256xf32>
    %797 = arith.addf %769, %796 : vector<16x256xf32>
    %c112 = arith.constant 112 : index
    %798 = memref.load %arg1[%c112] : memref<128xf32, #tpu.memory_space<smem>>
    %799 = vector.broadcast %798 : f32 to vector<16x256xf32>
    %800 = arith.mulf %2, %799 : vector<16x256xf32>
    %c113 = arith.constant 113 : index
    %801 = memref.load %arg1[%c113] : memref<128xf32, #tpu.memory_space<smem>>
    %802 = vector.broadcast %801 : f32 to vector<16x256xf32>
    %803 = arith.mulf %5, %802 : vector<16x256xf32>
    %804 = arith.addf %800, %803 : vector<16x256xf32>
    %c114 = arith.constant 114 : index
    %805 = memref.load %arg1[%c114] : memref<128xf32, #tpu.memory_space<smem>>
    %806 = vector.broadcast %805 : f32 to vector<16x256xf32>
    %807 = arith.mulf %8, %806 : vector<16x256xf32>
    %808 = arith.addf %804, %807 : vector<16x256xf32>
    %c115 = arith.constant 115 : index
    %809 = memref.load %arg1[%c115] : memref<128xf32, #tpu.memory_space<smem>>
    %810 = vector.broadcast %809 : f32 to vector<16x256xf32>
    %811 = arith.mulf %11, %810 : vector<16x256xf32>
    %812 = arith.addf %808, %811 : vector<16x256xf32>
    %c28_125 = arith.constant 28 : index
    %813 = memref.load %arg2[%c28_125] : memref<32xf32, #tpu.memory_space<smem>>
    %814 = vector.broadcast %813 : f32 to vector<16x256xf32>
    %815 = arith.addf %812, %814 : vector<16x256xf32>
    %cst_126 = arith.constant 0.000000e+00 : f32
    %816 = vector.broadcast %cst_126 : f32 to vector<16x256xf32>
    %817 = arith.maximumf %815, %816 : vector<16x256xf32>
    %c28_127 = arith.constant 28 : index
    %818 = memref.load %arg3[%c28_127] : memref<64xf32, #tpu.memory_space<smem>>
    %819 = vector.broadcast %818 : f32 to vector<16x256xf32>
    %820 = arith.mulf %817, %819 : vector<16x256xf32>
    %821 = arith.addf %793, %820 : vector<16x256xf32>
    %c60_128 = arith.constant 60 : index
    %822 = memref.load %arg3[%c60_128] : memref<64xf32, #tpu.memory_space<smem>>
    %823 = vector.broadcast %822 : f32 to vector<16x256xf32>
    %824 = arith.mulf %817, %823 : vector<16x256xf32>
    %825 = arith.addf %797, %824 : vector<16x256xf32>
    %c116 = arith.constant 116 : index
    %826 = memref.load %arg1[%c116] : memref<128xf32, #tpu.memory_space<smem>>
    %827 = vector.broadcast %826 : f32 to vector<16x256xf32>
    %828 = arith.mulf %2, %827 : vector<16x256xf32>
    %c117 = arith.constant 117 : index
    %829 = memref.load %arg1[%c117] : memref<128xf32, #tpu.memory_space<smem>>
    %830 = vector.broadcast %829 : f32 to vector<16x256xf32>
    %831 = arith.mulf %5, %830 : vector<16x256xf32>
    %832 = arith.addf %828, %831 : vector<16x256xf32>
    %c118 = arith.constant 118 : index
    %833 = memref.load %arg1[%c118] : memref<128xf32, #tpu.memory_space<smem>>
    %834 = vector.broadcast %833 : f32 to vector<16x256xf32>
    %835 = arith.mulf %8, %834 : vector<16x256xf32>
    %836 = arith.addf %832, %835 : vector<16x256xf32>
    %c119 = arith.constant 119 : index
    %837 = memref.load %arg1[%c119] : memref<128xf32, #tpu.memory_space<smem>>
    %838 = vector.broadcast %837 : f32 to vector<16x256xf32>
    %839 = arith.mulf %11, %838 : vector<16x256xf32>
    %840 = arith.addf %836, %839 : vector<16x256xf32>
    %c29_129 = arith.constant 29 : index
    %841 = memref.load %arg2[%c29_129] : memref<32xf32, #tpu.memory_space<smem>>
    %842 = vector.broadcast %841 : f32 to vector<16x256xf32>
    %843 = arith.addf %840, %842 : vector<16x256xf32>
    %cst_130 = arith.constant 0.000000e+00 : f32
    %844 = vector.broadcast %cst_130 : f32 to vector<16x256xf32>
    %845 = arith.maximumf %843, %844 : vector<16x256xf32>
    %c29_131 = arith.constant 29 : index
    %846 = memref.load %arg3[%c29_131] : memref<64xf32, #tpu.memory_space<smem>>
    %847 = vector.broadcast %846 : f32 to vector<16x256xf32>
    %848 = arith.mulf %845, %847 : vector<16x256xf32>
    %849 = arith.addf %821, %848 : vector<16x256xf32>
    %c61_132 = arith.constant 61 : index
    %850 = memref.load %arg3[%c61_132] : memref<64xf32, #tpu.memory_space<smem>>
    %851 = vector.broadcast %850 : f32 to vector<16x256xf32>
    %852 = arith.mulf %845, %851 : vector<16x256xf32>
    %853 = arith.addf %825, %852 : vector<16x256xf32>
    %c120 = arith.constant 120 : index
    %854 = memref.load %arg1[%c120] : memref<128xf32, #tpu.memory_space<smem>>
    %855 = vector.broadcast %854 : f32 to vector<16x256xf32>
    %856 = arith.mulf %2, %855 : vector<16x256xf32>
    %c121 = arith.constant 121 : index
    %857 = memref.load %arg1[%c121] : memref<128xf32, #tpu.memory_space<smem>>
    %858 = vector.broadcast %857 : f32 to vector<16x256xf32>
    %859 = arith.mulf %5, %858 : vector<16x256xf32>
    %860 = arith.addf %856, %859 : vector<16x256xf32>
    %c122 = arith.constant 122 : index
    %861 = memref.load %arg1[%c122] : memref<128xf32, #tpu.memory_space<smem>>
    %862 = vector.broadcast %861 : f32 to vector<16x256xf32>
    %863 = arith.mulf %8, %862 : vector<16x256xf32>
    %864 = arith.addf %860, %863 : vector<16x256xf32>
    %c123 = arith.constant 123 : index
    %865 = memref.load %arg1[%c123] : memref<128xf32, #tpu.memory_space<smem>>
    %866 = vector.broadcast %865 : f32 to vector<16x256xf32>
    %867 = arith.mulf %11, %866 : vector<16x256xf32>
    %868 = arith.addf %864, %867 : vector<16x256xf32>
    %c30_133 = arith.constant 30 : index
    %869 = memref.load %arg2[%c30_133] : memref<32xf32, #tpu.memory_space<smem>>
    %870 = vector.broadcast %869 : f32 to vector<16x256xf32>
    %871 = arith.addf %868, %870 : vector<16x256xf32>
    %cst_134 = arith.constant 0.000000e+00 : f32
    %872 = vector.broadcast %cst_134 : f32 to vector<16x256xf32>
    %873 = arith.maximumf %871, %872 : vector<16x256xf32>
    %c30_135 = arith.constant 30 : index
    %874 = memref.load %arg3[%c30_135] : memref<64xf32, #tpu.memory_space<smem>>
    %875 = vector.broadcast %874 : f32 to vector<16x256xf32>
    %876 = arith.mulf %873, %875 : vector<16x256xf32>
    %877 = arith.addf %849, %876 : vector<16x256xf32>
    %c62_136 = arith.constant 62 : index
    %878 = memref.load %arg3[%c62_136] : memref<64xf32, #tpu.memory_space<smem>>
    %879 = vector.broadcast %878 : f32 to vector<16x256xf32>
    %880 = arith.mulf %873, %879 : vector<16x256xf32>
    %881 = arith.addf %853, %880 : vector<16x256xf32>
    %c124 = arith.constant 124 : index
    %882 = memref.load %arg1[%c124] : memref<128xf32, #tpu.memory_space<smem>>
    %883 = vector.broadcast %882 : f32 to vector<16x256xf32>
    %884 = arith.mulf %2, %883 : vector<16x256xf32>
    %c125 = arith.constant 125 : index
    %885 = memref.load %arg1[%c125] : memref<128xf32, #tpu.memory_space<smem>>
    %886 = vector.broadcast %885 : f32 to vector<16x256xf32>
    %887 = arith.mulf %5, %886 : vector<16x256xf32>
    %888 = arith.addf %884, %887 : vector<16x256xf32>
    %c126 = arith.constant 126 : index
    %889 = memref.load %arg1[%c126] : memref<128xf32, #tpu.memory_space<smem>>
    %890 = vector.broadcast %889 : f32 to vector<16x256xf32>
    %891 = arith.mulf %8, %890 : vector<16x256xf32>
    %892 = arith.addf %888, %891 : vector<16x256xf32>
    %c127 = arith.constant 127 : index
    %893 = memref.load %arg1[%c127] : memref<128xf32, #tpu.memory_space<smem>>
    %894 = vector.broadcast %893 : f32 to vector<16x256xf32>
    %895 = arith.mulf %11, %894 : vector<16x256xf32>
    %896 = arith.addf %892, %895 : vector<16x256xf32>
    %c31_137 = arith.constant 31 : index
    %897 = memref.load %arg2[%c31_137] : memref<32xf32, #tpu.memory_space<smem>>
    %898 = vector.broadcast %897 : f32 to vector<16x256xf32>
    %899 = arith.addf %896, %898 : vector<16x256xf32>
    %cst_138 = arith.constant 0.000000e+00 : f32
    %900 = vector.broadcast %cst_138 : f32 to vector<16x256xf32>
    %901 = arith.maximumf %899, %900 : vector<16x256xf32>
    %c31_139 = arith.constant 31 : index
    %902 = memref.load %arg3[%c31_139] : memref<64xf32, #tpu.memory_space<smem>>
    %903 = vector.broadcast %902 : f32 to vector<16x256xf32>
    %904 = arith.mulf %901, %903 : vector<16x256xf32>
    %905 = arith.addf %877, %904 : vector<16x256xf32>
    %c63_140 = arith.constant 63 : index
    %906 = memref.load %arg3[%c63_140] : memref<64xf32, #tpu.memory_space<smem>>
    %907 = vector.broadcast %906 : f32 to vector<16x256xf32>
    %908 = arith.mulf %901, %907 : vector<16x256xf32>
    %909 = arith.addf %881, %908 : vector<16x256xf32>
    %c0_141 = arith.constant 0 : index
    %910 = memref.load %arg4[%c0_141] : memref<2xf32, #tpu.memory_space<smem>>
    %911 = vector.broadcast %910 : f32 to vector<16x256xf32>
    %912 = arith.addf %905, %911 : vector<16x256xf32>
    %cst_142 = arith.constant dense<0xFF800000> : vector<16xf32>
    %913 = vector.multi_reduction <maximumf>, %912, %cst_142 [1] : vector<16x256xf32> to vector<16xf32>
    %914 = vector.shape_cast %913 : vector<16xf32> to vector<16x1xf32>
    %915 = vector.broadcast %914 : vector<16x1xf32> to vector<16x256xf32>
    %916 = arith.subf %912, %915 : vector<16x256xf32>
    %917 = math.exp %916 : vector<16x256xf32>
    %cst_143 = arith.constant dense<0.000000e+00> : vector<16xf32>
    %918 = vector.multi_reduction <add>, %917, %cst_143 [1] : vector<16x256xf32> to vector<16xf32>
    %919 = vector.shape_cast %918 : vector<16xf32> to vector<16x1xf32>
    %920 = tpu.reciprocal %919 {approx = true} : vector<16x1xf32> -> vector<16x1xf32>
    %921 = arith.mulf %919, %920 : vector<16x1xf32>
    %cst_144 = arith.constant 2.000000e+00 : f32
    %922 = vector.broadcast %cst_144 : f32 to vector<16x1xf32>
    %923 = arith.subf %922, %921 : vector<16x1xf32>
    %924 = arith.mulf %920, %923 : vector<16x1xf32>
    %c0_145 = arith.constant 0 : index
    %c0_146 = arith.constant 0 : index
    %925 = vector.load %arg7[%c0_145, %c0_146] : memref<2x256xf32, #tpu.memory_space<vmem>>, vector<1x256xf32>
    %926 = vector.broadcast %925 : vector<1x256xf32> to vector<16x256xf32>
    %927 = arith.mulf %917, %926 : vector<16x256xf32>
    %cst_147 = arith.constant dense<0.000000e+00> : vector<16xf32>
    %928 = vector.multi_reduction <add>, %927, %cst_147 [1] : vector<16x256xf32> to vector<16xf32>
    %929 = vector.shape_cast %928 : vector<16xf32> to vector<16x1xf32>
    %930 = arith.mulf %929, %924 : vector<16x1xf32>
    %c1_148 = arith.constant 1 : index
    %c0_149 = arith.constant 0 : index
    %931 = vector.load %arg7[%c1_148, %c0_149] : memref<2x256xf32, #tpu.memory_space<vmem>>, vector<1x256xf32>
    %932 = vector.broadcast %931 : vector<1x256xf32> to vector<16x256xf32>
    %933 = arith.mulf %917, %932 : vector<16x256xf32>
    %cst_150 = arith.constant dense<0.000000e+00> : vector<16xf32>
    %934 = vector.multi_reduction <add>, %933, %cst_150 [1] : vector<16x256xf32> to vector<16xf32>
    %935 = vector.shape_cast %934 : vector<16xf32> to vector<16x1xf32>
    %936 = arith.mulf %935, %924 : vector<16x1xf32>
    %cst_151 = arith.constant dense<0.000000e+00> : vector<16xf32>
    %937 = vector.multi_reduction <add>, %909, %cst_151 [1] : vector<16x256xf32> to vector<16xf32>
    %938 = vector.shape_cast %937 : vector<16xf32> to vector<16x1xf32>
    %cst_152 = arith.constant 3.906250e-03 : f32
    %939 = vector.broadcast %cst_152 : f32 to vector<16x1xf32>
    %940 = arith.mulf %938, %939 : vector<16x1xf32>
    %c1_153 = arith.constant 1 : index
    %941 = memref.load %arg4[%c1_153] : memref<2xf32, #tpu.memory_space<smem>>
    %942 = vector.broadcast %941 : f32 to vector<16x1xf32>
    %943 = arith.addf %940, %942 : vector<16x1xf32>
    %c0_154 = arith.constant 0 : index
    %c0_155 = arith.constant 0 : index
    %944 = vector.load %arg6[%c0_154, %c0_155] : memref<16x1xf32, #tpu.memory_space<vmem>>, vector<16x1xf32>
    %945 = arith.mulf %943, %944 : vector<16x1xf32>
    %946 = tpu.iota {dimensions = array<i32: 1>} : vector<16x128xi32>
    %c0_i32 = arith.constant 0 : i32
    %947 = vector.broadcast %c0_i32 : i32 to vector<16x128xi32>
    %948 = arith.cmpi eq, %946, %947 : vector<16x128xi32>
    %c1_i32 = arith.constant 1 : i32
    %949 = vector.broadcast %c1_i32 : i32 to vector<16x128xi32>
    %950 = arith.cmpi eq, %946, %949 : vector<16x128xi32>
    %c2_i32 = arith.constant 2 : i32
    %951 = vector.broadcast %c2_i32 : i32 to vector<16x128xi32>
    %952 = arith.cmpi eq, %946, %951 : vector<16x128xi32>
    %cst_156 = arith.constant 0.000000e+00 : f32
    %953 = vector.shape_cast %945 : vector<16x1xf32> to vector<16x1xf32>
    %954 = vector.broadcast %953 : vector<16x1xf32> to vector<16x128xf32>
    %955 = vector.broadcast %cst_156 : f32 to vector<16x128xf32>
    %956 = arith.select %952, %954, %955 : vector<16x128xi1>, vector<16x128xf32>
    %957 = vector.shape_cast %936 : vector<16x1xf32> to vector<16x1xf32>
    %958 = vector.broadcast %957 : vector<16x1xf32> to vector<16x128xf32>
    %959 = arith.select %950, %958, %956 : vector<16x128xi1>, vector<16x128xf32>
    %960 = vector.shape_cast %930 : vector<16x1xf32> to vector<16x1xf32>
    %961 = vector.broadcast %960 : vector<16x1xf32> to vector<16x128xf32>
    %962 = arith.select %948, %961, %959 : vector<16x128xi1>, vector<16x128xf32>
    %c0_157 = arith.constant 0 : index
    %c0_158 = arith.constant 0 : index
    %963 = vector.load %arg8[%c0_157, %c0_158] : memref<16x128xf32, #tpu.memory_space<vmem>>, vector<16x128xf32>
    tpu.vector_store %arg8[%c0_157, %c0_158], %962 {strides = array<i32>} : memref<16x128xf32, #tpu.memory_space<vmem>>, vector<16x128xf32>,
    return
  }
  func.func @transform_0(%arg0: i32) -> i32 {
    %c0_i32 = arith.constant 0 : i32
    %c0_i32_0 = arith.constant 0 : i32
    return %c0_i32 : i32
  }
  func.func @transform_1(%arg0: i32) -> i32 {
    %c0_i32 = arith.constant 0 : i32
    %c0_i32_0 = arith.constant 0 : i32
    return %c0_i32 : i32
  }
  func.func @transform_2(%arg0: i32) -> i32 {
    %c0_i32 = arith.constant 0 : i32
    %c0_i32_0 = arith.constant 0 : i32
    return %c0_i32 : i32
  }
  func.func @transform_3(%arg0: i32) -> i32 {
    %c0_i32 = arith.constant 0 : i32
    %c0_i32_0 = arith.constant 0 : i32
    return %c0_i32 : i32
  }
  func.func @transform_4(%arg0: i32) -> (i32, i32, i32) {
    %c0_i32 = arith.constant 0 : i32
    %c0_i32_0 = arith.constant 0 : i32
    %c0_i32_1 = arith.constant 0 : i32
    return %c0_i32, %arg0, %c0_i32_0 : i32, i32, i32
  }
  func.func @transform_5(%arg0: i32) -> (i32, i32) {
    %c0_i32 = arith.constant 0 : i32
    %c0_i32_0 = arith.constant 0 : i32
    return %arg0, %c0_i32 : i32, i32
  }
  func.func @transform_6(%arg0: i32) -> (i32, i32) {
    %c0_i32 = arith.constant 0 : i32
    %c0_i32_0 = arith.constant 0 : i32
    %c0_i32_1 = arith.constant 0 : i32
    return %c0_i32, %c0_i32_0 : i32, i32
  }
  func.func @transform_7(%arg0: i32) -> (i32, i32) {
    %c0_i32 = arith.constant 0 : i32
    %c0_i32_0 = arith.constant 0 : i32
    return %arg0, %c0_i32 : i32, i32
  }
}

</mosaic_0001>

<bundles_post_ra>
// kernel: tpu_custom_call.1
= control target key start
LH: loop header
LB: loop body
LE: loop exit
PB: predicated region body
PF: predicated region fallthrough
CT: control target
= control target key end

     0   :  { %12 = vsyncpa [#allocation5], 0  ;;  %s6246_s0 = inlined_call_operand.vmem [shape: f32[128], index: 0, kind: input, shape index: {}]   ;;  %s6247_s1 = inlined_call_operand.vmem [shape: f32[32], index: 1, kind: input, shape index: {}]   ;;  %s6248_s2 = inlined_call_operand.vmem [shape: f32[64], index: 2, kind: input, shape index: {}]   ;;  %s6249_s3 = inlined_call_operand.vmem [shape: f32[2], index: 3, kind: input, shape index: {}]   ;;  %s6250_s4 = inlined_call_operand.hbm [shape: bf16[4,16,256], index: 4, kind: input, shape index: {}]   ;;  %s6251_s5 = inlined_call_operand.vmem [shape: f32[16,1], index: 5, kind: input, shape index: {}]   ;;  %s6252_s6 = inlined_call_operand.vmem [shape: f32[2,256], index: 6, kind: input, shape index: {}]   ;;  %s6253_s7 = inlined_call_operand.hbm [shape: f32[16,128], index: 7, kind: output, shape index: {}]  }
   0x1   :  { %13 = vsyncpa [#allocation7], 0 }
   0x2   :  { %14 = vsyncpa [#allocation10], 0 }
   0x3   :  { %15 = vsyncpa [#allocation3], 0  ;;  %s33_s26 = sshll.u32 %s6247_s1, 4  ;;  %s34_s26 = int_to_ptr.vmem [resolvable:$true] %s33_s26 }
   0x4   :  { %16 = vsyncpa [#allocation4], 0  ;;  %s23_s29 = sshll.u32 %s6246_s0, 4  ;;  %s2620_s30 = scalar_lea.vmem %s34_s26, 16  ;;  %s24_s29 = int_to_ptr.vmem [resolvable:$true] %s23_s29 }
   0x5   :  { %p2621_p0 = scmp.ne.s32.totalorder %s34_s26, %s2620_s30  ;;  %p2625_p1 = scmp.lt.s32.totalorder %s34_s26, %s34_s26 }
   0x6   :  { %p2626_p2 = scmp.lt.s32.totalorder %s2620_s30, %s2620_s30 }
   0x8   :  { %p2627_p3 = por %p2626_p2, %p2625_p1 }
   0xa   :  { %p2628_p4 = pnand %p2627_p3, %p2621_p0 }
   0xc   :  { %2631 = shalt.err (!%p2628_p4)
}
   0xd   :  { %s2718_s8 = smov [#allocation6]   ;;  %s2632_s9 = scalar_lea.vmem %s24_s29, 16 }
   0xe   :  { %36 = dma.vmem_to_smem %s34_s26, 16, %s2718_s8, [#allocation7]  }
   0xf   :  { %p2633_p5 = scmp.ne.s32.totalorder %s24_s29, %s2632_s9  ;;  %p2637_p6 = scmp.lt.s32.totalorder %s24_s29, %s24_s29 }
  0x10   :  { %p2638_p7 = scmp.lt.s32.totalorder %s2632_s9, %s2632_s9 }
  0x12   :  { %p2639_p8 = por %p2638_p7, %p2637_p6 }
  0x14   :  { %p2640_p9 = pnand %p2639_p8, %p2633_p5 }
  0x16   :  { %2643 = shalt.err (!%p2640_p9)
}
  0x17   :  { %s2719_s1 = smov [#allocation2]   ;;  %s43_s11 = sshll.u32 %s6248_s2, 4  ;;  %s44_s11 = int_to_ptr.vmem [resolvable:$true] %s43_s11 }
  0x18   :  { %26 = dma.vmem_to_smem %s24_s29, 16, %s2719_s1, [#allocation5]  }
  0x19   :  { %s53_s14 = sshll.u32 %s6249_s3, 4  ;;  %s2644_s15 = scalar_lea.vmem %s44_s11, 16  ;;  %s54_s14 = int_to_ptr.vmem [resolvable:$true] %s53_s14 }
  0x1a   :  { %p2645_p10 = scmp.ne.s32.totalorder %s44_s11, %s2644_s15  ;;  %p2649_p11 = scmp.lt.s32.totalorder %s44_s11, %s44_s11 }
  0x1b   :  { %p2650_p12 = scmp.lt.s32.totalorder %s2644_s15, %s2644_s15 }
  0x1d   :  { %p2651_p13 = por %p2650_p12, %p2649_p11 }
  0x1f   :  { %p2652_p0 = pnand %p2651_p13, %p2645_p10 }
  0x21   :  { %2655 = shalt.err (!%p2652_p0)
}
  0x22   :  { %s2720_s16 = smov [#allocation8]   ;;  %s2656_s17 = scalar_lea.vmem %s54_s14, 16 }
  0x23   :  { %46 = dma.vmem_to_smem %s44_s11, 16, %s2720_s16, [#allocation7]  }
  0x24   :  { %p2657_p1 = scmp.ne.s32.totalorder %s54_s14, %s2656_s17  ;;  %p2661_p2 = scmp.lt.s32.totalorder %s54_s14, %s54_s14 }
  0x25   :  { %p2662_p3 = scmp.lt.s32.totalorder %s2656_s17, %s2656_s17 }
  0x27   :  { %p2663_p4 = por %p2662_p3, %p2661_p2 }
  0x29   :  { %p2664_p5 = pnand %p2663_p4, %p2657_p1 }
  0x2b   :  { %2667 = shalt.err (!%p2664_p5)
}
  0x2c   :  { %s2721_s2 = smov [#allocation9]   ;;  %s2722_s3 = smov [#allocation11]  }
  0x2d   :  { %56 = dma.vmem_to_smem %s54_s14, 16, %s2721_s2, [#allocation10]  }
  0x2e   :  { %s62_s18 = sshll.u32 %s2722_s3, 4  ;;  %s63_s18 = int_to_ptr.vmem [resolvable:$true] %s62_s18 }
  0x2f   :  { %s2676_s19 = scalar_lea.vmem %s63_s18, 1024  ;;  %p2681_p7 = scmp.lt.s32.totalorder %s63_s18, %s63_s18 }
  0x30   :  { %p2677_p6 = scmp.ne.s32.totalorder %s63_s18, %s2676_s19  ;;  %p2682_p8 = scmp.lt.s32.totalorder %s2676_s19, %s2676_s19 }
  0x32   :  { %p2683_p9 = por %p2682_p8, %p2681_p7 }
  0x34   :  { %p2684_p10 = pnand %p2683_p9, %p2677_p6 }
  0x36   :  { %2687 = shalt.err (!%p2684_p10)
}
  0x37   :  { %s2723_s20 = smov 128   ;;  %s2724_s21 = smov 8  }
  0x38   :  { %68 = dma.hbm_to_vmem [thread:$0]  %s6250_s4, 1024, %s63_s18, [#allocation3], %s2723_s20, %s2723_s20, %s2724_s21  }
  0x39   :  { %2708 = dma.done.wait [#allocation5], 16  }
  0x3a   :  { %2709 = vsyncadd [#allocation5], 4294967280 }
  0x3b   :  { %2710 = dma.done.wait [#allocation7], 32  }
  0x3c   :  { %2711 = vsyncadd [#allocation7], 4294967264 }
  0x3d   :  { %2712 = dma.done.wait [#allocation10], 16  }
  0x3e   :  { %2713 = vsyncadd [#allocation10], 4294967280 }
  0x3f   :  { %2714 = dma.done.wait [#allocation3], 1024  }
  0x40   :  { %2715 = vsyncadd [#allocation3], 4294966272 }
  0x41   :  { %88 = sfence }
  0x42   :  { %v89_v0 = vld [vmem:[#allocation11] sm:$0xff]  ;;  %s116_s24 = sld [smem:[#allocation2]]  ;;  %v96_v1 = vld [vmem:[#allocation11 + $0x10] sm:$0xff] }
  0x43   :  { %s2374_s25 = sld [smem:[#allocation2 + $0x1]]  ;;  %v103_v2 = vld [vmem:[#allocation11 + $0x20] sm:$0xff]  ;;  %v2785_v3 = vunpack.c.l.bf16 %v89_v0  ;;  %v2787_v4 = vunpack.c.h.bf16 %v89_v0  ;;  %v110_v5 = vld [vmem:[#allocation11 + $0x30] sm:$0xff]  ;;  %v2789_v6 = vunpack.c.l.bf16 %v96_v1  ;;  %v2791_v7 = vunpack.c.h.bf16 %v96_v1 }
  0x44   :  { %s2375_s26 = sld [smem:[#allocation2 + $0x2]]  ;;  %v2793_v8 = vunpack.c.l.bf16 %v103_v2  ;;  %v2795_v9 = vunpack.c.h.bf16 %v103_v2  ;;  %v2799_v10 = vunpack.c.l.bf16 %v110_v5  ;;  %v2801_v11 = vunpack.c.h.bf16 %v110_v5 }
  0x45   :  { %s2376_s4 = sld [smem:[#allocation2 + $0x3]] }
  0x46   :  { %s152_s27 = sld [smem:[#allocation6]] }
  0x47   :  { %s2797_s28 = sld [smem:[#allocation8]] }
  0x48   :  { %v2803_v12 = vstv %s116_s24  ;;  %s2378_s29 = sld [smem:[#allocation2 + $0x4]] }
  0x49   :  { %v118_v13 = vmul.f32 %v2803_v12, %v2785_v3  ;;  %v119_v14 = vmul.f32 %v2803_v12, %v2787_v4  ;;  %v2809_v15 = vstv %s2374_s25  ;;  %s2379_s30 = sld [smem:[#allocation2 + $0x5]] }
  0x4a   :  { %v124_v16 = vmul.f32 %v2809_v15, %v2789_v6  ;;  %v125_v17 = vmul.f32 %v2809_v15, %v2791_v7  ;;  %v2815_v18 = vstv %s2375_s26  ;;  %s2380_s8 = sld [smem:[#allocation2 + $0x6]] }
  0x4b   :  { %v134_v19 = vmul.f32 %v2815_v18, %v2793_v8  ;;  %v135_v20 = vmul.f32 %v2815_v18, %v2795_v9  ;;  %v2821_v21 = vstv %s2376_s4  ;;  %s2381_s9 = sld [smem:[#allocation2 + $0x7]] }
  0x4c   :  { %v128_v22 = vadd.f32 %v124_v16, %v118_v13  ;;  %v129_v23 = vadd.f32 %v125_v17, %v119_v14  ;;  %v144_v24 = vmul.f32 %v2821_v21, %v2799_v10  ;;  %v145_v25 = vmul.f32 %v2821_v21, %v2801_v11  ;;  %s2827_s1 = sld [smem:[#allocation6 + $0x1]] }
  0x4d   :  { %s2829_s0 = sld [smem:[#allocation8 + $0x1]]  ;;  %v2835_v29 = vstv %s152_s27  ;;  %v2850_v37 = vstv %s2797_s28 }
  0x4e   :  { %v138_v26 = vadd.f32 %v134_v19, %v128_v22  ;;  %v139_v27 = vadd.f32 %v135_v20, %v129_v23  ;;  %v2831_v28 = vstv %s2378_s29  ;;  %s2833_s10 = sld [smem:[#allocation2 + $0x8]] }
  0x4f   :  { %v184_v30 = vmul.f32 %v2831_v28, %v2785_v3  ;;  %v185_v31 = vmul.f32 %v2831_v28, %v2787_v4  ;;  %v2841_v32 = vstv %s2379_s30  ;;  %s2386_s11 = sld [smem:[#allocation2 + $0x9]] }
  0x50   :  { %v148_v33 = vadd.f32 %v144_v24, %v138_v26  ;;  %v149_v34 = vadd.f32 %v145_v25, %v139_v27  ;;  %v190_v35 = vmul.f32 %v2841_v32, %v2789_v6  ;;  %v191_v36 = vmul.f32 %v2841_v32, %v2791_v7  ;;  %s2847_s12 = sld [smem:[#allocation2 + $0xa]] }
  0x51   :  { %v2852_v38 = vstv %s2380_s8  ;;  %v2854_v39 = vstv %s2381_s9  ;;  %s2856_s13 = sld [smem:[#allocation2 + $0xb]] }
  0x52   :  { %v2859_v40 = vadd.f32 %v2835_v29, %v148_v33  ;;  %v2862_v41 = vadd.f32 %v2835_v29, %v149_v34  ;;  %v194_v42 = vadd.f32 %v190_v35, %v184_v30  ;;  %v195_v43 = vadd.f32 %v191_v36, %v185_v31  ;;  %s2389_s14 = sld [smem:[#allocation6 + $0x2]] }
  0x53   :  { %v200_v44 = vmul.f32 %v2852_v38, %v2793_v8  ;;  %v201_v45 = vmul.f32 %v2852_v38, %v2795_v9  ;;  %v210_v46 = vmul.f32 %v2854_v39, %v2799_v10  ;;  %v211_v47 = vmul.f32 %v2854_v39, %v2801_v11  ;;  %s2872_s15 = sld [smem:[#allocation8 + $0x2]] }
  0x54   :  { %6823 = vst [vmem:[#allocation18_spill] sm:$0xff] %v2859_v40  ;;  %6824 = vst [vmem:[#allocation19_spill] sm:$0xff] %v2862_v41  ;;  %v6259_v48 = vmax.f32 %v2859_v40, 0.0  ;;  %v6258_v49 = vmax.f32 %v2862_v41, 0.0  ;;  %v2877_v50 = vstv %s2827_s1  ;;  %s2879_s16 = sld [smem:[#allocation2 + $0xc]]  ;;  %v2882_v53 = vstv %s2833_s10 }
  0x55   :  { %v204_v51 = vadd.f32 %v200_v44, %v194_v42  ;;  %v205_v52 = vadd.f32 %v201_v45, %v195_v43  ;;  %v2884_v54 = vstv %s2386_s11  ;;  %s2886_s17 = sld [smem:[#allocation2 + $0xd]]  ;;  %v2892_v56 = vstv %s2829_s0 }
  0x56   :  { %v164_v55 = vmul.f32 %v2850_v37, %v6259_v48  ;;  %v250_v57 = vmul.f32 %v2882_v53, %v2785_v3  ;;  %v251_v58 = vmul.f32 %v2882_v53, %v2787_v4  ;;  %s2898_s2 = sld [smem:[#allocation2 + $0xe]]  ;;  %v256_v61 = vmul.f32 %v2884_v54, %v2789_v6 }
  0x57   :  { %v214_v59 = vadd.f32 %v210_v46, %v204_v51  ;;  %v215_v60 = vadd.f32 %v211_v47, %v205_v52  ;;  %v257_v62 = vmul.f32 %v2884_v54, %v2791_v7  ;;  %s2904_s3 = sld [smem:[#allocation2 + $0xf]]  ;;  %v165_v63 = vmul.f32 %v2850_v37, %v6258_v49 }
  0x58   :  { %v2910_v0 = vstv %s2847_s12  ;;  %v2913_v1 = vstv %s2856_s13  ;;  %v2915_v2 = vstv %s2389_s14  ;;  %s2917_s18 = sld [smem:[#allocation6 + $0x3]]  ;;  %v260_v14 = vadd.f32 %v256_v61, %v250_v57 }
  0x59   :  { %v2920_v5 = vadd.f32 %v2877_v50, %v214_v59  ;;  %v2923_v13 = vadd.f32 %v2877_v50, %v215_v60  ;;  %v261_v16 = vadd.f32 %v257_v62, %v251_v58  ;;  %s2925_s19 = sld [smem:[#allocation8 + $0x3]]  ;;  %v266_v17 = vmul.f32 %v2910_v0, %v2793_v8 }
  0x5a   :  { %v267_v19 = vmul.f32 %v2910_v0, %v2795_v9  ;;  %v276_v20 = vmul.f32 %v2913_v1, %v2799_v10  ;;  %v277_v22 = vmul.f32 %v2913_v1, %v2801_v11  ;;  %s2935_s22 = sld [smem:[#allocation2 + $0x10]]  ;;  %v2940_v25 = vstv %s2872_s15 }
  0x5b   :  { %6825 = vst [vmem:[#allocation20_spill] sm:$0xff] %v2920_v5  ;;  %6826 = vst [vmem:[#allocation21_spill] sm:$0xff] %v2923_v13  ;;  %v6257_v23 = vmax.f32 %v2920_v5, 0.0  ;;  %v6256_v24 = vmax.f32 %v2923_v13, 0.0  ;;  %v2943_v26 = vstv %s2879_s16  ;;  %s2945_s23 = sld [smem:[#allocation2 + $0x11]]  ;;  %v270_v27 = vadd.f32 %v266_v17, %v260_v14 }
  0x5c   :  { %v271_v30 = vadd.f32 %v267_v19, %v261_v16  ;;  %v316_v31 = vmul.f32 %v2943_v26, %v2785_v3  ;;  %v317_v33 = vmul.f32 %v2943_v26, %v2787_v4  ;;  %s2951_s24 = sld [smem:[#allocation2 + $0x12]]  ;;  %v2960_v36 = vstv %s2886_s17 }
  0x5d   :  { %v230_v34 = vmul.f32 %v2892_v56, %v6257_v23  ;;  %v231_v35 = vmul.f32 %v2892_v56, %v6256_v24  ;;  %v2963_v42 = vstv %s2898_s2  ;;  %s2965_s25 = sld [smem:[#allocation2 + $0x13]]  ;;  %v280_v43 = vadd.f32 %v276_v20, %v270_v27 }
  0x5e   :  { %v281_v44 = vadd.f32 %v277_v22, %v271_v30  ;;  %v322_v45 = vmul.f32 %v2960_v36, %v2789_v6  ;;  %v323_v46 = vmul.f32 %v2960_v36, %v2791_v7  ;;  %s2971_s26 = sld [smem:[#allocation6 + $0x4]]  ;;  %v332_v52 = vmul.f32 %v2963_v42, %v2793_v8 }
  0x5f   :  { %v234_v47 = vadd.f32 %v230_v34, %v164_v55  ;;  %v235_v51 = vadd.f32 %v231_v35, %v165_v63  ;;  %v333_v57 = vmul.f32 %v2963_v42, %v2795_v9  ;;  %s2977_s4 = sld [smem:[#allocation8 + $0x4]]  ;;  %v2980_v58 = vadd.f32 %v2915_v2, %v280_v43 }
  0x60   :  { %v2983_v59 = vadd.f32 %v2915_v2, %v281_v44  ;;  %v326_v60 = vadd.f32 %v322_v45, %v316_v31  ;;  %v327_v61 = vadd.f32 %v323_v46, %v317_v33  ;;  %s2985_s27 = sld [smem:[#allocation2 + $0x14]]  ;;  %v2988_v55 = vstv %s2904_s3 }
  0x61   :  { %6827 = vst [vmem:[#allocation22_spill] sm:$0xff] %v2980_v58  ;;  %v2991_v62 = vstv %s2917_s18  ;;  %v2994_v63 = vstv %s2925_s19  ;;  %v2997_v14 = vstv %s2935_s22  ;;  %v6255_v16 = vmax.f32 %v2980_v58, 0.0  ;;  %s3001_s28 = sld [smem:[#allocation2 + $0x15]] }
  0x62   :  { %6828 = vst [vmem:[#allocation23_spill] sm:$0xff] %v2983_v59  ;;  %v6254_v17 = vmax.f32 %v2983_v59, 0.0  ;;  %v336_v19 = vadd.f32 %v332_v52, %v326_v60  ;;  %v337_v20 = vadd.f32 %v333_v57, %v327_v61  ;;  %v342_v22 = vmul.f32 %v2988_v55, %v2799_v10  ;;  %s3011_s29 = sld [smem:[#allocation2 + $0x16]] }
  0x63   :  { %v343_v27 = vmul.f32 %v2988_v55, %v2801_v11  ;;  %v382_v30 = vmul.f32 %v2997_v14, %v2785_v3  ;;  %v383_v31 = vmul.f32 %v2997_v14, %v2787_v4  ;;  %v296_v33 = vmul.f32 %v2940_v25, %v6255_v16  ;;  %s3025_s30 = sld [smem:[#allocation2 + $0x17]] }
  0x64   :  { %v297_v34 = vmul.f32 %v2940_v25, %v6254_v17  ;;  %v3020_v35 = vstv %s2945_s23  ;;  %v3023_v43 = vstv %s2951_s24  ;;  %v346_v44 = vadd.f32 %v342_v22, %v336_v19  ;;  %s3031_s8 = sld [smem:[#allocation6 + $0x5]] }
  0x65   :  { %v347_v45 = vadd.f32 %v343_v27, %v337_v20  ;;  %v388_v46 = vmul.f32 %v3020_v35, %v2789_v6  ;;  %v389_v52 = vmul.f32 %v3020_v35, %v2791_v7  ;;  %v300_v57 = vadd.f32 %v296_v33, %v234_v47  ;;  %s3037_s9 = sld [smem:[#allocation8 + $0x5]] }
  0x66   :  { %v301_v60 = vadd.f32 %v297_v34, %v235_v51  ;;  %v398_v61 = vmul.f32 %v3023_v43, %v2793_v8  ;;  %v399_v19 = vmul.f32 %v3023_v43, %v2795_v9  ;;  %v3040_v20 = vadd.f32 %v2991_v62, %v346_v44  ;;  %s3045_s1 = sld [smem:[#allocation2 + $0x18]] }
  0x67   :  { %v3043_v22 = vadd.f32 %v2991_v62, %v347_v45  ;;  %v392_v27 = vadd.f32 %v388_v46, %v382_v30  ;;  %v393_v17 = vadd.f32 %v389_v52, %v383_v31  ;;  %v3048_v47 = vstv %s2965_s25  ;;  %s3061_s0 = sld [smem:[#allocation2 + $0x19]] }
  0x68   :  { %6829 = vst [vmem:[#allocation24_spill] sm:$0xff] %v3040_v20  ;;  %v3051_v51 = vstv %s2971_s26  ;;  %v3054_v33 = vstv %s2977_s4  ;;  %v3057_v34 = vstv %s2985_s27  ;;  %v6260_v44 = vmax.f32 %v3040_v20, 0.0  ;;  %s3071_s10 = sld [smem:[#allocation2 + $0x1a]] }
  0x69   :  { %6830 = vst [vmem:[#allocation25_spill] sm:$0xff] %v3043_v22  ;;  %6831 = vst [vmem:[#allocation26_spill] sm:$0xff] %v3054_v33  ;;  %v6261_v16 = vmax.f32 %v3043_v22, 0.0  ;;  %v402_v45 = vadd.f32 %v398_v61, %v392_v27  ;;  %v403_v24 = vadd.f32 %v399_v19, %v393_v17  ;;  %v408_v30 = vmul.f32 %v3048_v47, %v2799_v10  ;;  %s3085_s11 = sld [smem:[#allocation2 + $0x1b]] }
  0x6a   :  { %v409_v31 = vmul.f32 %v3048_v47, %v2801_v11  ;;  %v448_v46 = vmul.f32 %v3057_v34, %v2785_v3  ;;  %v449_v52 = vmul.f32 %v3057_v34, %v2787_v4  ;;  %v362_v17 = vmul.f32 %v2994_v63, %v6260_v44  ;;  %s3091_s12 = sld [smem:[#allocation6 + $0x6]] }
  0x6b   :  { %v363_v61 = vmul.f32 %v2994_v63, %v6261_v16  ;;  %v3080_v19 = vstv %s3001_s28  ;;  %v3083_v27 = vstv %s3011_s29  ;;  %v412_v23 = vadd.f32 %v408_v30, %v402_v45  ;;  %s3097_s13 = sld [smem:[#allocation8 + $0x6]] }
  0x6c   :  { %v413_v49 = vadd.f32 %v409_v31, %v403_v24  ;;  %v454_v48 = vmul.f32 %v3080_v19, %v2789_v6  ;;  %v455_v44 = vmul.f32 %v3080_v19, %v2791_v7  ;;  %v366_v16 = vadd.f32 %v362_v17, %v300_v57  ;;  %s3105_s14 = sld [smem:[#allocation2 + $0x1c]] }
  0x6d   :  { %v367_v22 = vadd.f32 %v363_v61, %v301_v60  ;;  %v464_v20 = vmul.f32 %v3083_v27, %v2793_v8  ;;  %v465_v45 = vmul.f32 %v3083_v27, %v2795_v9  ;;  %v3100_v24 = vadd.f32 %v3051_v51, %v412_v23  ;;  %s3121_s15 = sld [smem:[#allocation2 + $0x1d]] }
  0x6e   :  { %v3103_v30 = vadd.f32 %v3051_v51, %v413_v49  ;;  %v458_v31 = vadd.f32 %v454_v48, %v448_v46  ;;  %v459_v59 = vadd.f32 %v455_v44, %v449_v52  ;;  %v3108_v57 = vstv %s3025_s30  ;;  %s3131_s16 = sld [smem:[#allocation2 + $0x1e]] }
  0x6f   :  { %6832 = vst [vmem:[#allocation27_spill] sm:$0xff] %v3100_v24  ;;  %v3111_v60 = vstv %s3031_s8  ;;  %v3114_v17 = vstv %s3037_s9  ;;  %v3117_v61 = vstv %s3045_s1  ;;  %v6270_v23 = vmax.f32 %v3100_v24, 0.0  ;;  %s3145_s17 = sld [smem:[#allocation2 + $0x1f]] }
  0x70   :  { %6833 = vst [vmem:[#allocation28_spill] sm:$0xff] %v3103_v30  ;;  %6834 = vst [vmem:[#allocation29_spill] sm:$0xff] %v3111_v60  ;;  %v6271_v58 = vmax.f32 %v3103_v30, 0.0  ;;  %v468_v49 = vadd.f32 %v464_v20, %v458_v31  ;;  %v469_v13 = vadd.f32 %v465_v45, %v459_v59  ;;  %v474_v48 = vmul.f32 %v3108_v57, %v2799_v10  ;;  %s3151_s2 = sld [smem:[#allocation6 + $0x7]] }
  0x71   :  { %6835 = vst [vmem:[#allocation30_spill] sm:$0xff] %v3114_v17  ;;  %v475_v44 = vmul.f32 %v3108_v57, %v2801_v11  ;;  %v514_v46 = vmul.f32 %v3117_v61, %v2785_v3  ;;  %v515_v52 = vmul.f32 %v3117_v61, %v2787_v4  ;;  %v428_v59 = vmul.f32 %v3054_v33, %v6270_v23  ;;  %s3157_s3 = sld [smem:[#allocation8 + $0x7]] }
  0x72   :  { %v429_v20 = vmul.f32 %v3054_v33, %v6271_v58  ;;  %v3140_v45 = vstv %s3061_s0  ;;  %v3143_v31 = vstv %s3071_s10  ;;  %v478_v5 = vadd.f32 %v474_v48, %v468_v49  ;;  %s3165_s18 = sld [smem:[#allocation2 + $0x20]] }
  0x73   :  { %6836 = vst [vmem:[#allocation31_spill] sm:$0xff] %v3140_v45  ;;  %6837 = vst [vmem:[#allocation32_spill] sm:$0xff] %v3143_v31  ;;  %v479_v41 = vadd.f32 %v475_v44, %v469_v13  ;;  %v520_v24 = vmul.f32 %v3140_v45, %v2789_v6  ;;  %v521_v23 = vmul.f32 %v3140_v45, %v2791_v7  ;;  %s3181_s19 = sld [smem:[#allocation2 + $0x21]] }
  0x74   :  { %v432_v58 = vadd.f32 %v428_v59, %v366_v16  ;;  %v433_v30 = vadd.f32 %v429_v20, %v367_v22  ;;  %v530_v40 = vmul.f32 %v3143_v31, %v2793_v8  ;;  %v531_v49 = vmul.f32 %v3143_v31, %v2795_v9  ;;  %s3191_s22 = sld [smem:[#allocation2 + $0x22]] }
  0x75   :  { %v3160_v13 = vadd.f32 %v3111_v60, %v478_v5  ;;  %v3163_v48 = vadd.f32 %v3111_v60, %v479_v41  ;;  %v524_v44 = vadd.f32 %v520_v24, %v514_v46  ;;  %v525_v33 = vadd.f32 %v521_v23, %v515_v52  ;;  %s3205_s23 = sld [smem:[#allocation2 + $0x23]] }
  0x76   :  { %v3168_v16 = vstv %s3085_s11  ;;  %v3171_v22 = vstv %s3091_s12  ;;  %v3174_v59 = vstv %s3097_s13  ;;  %v3177_v20 = vstv %s3105_s14  ;;  %s3211_s24 = sld [smem:[#allocation6 + $0x8]] }
  0x77   :  { %6838 = vst [vmem:[#allocation33_spill] sm:$0xff] %v3160_v13  ;;  %6839 = vst [vmem:[#allocation34_spill] sm:$0xff] %v3163_v48  ;;  %v6285_v5 = vmax.f32 %v3160_v13, 0.0  ;;  %v6286_v31 = vmax.f32 %v3163_v48, 0.0  ;;  %v534_v41 = vadd.f32 %v530_v40, %v524_v44  ;;  %v535_v60 = vadd.f32 %v531_v49, %v525_v33  ;;  %s3217_s25 = sld [smem:[#allocation8 + $0x8]] }
  0x78   :  { %6840 = vst [vmem:[#allocation35_spill] sm:$0xff] %v3168_v16  ;;  %6841 = vst [vmem:[#allocation36_spill] sm:$0xff] %v3171_v22  ;;  %v540_v24 = vmul.f32 %v3168_v16, %v2799_v10  ;;  %v541_v23 = vmul.f32 %v3168_v16, %v2801_v11  ;;  %v580_v46 = vmul.f32 %v3177_v20, %v2785_v3  ;;  %v3200_v49 = vstv %s3121_s15  ;;  %s3225_s26 = sld [smem:[#allocation2 + $0x24]] }
  0x79   :  { %6842 = vst [vmem:[#allocation37_spill] sm:$0xff] %v3174_v59  ;;  %6843 = vst [vmem:[#allocation38_spill] sm:$0xff] %v3177_v20  ;;  %v581_v52 = vmul.f32 %v3177_v20, %v2787_v4  ;;  %v494_v40 = vmul.f32 %v3114_v17, %v6285_v5  ;;  %v495_v33 = vmul.f32 %v3114_v17, %v6286_v31  ;;  %v3203_v44 = vstv %s3131_s16  ;;  %s3241_s4 = sld [smem:[#allocation2 + $0x25]] }
  0x7a   :  { %6844 = vst [vmem:[#allocation39_spill] sm:$0xff] %v3200_v49  ;;  %6845 = vst [vmem:[#allocation40_spill] sm:$0xff] %v3203_v44  ;;  %v544_v16 = vadd.f32 %v540_v24, %v534_v41  ;;  %v545_v20 = vadd.f32 %v541_v23, %v535_v60  ;;  %v586_v13 = vmul.f32 %v3200_v49, %v2789_v6  ;;  %s3251_s27 = sld [smem:[#allocation2 + $0x26]] }
  0x7b   :  { %v587_v5 = vmul.f32 %v3200_v49, %v2791_v7  ;;  %v498_v31 = vadd.f32 %v494_v40, %v432_v58  ;;  %v499_v48 = vadd.f32 %v495_v33, %v433_v30  ;;  %v596_v17 = vmul.f32 %v3203_v44, %v2793_v8  ;;  %s3265_s28 = sld [smem:[#allocation2 + $0x27]] }
  0x7c   :  { %v597_v41 = vmul.f32 %v3203_v44, %v2795_v9  ;;  %v3220_v60 = vadd.f32 %v3171_v22, %v544_v16  ;;  %v3223_v24 = vadd.f32 %v3171_v22, %v545_v20  ;;  %v590_v23 = vadd.f32 %v586_v13, %v580_v46  ;;  %s3271_s29 = sld [smem:[#allocation6 + $0x9]] }
  0x7d   :  { %v591_v49 = vadd.f32 %v587_v5, %v581_v52  ;;  %v3228_v58 = vstv %s3145_s17  ;;  %v3231_v30 = vstv %s3151_s2  ;;  %v3234_v40 = vstv %s3157_s3  ;;  %s3277_s30 = sld [smem:[#allocation8 + $0x9]] }
  0x7e   :  { %6846 = vst [vmem:[#allocation41_spill] sm:$0xff] %v3220_v60  ;;  %6847 = vst [vmem:[#allocation42_spill] sm:$0xff] %v3223_v24  ;;  %v3237_v33 = vstv %s3165_s18  ;;  %v6301_v16 = vmax.f32 %v3220_v60, 0.0  ;;  %v6302_v44 = vmax.f32 %v3223_v24, 0.0  ;;  %v600_v20 = vadd.f32 %v596_v17, %v590_v23  ;;  %s3285_s8 = sld [smem:[#allocation2 + $0x28]] }
  0x7f   :  { %6848 = vst [vmem:[#allocation43_spill] sm:$0xff] %v3228_v58  ;;  %6849 = vst [vmem:[#allocation44_spill] sm:$0xff] %v3231_v30  ;;  %v601_v22 = vadd.f32 %v597_v41, %v591_v49  ;;  %v606_v13 = vmul.f32 %v3228_v58, %v2799_v10  ;;  %v607_v5 = vmul.f32 %v3228_v58, %v2801_v11  ;;  %v3260_v41 = vstv %s3181_s19  ;;  %s3301_s9 = sld [smem:[#allocation2 + $0x29]] }
  0x80   :  { %6850 = vst [vmem:[#allocation45_spill] sm:$0xff] %v3234_v40  ;;  %6851 = vst [vmem:[#allocation46_spill] sm:$0xff] %v3237_v33  ;;  %v646_v46 = vmul.f32 %v3237_v33, %v2785_v3  ;;  %v647_v52 = vmul.f32 %v3237_v33, %v2787_v4  ;;  %v560_v17 = vmul.f32 %v3174_v59, %v6301_v16  ;;  %v3263_v23 = vstv %s3191_s22  ;;  %s3311_s1 = sld [smem:[#allocation2 + $0x2a]] }
  0x81   :  { %v561_v49 = vmul.f32 %v3174_v59, %v6302_v44  ;;  %6852 = vst [vmem:[#allocation47_spill] sm:$0xff] %v3260_v41  ;;  %6853 = vst [vmem:[#allocation48_spill] sm:$0xff] %v3263_v23  ;;  %v610_v58 = vadd.f32 %v606_v13, %v600_v20  ;;  %v611_v33 = vadd.f32 %v607_v5, %v601_v22  ;;  %s3325_s0 = sld [smem:[#allocation2 + $0x2b]] }
  0x82   :  { %v652_v60 = vmul.f32 %v3260_v41, %v2789_v6  ;;  %v653_v16 = vmul.f32 %v3260_v41, %v2791_v7  ;;  %v564_v44 = vadd.f32 %v560_v17, %v498_v31  ;;  %v662_v59 = vmul.f32 %v3263_v23, %v2793_v8  ;;  %s3331_s10 = sld [smem:[#allocation6 + $0xa]] }
  0x83   :  { %v565_v24 = vadd.f32 %v561_v49, %v499_v48  ;;  %v663_v20 = vmul.f32 %v3263_v23, %v2795_v9  ;;  %v3280_v22 = vadd.f32 %v3231_v30, %v610_v58  ;;  %v3283_v13 = vadd.f32 %v3231_v30, %v611_v33  ;;  %s3337_s11 = sld [smem:[#allocation8 + $0xa]] }
  0x84   :  { %v656_v5 = vadd.f32 %v652_v60, %v646_v46  ;;  %v657_v41 = vadd.f32 %v653_v16, %v647_v52  ;;  %v3288_v31 = vstv %s3205_s23  ;;  %v3291_v48 = vstv %s3211_s24  ;;  %s3345_s12 = sld [smem:[#allocation2 + $0x2c]] }
  0x85   :  { %6854 = vst [vmem:[#allocation49_spill] sm:$0xff] %v3280_v22  ;;  %6855 = vst [vmem:[#allocation50_spill] sm:$0xff] %v3283_v13  ;;  %v3294_v17 = vstv %s3217_s25  ;;  %v3297_v49 = vstv %s3225_s26  ;;  %v6317_v58 = vmax.f32 %v3280_v22, 0.0  ;;  %v6318_v23 = vmax.f32 %v3283_v13, 0.0  ;;  %s3361_s13 = sld [smem:[#allocation2 + $0x2d]] }
  0x86   :  { %6856 = vst [vmem:[#allocation51_spill] sm:$0xff] %v3288_v31  ;;  %6857 = vst [vmem:[#allocation52_spill] sm:$0xff] %v3291_v48  ;;  %v666_v33 = vadd.f32 %v662_v59, %v656_v5  ;;  %v667_v30 = vadd.f32 %v663_v20, %v657_v41  ;;  %v672_v60 = vmul.f32 %v3288_v31, %v2799_v10  ;;  %v3320_v20 = vstv %s3241_s4  ;;  %s3371_s14 = sld [smem:[#allocation2 + $0x2e]] }
  0x87   :  { %6858 = vst [vmem:[#allocation53_spill] sm:$0xff] %v3294_v17  ;;  %6859 = vst [vmem:[#allocation54_spill] sm:$0xff] %v3297_v49  ;;  %v673_v16 = vmul.f32 %v3288_v31, %v2801_v11  ;;  %v712_v46 = vmul.f32 %v3297_v49, %v2785_v3  ;;  %v713_v52 = vmul.f32 %v3297_v49, %v2787_v4  ;;  %v3323_v5 = vstv %s3251_s27  ;;  %s3385_s15 = sld [smem:[#allocation2 + $0x2f]] }
  0x88   :  { %v626_v59 = vmul.f32 %v3234_v40, %v6317_v58  ;;  %v627_v41 = vmul.f32 %v3234_v40, %v6318_v23  ;;  %6860 = vst [vmem:[#allocation55_spill] sm:$0xff] %v3320_v20  ;;  %6861 = vst [vmem:[#allocation56_spill] sm:$0xff] %v3323_v5  ;;  %v676_v31 = vadd.f32 %v672_v60, %v666_v33  ;;  %s3391_s16 = sld [smem:[#allocation6 + $0xb]] }
  0x89   :  { %v677_v49 = vadd.f32 %v673_v16, %v667_v30  ;;  %v718_v22 = vmul.f32 %v3320_v20, %v2789_v6  ;;  %v719_v58 = vmul.f32 %v3320_v20, %v2791_v7  ;;  %v728_v40 = vmul.f32 %v3323_v5, %v2793_v8  ;;  %s3397_s17 = sld [smem:[#allocation8 + $0xb]] }
  0x8a   :  { %v630_v23 = vadd.f32 %v626_v59, %v564_v44  ;;  %v631_v13 = vadd.f32 %v627_v41, %v565_v24  ;;  %v729_v33 = vmul.f32 %v3323_v5, %v2795_v9  ;;  %v3340_v30 = vadd.f32 %v3291_v48, %v676_v31  ;;  %s3405_s2 = sld [smem:[#allocation2 + $0x30]] }
  0x8b   :  { %v3343_v60 = vadd.f32 %v3291_v48, %v677_v49  ;;  %v722_v16 = vadd.f32 %v718_v22, %v712_v46  ;;  %v723_v20 = vadd.f32 %v719_v58, %v713_v52  ;;  %v3348_v44 = vstv %s3265_s28  ;;  %s3421_s3 = sld [smem:[#allocation2 + $0x31]] }
  0x8c   :  { %6862 = vst [vmem:[#allocation57_spill] sm:$0xff] %v3340_v30  ;;  %6864 = vst [vmem:[#allocation59_spill] sm:$0xff] %v3348_v44  ;;  %v3351_v24 = vstv %s3271_s29  ;;  %v3354_v59 = vstv %s3277_s30  ;;  %v3357_v41 = vstv %s3285_s8  ;;  %v6333_v31 = vmax.f32 %v3340_v30, 0.0  ;;  %s3431_s18 = sld [smem:[#allocation2 + $0x32]] }
  0x8d   :  { %6863 = vst [vmem:[#allocation58_spill] sm:$0xff] %v3343_v60  ;;  %6865 = vst [vmem:[#allocation60_spill] sm:$0xff] %v3351_v24  ;;  %v6334_v5 = vmax.f32 %v3343_v60, 0.0  ;;  %v732_v49 = vadd.f32 %v728_v40, %v722_v16  ;;  %v733_v48 = vadd.f32 %v729_v33, %v723_v20  ;;  %v738_v22 = vmul.f32 %v3348_v44, %v2799_v10  ;;  %s3445_s19 = sld [smem:[#allocation2 + $0x33]] }
  0x8e   :  { %6866 = vst [vmem:[#allocation61_spill] sm:$0xff] %v3354_v59  ;;  %6867 = vst [vmem:[#allocation62_spill] sm:$0xff] %v3357_v41  ;;  %v739_v58 = vmul.f32 %v3348_v44, %v2801_v11  ;;  %v778_v46 = vmul.f32 %v3357_v41, %v2785_v3  ;;  %v779_v52 = vmul.f32 %v3357_v41, %v2787_v4  ;;  %v3380_v33 = vstv %s3301_s9  ;;  %s3451_s22 = sld [smem:[#allocation6 + $0xc]] }
  0x8f   :  { %v692_v40 = vmul.f32 %v3294_v17, %v6333_v31  ;;  %v693_v20 = vmul.f32 %v3294_v17, %v6334_v5  ;;  %6868 = vst [vmem:[#allocation63_spill] sm:$0xff] %v3380_v33  ;;  %v3383_v16 = vstv %s3311_s1  ;;  %v742_v44 = vadd.f32 %v738_v22, %v732_v49  ;;  %s3457_s23 = sld [smem:[#allocation8 + $0xc]] }
  0x90   :  { %6869 = vst [vmem:[#allocation64_spill] sm:$0xff] %v3383_v16  ;;  %v743_v41 = vadd.f32 %v739_v58, %v733_v48  ;;  %v784_v30 = vmul.f32 %v3380_v33, %v2789_v6  ;;  %v785_v31 = vmul.f32 %v3380_v33, %v2791_v7  ;;  %v794_v17 = vmul.f32 %v3383_v16, %v2793_v8  ;;  %s3465_s24 = sld [smem:[#allocation2 + $0x34]] }
  0x91   :  { %v696_v5 = vadd.f32 %v692_v40, %v630_v23  ;;  %v697_v60 = vadd.f32 %v693_v20, %v631_v13  ;;  %v795_v49 = vmul.f32 %v3383_v16, %v2795_v9  ;;  %v3400_v48 = vadd.f32 %v3351_v24, %v742_v44  ;;  %s3481_s25 = sld [smem:[#allocation2 + $0x35]] }
  0x92   :  { %v3403_v22 = vadd.f32 %v3351_v24, %v743_v41  ;;  %v788_v58 = vadd.f32 %v784_v30, %v778_v46  ;;  %v789_v33 = vadd.f32 %v785_v31, %v779_v52  ;;  %v3408_v23 = vstv %s3325_s0  ;;  %s3491_s26 = sld [smem:[#allocation2 + $0x36]] }
  0x93   :  { %6870 = vst [vmem:[#allocation65_spill] sm:$0xff] %v3400_v48  ;;  %6872 = vst [vmem:[#allocation67_spill] sm:$0xff] %v3408_v23  ;;  %v3411_v13 = vstv %s3331_s10  ;;  %v3414_v40 = vstv %s3337_s11  ;;  %v3417_v20 = vstv %s3345_s12  ;;  %v6349_v44 = vmax.f32 %v3400_v48, 0.0  ;;  %s3505_s4 = sld [smem:[#allocation2 + $0x37]] }
  0x94   :  { %6871 = vst [vmem:[#allocation66_spill] sm:$0xff] %v3403_v22  ;;  %6873 = vst [vmem:[#allocation68_spill] sm:$0xff] %v3411_v13  ;;  %v6350_v16 = vmax.f32 %v3403_v22, 0.0  ;;  %v798_v41 = vadd.f32 %v794_v17, %v788_v58  ;;  %v799_v24 = vadd.f32 %v795_v49, %v789_v33  ;;  %v804_v30 = vmul.f32 %v3408_v23, %v2799_v10  ;;  %s3511_s27 = sld [smem:[#allocation6 + $0xd]] }
  0x95   :  { %6874 = vst [vmem:[#allocation69_spill] sm:$0xff] %v3414_v40  ;;  %6875 = vst [vmem:[#allocation70_spill] sm:$0xff] %v3417_v20  ;;  %v805_v31 = vmul.f32 %v3408_v23, %v2801_v11  ;;  %v844_v46 = vmul.f32 %v3417_v20, %v2785_v3  ;;  %v845_v52 = vmul.f32 %v3417_v20, %v2787_v4  ;;  %v3440_v49 = vstv %s3361_s13  ;;  %s3517_s28 = sld [smem:[#allocation8 + $0xd]] }
  0x96   :  { %v758_v17 = vmul.f32 %v3354_v59, %v6349_v44  ;;  %v759_v33 = vmul.f32 %v3354_v59, %v6350_v16  ;;  %6876 = vst [vmem:[#allocation71_spill] sm:$0xff] %v3440_v49  ;;  %v3443_v58 = vstv %s3371_s14  ;;  %v808_v23 = vadd.f32 %v804_v30, %v798_v41  ;;  %s3525_s29 = sld [smem:[#allocation2 + $0x38]] }
  0x97   :  { %6877 = vst [vmem:[#allocation72_spill] sm:$0xff] %v3443_v58  ;;  %v809_v20 = vadd.f32 %v805_v31, %v799_v24  ;;  %v850_v48 = vmul.f32 %v3440_v49, %v2789_v6  ;;  %v851_v44 = vmul.f32 %v3440_v49, %v2791_v7  ;;  %v860_v59 = vmul.f32 %v3443_v58, %v2793_v8  ;;  %s3541_s30 = sld [smem:[#allocation2 + $0x39]] }
  0x98   :  { %v762_v16 = vadd.f32 %v758_v17, %v696_v5  ;;  %v763_v22 = vadd.f32 %v759_v33, %v697_v60  ;;  %v861_v41 = vmul.f32 %v3443_v58, %v2795_v9  ;;  %v3460_v24 = vadd.f32 %v3411_v13, %v808_v23  ;;  %s3551_s8 = sld [smem:[#allocation2 + $0x3a]] }
  0x99   :  { %v3463_v30 = vadd.f32 %v3411_v13, %v809_v20  ;;  %v854_v31 = vadd.f32 %v850_v48, %v844_v46  ;;  %v855_v49 = vadd.f32 %v851_v44, %v845_v52  ;;  %v3468_v5 = vstv %s3385_s15  ;;  %s3565_s9 = sld [smem:[#allocation2 + $0x3b]] }
  0x9a   :  { %6878 = vst [vmem:[#allocation73_spill] sm:$0xff] %v3460_v24  ;;  %6880 = vst [vmem:[#allocation75_spill] sm:$0xff] %v3468_v5  ;;  %v3471_v60 = vstv %s3391_s16  ;;  %v3474_v17 = vstv %s3397_s17  ;;  %v3477_v33 = vstv %s3405_s2  ;;  %v6365_v23 = vmax.f32 %v3460_v24, 0.0  ;;  %s3571_s1 = sld [smem:[#allocation6 + $0xe]] }
  0x9b   :  { %6879 = vst [vmem:[#allocation74_spill] sm:$0xff] %v3463_v30  ;;  %6881 = vst [vmem:[#allocation76_spill] sm:$0xff] %v3471_v60  ;;  %v6366_v58 = vmax.f32 %v3463_v30, 0.0  ;;  %v864_v20 = vadd.f32 %v860_v59, %v854_v31  ;;  %v865_v13 = vadd.f32 %v861_v41, %v855_v49  ;;  %v870_v48 = vmul.f32 %v3468_v5, %v2799_v10  ;;  %s3577_s0 = sld [smem:[#allocation8 + $0xe]] }
  0x9c   :  { %6882 = vst [vmem:[#allocation77_spill] sm:$0xff] %v3474_v17  ;;  %6883 = vst [vmem:[#allocation78_spill] sm:$0xff] %v3477_v33  ;;  %v871_v44 = vmul.f32 %v3468_v5, %v2801_v11  ;;  %v910_v46 = vmul.f32 %v3477_v33, %v2785_v3  ;;  %v911_v52 = vmul.f32 %v3477_v33, %v2787_v4  ;;  %v3500_v41 = vstv %s3421_s3  ;;  %s3585_s10 = sld [smem:[#allocation2 + $0x3c]] }
  0x9d   :  { %v824_v59 = vmul.f32 %v3414_v40, %v6365_v23  ;;  %v825_v49 = vmul.f32 %v3414_v40, %v6366_v58  ;;  %6884 = vst [vmem:[#allocation79_spill] sm:$0xff] %v3500_v41  ;;  %v3503_v31 = vstv %s3431_s18  ;;  %v874_v5 = vadd.f32 %v870_v48, %v864_v20  ;;  %s3601_s11 = sld [smem:[#allocation2 + $0x3d]] }
  0x9e   :  { %6885 = vst [vmem:[#allocation80_spill] sm:$0xff] %v3503_v31  ;;  %v875_v33 = vadd.f32 %v871_v44, %v865_v13  ;;  %v916_v24 = vmul.f32 %v3500_v41, %v2789_v6  ;;  %v917_v23 = vmul.f32 %v3500_v41, %v2791_v7  ;;  %v926_v40 = vmul.f32 %v3503_v31, %v2793_v8  ;;  %s3611_s12 = sld [smem:[#allocation2 + $0x3e]] }
  0x9f   :  { %v828_v58 = vadd.f32 %v824_v59, %v762_v16  ;;  %v829_v30 = vadd.f32 %v825_v49, %v763_v22  ;;  %v927_v20 = vmul.f32 %v3503_v31, %v2795_v9  ;;  %v3520_v13 = vadd.f32 %v3471_v60, %v874_v5  ;;  %s3625_s13 = sld [smem:[#allocation2 + $0x3f]] }
  0xa0   :  { %v3523_v48 = vadd.f32 %v3471_v60, %v875_v33  ;;  %v920_v44 = vadd.f32 %v916_v24, %v910_v46  ;;  %v921_v41 = vadd.f32 %v917_v23, %v911_v52  ;;  %v3528_v16 = vstv %s3445_s19  ;;  %s3631_s14 = sld [smem:[#allocation6 + $0xf]] }
  0xa1   :  { %6886 = vst [vmem:[#allocation81_spill] sm:$0xff] %v3520_v13  ;;  %6888 = vst [vmem:[#allocation83_spill] sm:$0xff] %v3528_v16  ;;  %v3531_v22 = vstv %s3451_s22  ;;  %v3534_v59 = vstv %s3457_s23  ;;  %v3537_v49 = vstv %s3465_s24  ;;  %v6381_v5 = vmax.f32 %v3520_v13, 0.0  ;;  %s3637_s15 = sld [smem:[#allocation8 + $0xf]] }
  0xa2   :  { %6887 = vst [vmem:[#allocation82_spill] sm:$0xff] %v3523_v48  ;;  %6889 = vst [vmem:[#allocation84_spill] sm:$0xff] %v3531_v22  ;;  %v6382_v31 = vmax.f32 %v3523_v48, 0.0  ;;  %v930_v33 = vadd.f32 %v926_v40, %v920_v44  ;;  %v931_v60 = vadd.f32 %v927_v20, %v921_v41  ;;  %v936_v24 = vmul.f32 %v3528_v16, %v2799_v10  ;;  %s3645_s16 = sld [smem:[#allocation2 + $0x40]] }
  0xa3   :  { %6890 = vst [vmem:[#allocation85_spill] sm:$0xff] %v3534_v59  ;;  %6891 = vst [vmem:[#allocation86_spill] sm:$0xff] %v3537_v49  ;;  %v937_v23 = vmul.f32 %v3528_v16, %v2801_v11  ;;  %v976_v46 = vmul.f32 %v3537_v49, %v2785_v3  ;;  %v977_v52 = vmul.f32 %v3537_v49, %v2787_v4  ;;  %v3560_v20 = vstv %s3481_s25  ;;  %s3661_s17 = sld [smem:[#allocation2 + $0x41]] }
  0xa4   :  { %v890_v40 = vmul.f32 %v3474_v17, %v6381_v5  ;;  %v891_v41 = vmul.f32 %v3474_v17, %v6382_v31  ;;  %6892 = vst [vmem:[#allocation87_spill] sm:$0xff] %v3560_v20  ;;  %v3563_v44 = vstv %s3491_s26  ;;  %v940_v16 = vadd.f32 %v936_v24, %v930_v33  ;;  %s3671_s2 = sld [smem:[#allocation2 + $0x42]] }
  0xa5   :  { %6893 = vst [vmem:[#allocation88_spill] sm:$0xff] %v3563_v44  ;;  %v941_v49 = vadd.f32 %v937_v23, %v931_v60  ;;  %v982_v13 = vmul.f32 %v3560_v20, %v2789_v6  ;;  %v983_v5 = vmul.f32 %v3560_v20, %v2791_v7  ;;  %v992_v17 = vmul.f32 %v3563_v44, %v2793_v8  ;;  %s3685_s3 = sld [smem:[#allocation2 + $0x43]] }
  0xa6   :  { %v894_v31 = vadd.f32 %v890_v40, %v828_v58  ;;  %v895_v48 = vadd.f32 %v891_v41, %v829_v30  ;;  %v993_v33 = vmul.f32 %v3563_v44, %v2795_v9  ;;  %v3580_v60 = vadd.f32 %v3531_v22, %v940_v16  ;;  %s3691_s18 = sld [smem:[#allocation6 + $0x10]] }
  0xa7   :  { %v3583_v24 = vadd.f32 %v3531_v22, %v941_v49  ;;  %v986_v23 = vadd.f32 %v982_v13, %v976_v46  ;;  %v987_v20 = vadd.f32 %v983_v5, %v977_v52  ;;  %v3588_v58 = vstv %s3505_s4  ;;  %s3697_s19 = sld [smem:[#allocation8 + $0x10]] }
  0xa8   :  { %6894 = vst [vmem:[#allocation89_spill] sm:$0xff] %v3580_v60  ;;  %6896 = vst [vmem:[#allocation91_spill] sm:$0xff] %v3588_v58  ;;  %v3591_v30 = vstv %s3511_s27  ;;  %v3594_v40 = vstv %s3517_s28  ;;  %v3597_v41 = vstv %s3525_s29  ;;  %v6397_v16 = vmax.f32 %v3580_v60, 0.0  ;;  %s3705_s22 = sld [smem:[#allocation2 + $0x44]] }
  0xa9   :  { %6895 = vst [vmem:[#allocation90_spill] sm:$0xff] %v3583_v24  ;;  %6897 = vst [vmem:[#allocation92_spill] sm:$0xff] %v3591_v30  ;;  %v6398_v44 = vmax.f32 %v3583_v24, 0.0  ;;  %v996_v49 = vadd.f32 %v992_v17, %v986_v23  ;;  %v997_v22 = vadd.f32 %v993_v33, %v987_v20  ;;  %v1002_v13 = vmul.f32 %v3588_v58, %v2799_v10  ;;  %s3721_s23 = sld [smem:[#allocation2 + $0x45]] }
  0xaa   :  { %6898 = vst [vmem:[#allocation93_spill] sm:$0xff] %v3594_v40  ;;  %6899 = vst [vmem:[#allocation94_spill] sm:$0xff] %v3597_v41  ;;  %v1003_v5 = vmul.f32 %v3588_v58, %v2801_v11  ;;  %v1042_v46 = vmul.f32 %v3597_v41, %v2785_v3  ;;  %v1043_v52 = vmul.f32 %v3597_v41, %v2787_v4  ;;  %v3620_v33 = vstv %s3541_s30  ;;  %s3731_s24 = sld [smem:[#allocation2 + $0x46]] }
  0xab   :  { %v956_v17 = vmul.f32 %v3534_v59, %v6397_v16  ;;  %v957_v20 = vmul.f32 %v3534_v59, %v6398_v44  ;;  %6900 = vst [vmem:[#allocation95_spill] sm:$0xff] %v3620_v33  ;;  %v3623_v23 = vstv %s3551_s8  ;;  %v1006_v58 = vadd.f32 %v1002_v13, %v996_v49  ;;  %s3745_s25 = sld [smem:[#allocation2 + $0x47]] }
  0xac   :  { %6901 = vst [vmem:[#allocation96_spill] sm:$0xff] %v3623_v23  ;;  %v1007_v41 = vadd.f32 %v1003_v5, %v997_v22  ;;  %v1048_v60 = vmul.f32 %v3620_v33, %v2789_v6  ;;  %v1049_v16 = vmul.f32 %v3620_v33, %v2791_v7  ;;  %v1058_v59 = vmul.f32 %v3623_v23, %v2793_v8  ;;  %s3751_s26 = sld [smem:[#allocation6 + $0x11]] }
  0xad   :  { %v960_v44 = vadd.f32 %v956_v17, %v894_v31  ;;  %v961_v24 = vadd.f32 %v957_v20, %v895_v48  ;;  %v1059_v49 = vmul.f32 %v3623_v23, %v2795_v9  ;;  %v3640_v22 = vadd.f32 %v3591_v30, %v1006_v58  ;;  %s3757_s4 = sld [smem:[#allocation8 + $0x11]] }
  0xae   :  { %v3643_v13 = vadd.f32 %v3591_v30, %v1007_v41  ;;  %v1052_v5 = vadd.f32 %v1048_v60, %v1042_v46  ;;  %v1053_v33 = vadd.f32 %v1049_v16, %v1043_v52  ;;  %v3648_v31 = vstv %s3565_s9  ;;  %s3765_s27 = sld [smem:[#allocation2 + $0x48]] }
  0xaf   :  { %6902 = vst [vmem:[#allocation97_spill] sm:$0xff] %v3640_v22  ;;  %6904 = vst [vmem:[#allocation99_spill] sm:$0xff] %v3648_v31  ;;  %v3651_v48 = vstv %s3571_s1  ;;  %v3654_v17 = vstv %s3577_s0  ;;  %v3657_v20 = vstv %s3585_s10  ;;  %v6413_v58 = vmax.f32 %v3640_v22, 0.0  ;;  %s3781_s28 = sld [smem:[#allocation2 + $0x49]] }
  0xb0   :  { %6903 = vst [vmem:[#allocation98_spill] sm:$0xff] %v3643_v13  ;;  %6905 = vst [vmem:[#allocation100_spill] sm:$0xff] %v3651_v48  ;;  %v6414_v23 = vmax.f32 %v3643_v13, 0.0  ;;  %v1062_v41 = vadd.f32 %v1058_v59, %v1052_v5  ;;  %v1063_v30 = vadd.f32 %v1059_v49, %v1053_v33  ;;  %v1068_v60 = vmul.f32 %v3648_v31, %v2799_v10  ;;  %s3791_s29 = sld [smem:[#allocation2 + $0x4a]] }
  0xb1   :  { %6906 = vst [vmem:[#allocation101_spill] sm:$0xff] %v3654_v17  ;;  %6907 = vst [vmem:[#allocation102_spill] sm:$0xff] %v3657_v20  ;;  %v1069_v16 = vmul.f32 %v3648_v31, %v2801_v11  ;;  %v1108_v46 = vmul.f32 %v3657_v20, %v2785_v3  ;;  %v1109_v52 = vmul.f32 %v3657_v20, %v2787_v4  ;;  %v3680_v49 = vstv %s3601_s11  ;;  %s3805_s30 = sld [smem:[#allocation2 + $0x4b]] }
  0xb2   :  { %v1022_v59 = vmul.f32 %v3594_v40, %v6413_v58  ;;  %v1023_v33 = vmul.f32 %v3594_v40, %v6414_v23  ;;  %6908 = vst [vmem:[#allocation103_spill] sm:$0xff] %v3680_v49  ;;  %v3683_v5 = vstv %s3611_s12  ;;  %v1072_v31 = vadd.f32 %v1068_v60, %v1062_v41  ;;  %s3811_s8 = sld [smem:[#allocation6 + $0x12]] }
  0xb3   :  { %6909 = vst [vmem:[#allocation104_spill] sm:$0xff] %v3683_v5  ;;  %v1073_v20 = vadd.f32 %v1069_v16, %v1063_v30  ;;  %v1114_v22 = vmul.f32 %v3680_v49, %v2789_v6  ;;  %v1115_v58 = vmul.f32 %v3680_v49, %v2791_v7  ;;  %v1124_v40 = vmul.f32 %v3683_v5, %v2793_v8  ;;  %s3817_s9 = sld [smem:[#allocation8 + $0x12]] }
  0xb4   :  { %v1026_v23 = vadd.f32 %v1022_v59, %v960_v44  ;;  %v1027_v13 = vadd.f32 %v1023_v33, %v961_v24  ;;  %v1125_v41 = vmul.f32 %v3683_v5, %v2795_v9  ;;  %v3700_v30 = vadd.f32 %v3651_v48, %v1072_v31  ;;  %s3825_s1 = sld [smem:[#allocation2 + $0x4c]] }
  0xb5   :  { %v3703_v60 = vadd.f32 %v3651_v48, %v1073_v20  ;;  %v1118_v16 = vadd.f32 %v1114_v22, %v1108_v46  ;;  %v1119_v49 = vadd.f32 %v1115_v58, %v1109_v52  ;;  %v3708_v44 = vstv %s3625_s13  ;;  %s3841_s0 = sld [smem:[#allocation2 + $0x4d]] }
  0xb6   :  { %6910 = vst [vmem:[#allocation105_spill] sm:$0xff] %v3700_v30  ;;  %6912 = vst [vmem:[#allocation107_spill] sm:$0xff] %v3708_v44  ;;  %v3711_v24 = vstv %s3631_s14  ;;  %v3714_v59 = vstv %s3637_s15  ;;  %v3717_v33 = vstv %s3645_s16  ;;  %v6429_v31 = vmax.f32 %v3700_v30, 0.0  ;;  %s3851_s10 = sld [smem:[#allocation2 + $0x4e]] }
  0xb7   :  { %6911 = vst [vmem:[#allocation106_spill] sm:$0xff] %v3703_v60  ;;  %6913 = vst [vmem:[#allocation108_spill] sm:$0xff] %v3711_v24  ;;  %v6430_v5 = vmax.f32 %v3703_v60, 0.0  ;;  %v1128_v20 = vadd.f32 %v1124_v40, %v1118_v16  ;;  %v1129_v48 = vadd.f32 %v1125_v41, %v1119_v49  ;;  %v1134_v22 = vmul.f32 %v3708_v44, %v2799_v10  ;;  %s3865_s11 = sld [smem:[#allocation2 + $0x4f]] }
  0xb8   :  { %6914 = vst [vmem:[#allocation109_spill] sm:$0xff] %v3714_v59  ;;  %6915 = vst [vmem:[#allocation110_spill] sm:$0xff] %v3717_v33  ;;  %v1135_v58 = vmul.f32 %v3708_v44, %v2801_v11  ;;  %v1174_v46 = vmul.f32 %v3717_v33, %v2785_v3  ;;  %v1175_v52 = vmul.f32 %v3717_v33, %v2787_v4  ;;  %v3740_v41 = vstv %s3661_s17  ;;  %s3871_s12 = sld [smem:[#allocation6 + $0x13]] }
  0xb9   :  { %v1088_v40 = vmul.f32 %v3654_v17, %v6429_v31  ;;  %v1089_v49 = vmul.f32 %v3654_v17, %v6430_v5  ;;  %6916 = vst [vmem:[#allocation111_spill] sm:$0xff] %v3740_v41  ;;  %v3743_v16 = vstv %s3671_s2  ;;  %v1138_v44 = vadd.f32 %v1134_v22, %v1128_v20  ;;  %s3877_s13 = sld [smem:[#allocation8 + $0x13]] }
  0xba   :  { %6917 = vst [vmem:[#allocation112_spill] sm:$0xff] %v3743_v16  ;;  %v1139_v33 = vadd.f32 %v1135_v58, %v1129_v48  ;;  %v1180_v30 = vmul.f32 %v3740_v41, %v2789_v6  ;;  %v1181_v31 = vmul.f32 %v3740_v41, %v2791_v7  ;;  %v1190_v17 = vmul.f32 %v3743_v16, %v2793_v8  ;;  %s3885_s14 = sld [smem:[#allocation2 + $0x50]] }
  0xbb   :  { %v1092_v5 = vadd.f32 %v1088_v40, %v1026_v23  ;;  %v1093_v60 = vadd.f32 %v1089_v49, %v1027_v13  ;;  %v1191_v20 = vmul.f32 %v3743_v16, %v2795_v9  ;;  %v3760_v48 = vadd.f32 %v3711_v24, %v1138_v44  ;;  %s3901_s15 = sld [smem:[#allocation2 + $0x51]] }
  0xbc   :  { %v3763_v22 = vadd.f32 %v3711_v24, %v1139_v33  ;;  %v1184_v58 = vadd.f32 %v1180_v30, %v1174_v46  ;;  %v1185_v41 = vadd.f32 %v1181_v31, %v1175_v52  ;;  %v3768_v23 = vstv %s3685_s3  ;;  %s3911_s16 = sld [smem:[#allocation2 + $0x52]] }
  0xbd   :  { %6918 = vst [vmem:[#allocation113_spill] sm:$0xff] %v3760_v48  ;;  %6920 = vst [vmem:[#allocation115_spill] sm:$0xff] %v3768_v23  ;;  %v3771_v13 = vstv %s3691_s18  ;;  %v3774_v40 = vstv %s3697_s19  ;;  %v3777_v49 = vstv %s3705_s22  ;;  %v6445_v44 = vmax.f32 %v3760_v48, 0.0  ;;  %s3925_s17 = sld [smem:[#allocation2 + $0x53]] }
  0xbe   :  { %6919 = vst [vmem:[#allocation114_spill] sm:$0xff] %v3763_v22  ;;  %6921 = vst [vmem:[#allocation116_spill] sm:$0xff] %v3771_v13  ;;  %v6446_v16 = vmax.f32 %v3763_v22, 0.0  ;;  %v1194_v33 = vadd.f32 %v1190_v17, %v1184_v58  ;;  %v1195_v24 = vadd.f32 %v1191_v20, %v1185_v41  ;;  %v1200_v30 = vmul.f32 %v3768_v23, %v2799_v10  ;;  %s3931_s2 = sld [smem:[#allocation6 + $0x14]] }
  0xbf   :  { %6922 = vst [vmem:[#allocation117_spill] sm:$0xff] %v3774_v40  ;;  %6923 = vst [vmem:[#allocation118_spill] sm:$0xff] %v3777_v49  ;;  %v1201_v31 = vmul.f32 %v3768_v23, %v2801_v11  ;;  %v1240_v46 = vmul.f32 %v3777_v49, %v2785_v3  ;;  %v1241_v52 = vmul.f32 %v3777_v49, %v2787_v4  ;;  %v3800_v20 = vstv %s3721_s23  ;;  %s3937_s3 = sld [smem:[#allocation8 + $0x14]] }
  0xc0   :  { %v1154_v17 = vmul.f32 %v3714_v59, %v6445_v44  ;;  %v1155_v41 = vmul.f32 %v3714_v59, %v6446_v16  ;;  %6924 = vst [vmem:[#allocation119_spill] sm:$0xff] %v3800_v20  ;;  %v3803_v58 = vstv %s3731_s24  ;;  %v1204_v23 = vadd.f32 %v1200_v30, %v1194_v33  ;;  %s3945_s18 = sld [smem:[#allocation2 + $0x54]] }
  0xc1   :  { %6925 = vst [vmem:[#allocation120_spill] sm:$0xff] %v3803_v58  ;;  %v1205_v49 = vadd.f32 %v1201_v31, %v1195_v24  ;;  %v1246_v48 = vmul.f32 %v3800_v20, %v2789_v6  ;;  %v1247_v44 = vmul.f32 %v3800_v20, %v2791_v7  ;;  %v1256_v59 = vmul.f32 %v3803_v58, %v2793_v8  ;;  %s3961_s19 = sld [smem:[#allocation2 + $0x55]] }
  0xc2   :  { %v1158_v16 = vadd.f32 %v1154_v17, %v1092_v5  ;;  %v1159_v22 = vadd.f32 %v1155_v41, %v1093_v60  ;;  %v1257_v33 = vmul.f32 %v3803_v58, %v2795_v9  ;;  %v3820_v24 = vadd.f32 %v3771_v13, %v1204_v23  ;;  %s3971_s22 = sld [smem:[#allocation2 + $0x56]] }
  0xc3   :  { %v3823_v30 = vadd.f32 %v3771_v13, %v1205_v49  ;;  %v1250_v31 = vadd.f32 %v1246_v48, %v1240_v46  ;;  %v1251_v20 = vadd.f32 %v1247_v44, %v1241_v52  ;;  %v3828_v5 = vstv %s3745_s25  ;;  %s3985_s23 = sld [smem:[#allocation2 + $0x57]] }
  0xc4   :  { %6926 = vst [vmem:[#allocation121_spill] sm:$0xff] %v3820_v24  ;;  %6928 = vst [vmem:[#allocation123_spill] sm:$0xff] %v3828_v5  ;;  %v3831_v60 = vstv %s3751_s26  ;;  %v3834_v17 = vstv %s3757_s4  ;;  %v3837_v41 = vstv %s3765_s27  ;;  %v6461_v23 = vmax.f32 %v3820_v24, 0.0  ;;  %s3991_s24 = sld [smem:[#allocation6 + $0x15]] }
  0xc5   :  { %6927 = vst [vmem:[#allocation122_spill] sm:$0xff] %v3823_v30  ;;  %6929 = vst [vmem:[#allocation124_spill] sm:$0xff] %v3831_v60  ;;  %v6462_v58 = vmax.f32 %v3823_v30, 0.0  ;;  %v1260_v49 = vadd.f32 %v1256_v59, %v1250_v31  ;;  %v1261_v13 = vadd.f32 %v1257_v33, %v1251_v20  ;;  %v1266_v48 = vmul.f32 %v3828_v5, %v2799_v10  ;;  %s3997_s25 = sld [smem:[#allocation8 + $0x15]] }
  0xc6   :  { %6930 = vst [vmem:[#allocation125_spill] sm:$0xff] %v3834_v17  ;;  %6931 = vst [vmem:[#allocation126_spill] sm:$0xff] %v3837_v41  ;;  %v1267_v44 = vmul.f32 %v3828_v5, %v2801_v11  ;;  %v1306_v46 = vmul.f32 %v3837_v41, %v2785_v3  ;;  %v1307_v52 = vmul.f32 %v3837_v41, %v2787_v4  ;;  %v3860_v33 = vstv %s3781_s28  ;;  %s4005_s26 = sld [smem:[#allocation2 + $0x58]] }
  0xc7   :  { %v1220_v59 = vmul.f32 %v3774_v40, %v6461_v23  ;;  %v1221_v20 = vmul.f32 %v3774_v40, %v6462_v58  ;;  %6932 = vst [vmem:[#allocation127_spill] sm:$0xff] %v3860_v33  ;;  %v3863_v31 = vstv %s3791_s29  ;;  %v1270_v5 = vadd.f32 %v1266_v48, %v1260_v49  ;;  %s4021_s4 = sld [smem:[#allocation2 + $0x59]] }
  0xc8   :  { %6933 = vst [vmem:[#allocation128_spill] sm:$0xff] %v3863_v31  ;;  %v1271_v41 = vadd.f32 %v1267_v44, %v1261_v13  ;;  %v1312_v24 = vmul.f32 %v3860_v33, %v2789_v6  ;;  %v1313_v23 = vmul.f32 %v3860_v33, %v2791_v7  ;;  %v1322_v40 = vmul.f32 %v3863_v31, %v2793_v8  ;;  %s4031_s27 = sld [smem:[#allocation2 + $0x5a]] }
  0xc9   :  { %v1224_v58 = vadd.f32 %v1220_v59, %v1158_v16  ;;  %v1225_v30 = vadd.f32 %v1221_v20, %v1159_v22  ;;  %v1323_v49 = vmul.f32 %v3863_v31, %v2795_v9  ;;  %v3880_v13 = vadd.f32 %v3831_v60, %v1270_v5  ;;  %s4045_s28 = sld [smem:[#allocation2 + $0x5b]] }
  0xca   :  { %v3883_v48 = vadd.f32 %v3831_v60, %v1271_v41  ;;  %v1316_v44 = vadd.f32 %v1312_v24, %v1306_v46  ;;  %v1317_v33 = vadd.f32 %v1313_v23, %v1307_v52  ;;  %v3888_v16 = vstv %s3805_s30  ;;  %s4051_s29 = sld [smem:[#allocation6 + $0x16]] }
  0xcb   :  { %6934 = vst [vmem:[#allocation129_spill] sm:$0xff] %v3880_v13  ;;  %6936 = vst [vmem:[#allocation131_spill] sm:$0xff] %v3888_v16  ;;  %v3891_v22 = vstv %s3811_s8  ;;  %v3894_v59 = vstv %s3817_s9  ;;  %v3897_v20 = vstv %s3825_s1  ;;  %v6477_v5 = vmax.f32 %v3880_v13, 0.0  ;;  %s4057_s30 = sld [smem:[#allocation8 + $0x16]] }
  0xcc   :  { %6935 = vst [vmem:[#allocation130_spill] sm:$0xff] %v3883_v48  ;;  %6937 = vst [vmem:[#allocation132_spill] sm:$0xff] %v3891_v22  ;;  %v6478_v31 = vmax.f32 %v3883_v48, 0.0  ;;  %v1326_v41 = vadd.f32 %v1322_v40, %v1316_v44  ;;  %v1327_v60 = vadd.f32 %v1323_v49, %v1317_v33  ;;  %v1332_v24 = vmul.f32 %v3888_v16, %v2799_v10  ;;  %s4065_s8 = sld [smem:[#allocation2 + $0x5c]] }
  0xcd   :  { %6938 = vst [vmem:[#allocation133_spill] sm:$0xff] %v3894_v59  ;;  %6939 = vst [vmem:[#allocation134_spill] sm:$0xff] %v3897_v20  ;;  %v1333_v23 = vmul.f32 %v3888_v16, %v2801_v11  ;;  %v1372_v46 = vmul.f32 %v3897_v20, %v2785_v3  ;;  %v1373_v52 = vmul.f32 %v3897_v20, %v2787_v4  ;;  %v3920_v49 = vstv %s3841_s0  ;;  %s4081_s9 = sld [smem:[#allocation2 + $0x5d]] }
  0xce   :  { %v1286_v40 = vmul.f32 %v3834_v17, %v6477_v5  ;;  %v1287_v33 = vmul.f32 %v3834_v17, %v6478_v31  ;;  %6940 = vst [vmem:[#allocation135_spill] sm:$0xff] %v3920_v49  ;;  %v3923_v44 = vstv %s3851_s10  ;;  %v1336_v16 = vadd.f32 %v1332_v24, %v1326_v41  ;;  %s4091_s1 = sld [smem:[#allocation2 + $0x5e]] }
  0xcf   :  { %6941 = vst [vmem:[#allocation136_spill] sm:$0xff] %v3923_v44  ;;  %v1337_v20 = vadd.f32 %v1333_v23, %v1327_v60  ;;  %v1378_v13 = vmul.f32 %v3920_v49, %v2789_v6  ;;  %v1379_v5 = vmul.f32 %v3920_v49, %v2791_v7  ;;  %v1388_v17 = vmul.f32 %v3923_v44, %v2793_v8  ;;  %s4105_s0 = sld [smem:[#allocation2 + $0x5f]] }
  0xd0   :  { %v1290_v31 = vadd.f32 %v1286_v40, %v1224_v58  ;;  %v1291_v48 = vadd.f32 %v1287_v33, %v1225_v30  ;;  %v1389_v41 = vmul.f32 %v3923_v44, %v2795_v9  ;;  %v3940_v60 = vadd.f32 %v3891_v22, %v1336_v16  ;;  %s4111_s10 = sld [smem:[#allocation6 + $0x17]] }
  0xd1   :  { %v3943_v24 = vadd.f32 %v3891_v22, %v1337_v20  ;;  %v1382_v23 = vadd.f32 %v1378_v13, %v1372_v46  ;;  %v1383_v49 = vadd.f32 %v1379_v5, %v1373_v52  ;;  %v3948_v58 = vstv %s3865_s11  ;;  %s4117_s11 = sld [smem:[#allocation8 + $0x17]] }
  0xd2   :  { %6942 = vst [vmem:[#allocation137_spill] sm:$0xff] %v3940_v60  ;;  %6944 = vst [vmem:[#allocation139_spill] sm:$0xff] %v3948_v58  ;;  %v3951_v30 = vstv %s3871_s12  ;;  %v3954_v40 = vstv %s3877_s13  ;;  %v3957_v33 = vstv %s3885_s14  ;;  %v6493_v16 = vmax.f32 %v3940_v60, 0.0  ;;  %s4125_s12 = sld [smem:[#allocation2 + $0x60]] }
  0xd3   :  { %6943 = vst [vmem:[#allocation138_spill] sm:$0xff] %v3943_v24  ;;  %6945 = vst [vmem:[#allocation140_spill] sm:$0xff] %v3951_v30  ;;  %v6494_v44 = vmax.f32 %v3943_v24, 0.0  ;;  %v1392_v20 = vadd.f32 %v1388_v17, %v1382_v23  ;;  %v1393_v22 = vadd.f32 %v1389_v41, %v1383_v49  ;;  %v1398_v13 = vmul.f32 %v3948_v58, %v2799_v10  ;;  %s4141_s13 = sld [smem:[#allocation2 + $0x61]] }
  0xd4   :  { %6946 = vst [vmem:[#allocation141_spill] sm:$0xff] %v3954_v40  ;;  %6947 = vst [vmem:[#allocation142_spill] sm:$0xff] %v3957_v33  ;;  %v1399_v5 = vmul.f32 %v3948_v58, %v2801_v11  ;;  %v1438_v46 = vmul.f32 %v3957_v33, %v2785_v3  ;;  %v1439_v52 = vmul.f32 %v3957_v33, %v2787_v4  ;;  %v3980_v41 = vstv %s3901_s15  ;;  %s4151_s14 = sld [smem:[#allocation2 + $0x62]] }
  0xd5   :  { %v1352_v17 = vmul.f32 %v3894_v59, %v6493_v16  ;;  %v1353_v49 = vmul.f32 %v3894_v59, %v6494_v44  ;;  %6948 = vst [vmem:[#allocation143_spill] sm:$0xff] %v3980_v41  ;;  %v3983_v23 = vstv %s3911_s16  ;;  %v1402_v58 = vadd.f32 %v1398_v13, %v1392_v20  ;;  %s4165_s15 = sld [smem:[#allocation2 + $0x63]] }
  0xd6   :  { %6949 = vst [vmem:[#allocation144_spill] sm:$0xff] %v3983_v23  ;;  %v1403_v33 = vadd.f32 %v1399_v5, %v1393_v22  ;;  %v1444_v60 = vmul.f32 %v3980_v41, %v2789_v6  ;;  %v1445_v16 = vmul.f32 %v3980_v41, %v2791_v7  ;;  %v1454_v59 = vmul.f32 %v3983_v23, %v2793_v8  ;;  %s4171_s16 = sld [smem:[#allocation6 + $0x18]] }
  0xd7   :  { %v1356_v44 = vadd.f32 %v1352_v17, %v1290_v31  ;;  %v1357_v24 = vadd.f32 %v1353_v49, %v1291_v48  ;;  %v1455_v20 = vmul.f32 %v3983_v23, %v2795_v9  ;;  %v4000_v22 = vadd.f32 %v3951_v30, %v1402_v58 }
  0xd8   :  { %v4003_v13 = vadd.f32 %v3951_v30, %v1403_v33  ;;  %v1448_v5 = vadd.f32 %v1444_v60, %v1438_v46  ;;  %v1449_v41 = vadd.f32 %v1445_v16, %v1439_v52  ;;  %v4008_v31 = vstv %s3925_s17  ;;  %s4177_s17 = sld [smem:[#allocation8 + $0x18]] }
  0xd9   :  { %6950 = vst [vmem:[#allocation145_spill] sm:$0xff] %v4000_v22  ;;  %6952 = vst [vmem:[#allocation147_spill] sm:$0xff] %v4008_v31  ;;  %v4011_v48 = vstv %s3931_s2  ;;  %v4014_v17 = vstv %s3937_s3  ;;  %v4017_v49 = vstv %s3945_s18  ;;  %v6509_v58 = vmax.f32 %v4000_v22, 0.0  ;;  %s4185_s2 = sld [smem:[#allocation2 + $0x64]] }
  0xda   :  { %6951 = vst [vmem:[#allocation146_spill] sm:$0xff] %v4003_v13  ;;  %6953 = vst [vmem:[#allocation148_spill] sm:$0xff] %v4011_v48  ;;  %v6510_v23 = vmax.f32 %v4003_v13, 0.0  ;;  %v1458_v33 = vadd.f32 %v1454_v59, %v1448_v5  ;;  %v1459_v30 = vadd.f32 %v1455_v20, %v1449_v41  ;;  %v1464_v60 = vmul.f32 %v4008_v31, %v2799_v10  ;;  %s4201_s3 = sld [smem:[#allocation2 + $0x65]] }
  0xdb   :  { %6954 = vst [vmem:[#allocation149_spill] sm:$0xff] %v4014_v17  ;;  %6955 = vst [vmem:[#allocation150_spill] sm:$0xff] %v4017_v49  ;;  %v1465_v16 = vmul.f32 %v4008_v31, %v2801_v11  ;;  %v1504_v46 = vmul.f32 %v4017_v49, %v2785_v3  ;;  %v1505_v52 = vmul.f32 %v4017_v49, %v2787_v4  ;;  %v4040_v20 = vstv %s3961_s19  ;;  %s4211_s18 = sld [smem:[#allocation2 + $0x66]] }
  0xdc   :  { %v1418_v59 = vmul.f32 %v3954_v40, %v6509_v58  ;;  %v1419_v41 = vmul.f32 %v3954_v40, %v6510_v23  ;;  %6956 = vst [vmem:[#allocation151_spill] sm:$0xff] %v4040_v20  ;;  %v4043_v5 = vstv %s3971_s22  ;;  %v1468_v31 = vadd.f32 %v1464_v60, %v1458_v33  ;;  %s4225_s19 = sld [smem:[#allocation2 + $0x67]] }
  0xdd   :  { %6957 = vst [vmem:[#allocation152_spill] sm:$0xff] %v4043_v5  ;;  %v1469_v49 = vadd.f32 %v1465_v16, %v1459_v30  ;;  %v1510_v22 = vmul.f32 %v4040_v20, %v2789_v6  ;;  %v1511_v58 = vmul.f32 %v4040_v20, %v2791_v7  ;;  %v1520_v40 = vmul.f32 %v4043_v5, %v2793_v8  ;;  %s4231_s22 = sld [smem:[#allocation6 + $0x19]] }
  0xde   :  { %v1422_v23 = vadd.f32 %v1418_v59, %v1356_v44  ;;  %v1423_v13 = vadd.f32 %v1419_v41, %v1357_v24  ;;  %v1521_v33 = vmul.f32 %v4043_v5, %v2795_v9  ;;  %v4060_v30 = vadd.f32 %v4011_v48, %v1468_v31 }
  0xdf   :  { %v4063_v60 = vadd.f32 %v4011_v48, %v1469_v49  ;;  %v1514_v16 = vadd.f32 %v1510_v22, %v1504_v46  ;;  %v1515_v20 = vadd.f32 %v1511_v58, %v1505_v52  ;;  %v4068_v44 = vstv %s3985_s23  ;;  %s4237_s23 = sld [smem:[#allocation8 + $0x19]] }
  0xe0   :  { %6958 = vst [vmem:[#allocation153_spill] sm:$0xff] %v4060_v30  ;;  %6960 = vst [vmem:[#allocation155_spill] sm:$0xff] %v4068_v44  ;;  %v4071_v24 = vstv %s3991_s24  ;;  %v4074_v59 = vstv %s3997_s25  ;;  %v4077_v41 = vstv %s4005_s26  ;;  %v6525_v31 = vmax.f32 %v4060_v30, 0.0  ;;  %s4245_s24 = sld [smem:[#allocation2 + $0x68]] }
  0xe1   :  { %6959 = vst [vmem:[#allocation154_spill] sm:$0xff] %v4063_v60  ;;  %6961 = vst [vmem:[#allocation156_spill] sm:$0xff] %v4071_v24  ;;  %v6526_v5 = vmax.f32 %v4063_v60, 0.0  ;;  %v1524_v49 = vadd.f32 %v1520_v40, %v1514_v16  ;;  %v1525_v48 = vadd.f32 %v1521_v33, %v1515_v20  ;;  %v1530_v22 = vmul.f32 %v4068_v44, %v2799_v10  ;;  %s4261_s25 = sld [smem:[#allocation2 + $0x69]] }
  0xe2   :  { %6962 = vst [vmem:[#allocation157_spill] sm:$0xff] %v4074_v59  ;;  %6963 = vst [vmem:[#allocation158_spill] sm:$0xff] %v4077_v41  ;;  %v1531_v58 = vmul.f32 %v4068_v44, %v2801_v11  ;;  %v1570_v46 = vmul.f32 %v4077_v41, %v2785_v3  ;;  %v1571_v52 = vmul.f32 %v4077_v41, %v2787_v4  ;;  %v4100_v33 = vstv %s4021_s4  ;;  %s4271_s26 = sld [smem:[#allocation2 + $0x6a]] }
  0xe3   :  { %v1484_v40 = vmul.f32 %v4014_v17, %v6525_v31  ;;  %v1485_v20 = vmul.f32 %v4014_v17, %v6526_v5  ;;  %6964 = vst [vmem:[#allocation159_spill] sm:$0xff] %v4100_v33  ;;  %v4103_v16 = vstv %s4031_s27  ;;  %v1534_v44 = vadd.f32 %v1530_v22, %v1524_v49  ;;  %s4285_s4 = sld [smem:[#allocation2 + $0x6b]] }
  0xe4   :  { %6965 = vst [vmem:[#allocation160_spill] sm:$0xff] %v4103_v16  ;;  %v1535_v41 = vadd.f32 %v1531_v58, %v1525_v48  ;;  %v1576_v30 = vmul.f32 %v4100_v33, %v2789_v6  ;;  %v1577_v31 = vmul.f32 %v4100_v33, %v2791_v7  ;;  %v1586_v17 = vmul.f32 %v4103_v16, %v2793_v8  ;;  %s4291_s27 = sld [smem:[#allocation6 + $0x1a]] }
  0xe5   :  { %v1488_v5 = vadd.f32 %v1484_v40, %v1422_v23  ;;  %v1489_v60 = vadd.f32 %v1485_v20, %v1423_v13  ;;  %v1587_v49 = vmul.f32 %v4103_v16, %v2795_v9  ;;  %v4120_v48 = vadd.f32 %v4071_v24, %v1534_v44 }
  0xe6   :  { %v4123_v22 = vadd.f32 %v4071_v24, %v1535_v41  ;;  %v1580_v58 = vadd.f32 %v1576_v30, %v1570_v46  ;;  %v1581_v33 = vadd.f32 %v1577_v31, %v1571_v52  ;;  %v4128_v23 = vstv %s4045_s28  ;;  %s4297_s28 = sld [smem:[#allocation8 + $0x1a]] }
  0xe7   :  { %6966 = vst [vmem:[#allocation161_spill] sm:$0xff] %v4120_v48  ;;  %6968 = vst [vmem:[#allocation163_spill] sm:$0xff] %v4128_v23  ;;  %v4131_v13 = vstv %s4051_s29  ;;  %v4134_v40 = vstv %s4057_s30  ;;  %v4137_v20 = vstv %s4065_s8  ;;  %v6541_v44 = vmax.f32 %v4120_v48, 0.0  ;;  %s4305_s29 = sld [smem:[#allocation2 + $0x6c]] }
  0xe8   :  { %6967 = vst [vmem:[#allocation162_spill] sm:$0xff] %v4123_v22  ;;  %6969 = vst [vmem:[#allocation164_spill] sm:$0xff] %v4131_v13  ;;  %v6542_v16 = vmax.f32 %v4123_v22, 0.0  ;;  %v1590_v41 = vadd.f32 %v1586_v17, %v1580_v58  ;;  %v1591_v24 = vadd.f32 %v1587_v49, %v1581_v33  ;;  %v1596_v30 = vmul.f32 %v4128_v23, %v2799_v10  ;;  %s4321_s30 = sld [smem:[#allocation2 + $0x6d]] }
  0xe9   :  { %6970 = vst [vmem:[#allocation165_spill] sm:$0xff] %v4134_v40  ;;  %6971 = vst [vmem:[#allocation166_spill] sm:$0xff] %v4137_v20  ;;  %v1597_v31 = vmul.f32 %v4128_v23, %v2801_v11  ;;  %v1636_v46 = vmul.f32 %v4137_v20, %v2785_v3  ;;  %v1637_v52 = vmul.f32 %v4137_v20, %v2787_v4  ;;  %v4160_v49 = vstv %s4081_s9  ;;  %s4331_s8 = sld [smem:[#allocation2 + $0x6e]] }
  0xea   :  { %v1550_v17 = vmul.f32 %v4074_v59, %v6541_v44  ;;  %v1551_v33 = vmul.f32 %v4074_v59, %v6542_v16  ;;  %6972 = vst [vmem:[#allocation167_spill] sm:$0xff] %v4160_v49  ;;  %v4163_v58 = vstv %s4091_s1  ;;  %v1600_v23 = vadd.f32 %v1596_v30, %v1590_v41  ;;  %s4345_s9 = sld [smem:[#allocation2 + $0x6f]] }
  0xeb   :  { %6973 = vst [vmem:[#allocation168_spill] sm:$0xff] %v4163_v58  ;;  %v1601_v20 = vadd.f32 %v1597_v31, %v1591_v24  ;;  %v1642_v48 = vmul.f32 %v4160_v49, %v2789_v6  ;;  %v1643_v44 = vmul.f32 %v4160_v49, %v2791_v7  ;;  %v1652_v59 = vmul.f32 %v4163_v58, %v2793_v8  ;;  %s4351_s1 = sld [smem:[#allocation6 + $0x1b]] }
  0xec   :  { %v1554_v16 = vadd.f32 %v1550_v17, %v1488_v5  ;;  %v1555_v22 = vadd.f32 %v1551_v33, %v1489_v60  ;;  %v1653_v41 = vmul.f32 %v4163_v58, %v2795_v9  ;;  %v4180_v24 = vadd.f32 %v4131_v13, %v1600_v23 }
  0xed   :  { %v4183_v30 = vadd.f32 %v4131_v13, %v1601_v20  ;;  %v1646_v31 = vadd.f32 %v1642_v48, %v1636_v46  ;;  %v1647_v49 = vadd.f32 %v1643_v44, %v1637_v52  ;;  %v4188_v5 = vstv %s4105_s0  ;;  %s4357_s0 = sld [smem:[#allocation8 + $0x1b]] }
  0xee   :  { %6974 = vst [vmem:[#allocation169_spill] sm:$0xff] %v4180_v24  ;;  %6976 = vst [vmem:[#allocation171_spill] sm:$0xff] %v4188_v5  ;;  %v4191_v60 = vstv %s4111_s10  ;;  %v4194_v17 = vstv %s4117_s11  ;;  %v4197_v33 = vstv %s4125_s12  ;;  %v6557_v23 = vmax.f32 %v4180_v24, 0.0  ;;  %s4365_s10 = sld [smem:[#allocation2 + $0x70]] }
  0xef   :  { %6975 = vst [vmem:[#allocation170_spill] sm:$0xff] %v4183_v30  ;;  %6977 = vst [vmem:[#allocation172_spill] sm:$0xff] %v4191_v60  ;;  %v6558_v58 = vmax.f32 %v4183_v30, 0.0  ;;  %v1656_v20 = vadd.f32 %v1652_v59, %v1646_v31  ;;  %v1657_v13 = vadd.f32 %v1653_v41, %v1647_v49  ;;  %v1662_v48 = vmul.f32 %v4188_v5, %v2799_v10  ;;  %s4381_s11 = sld [smem:[#allocation2 + $0x71]] }
  0xf0   :  { %6978 = vst [vmem:[#allocation173_spill] sm:$0xff] %v4194_v17  ;;  %6979 = vst [vmem:[#allocation174_spill] sm:$0xff] %v4197_v33  ;;  %v1663_v44 = vmul.f32 %v4188_v5, %v2801_v11  ;;  %v1702_v46 = vmul.f32 %v4197_v33, %v2785_v3  ;;  %v1703_v52 = vmul.f32 %v4197_v33, %v2787_v4  ;;  %v4220_v41 = vstv %s4141_s13  ;;  %s4391_s12 = sld [smem:[#allocation2 + $0x72]] }
  0xf1   :  { %v1616_v59 = vmul.f32 %v4134_v40, %v6557_v23  ;;  %v1617_v49 = vmul.f32 %v4134_v40, %v6558_v58  ;;  %6980 = vst [vmem:[#allocation175_spill] sm:$0xff] %v4220_v41  ;;  %v4223_v31 = vstv %s4151_s14  ;;  %v1666_v5 = vadd.f32 %v1662_v48, %v1656_v20  ;;  %s4405_s13 = sld [smem:[#allocation2 + $0x73]] }
  0xf2   :  { %6981 = vst [vmem:[#allocation176_spill] sm:$0xff] %v4223_v31  ;;  %v1667_v33 = vadd.f32 %v1663_v44, %v1657_v13  ;;  %v1708_v24 = vmul.f32 %v4220_v41, %v2789_v6  ;;  %v1709_v23 = vmul.f32 %v4220_v41, %v2791_v7  ;;  %v1718_v40 = vmul.f32 %v4223_v31, %v2793_v8  ;;  %s4411_s14 = sld [smem:[#allocation6 + $0x1c]] }
  0xf3   :  { %v1620_v58 = vadd.f32 %v1616_v59, %v1554_v16  ;;  %v1621_v30 = vadd.f32 %v1617_v49, %v1555_v22  ;;  %v1719_v20 = vmul.f32 %v4223_v31, %v2795_v9  ;;  %v4240_v13 = vadd.f32 %v4191_v60, %v1666_v5 }
  0xf4   :  { %v4243_v48 = vadd.f32 %v4191_v60, %v1667_v33  ;;  %v1712_v44 = vadd.f32 %v1708_v24, %v1702_v46  ;;  %v1713_v41 = vadd.f32 %v1709_v23, %v1703_v52  ;;  %v4248_v16 = vstv %s4165_s15  ;;  %s4417_s15 = sld [smem:[#allocation8 + $0x1c]] }
  0xf5   :  { %6982 = vst [vmem:[#allocation177_spill] sm:$0xff] %v4240_v13  ;;  %6984 = vst [vmem:[#allocation179_spill] sm:$0xff] %v4248_v16  ;;  %v4251_v22 = vstv %s4171_s16  ;;  %v4254_v59 = vstv %s4177_s17  ;;  %v4257_v49 = vstv %s4185_s2  ;;  %v6573_v5 = vmax.f32 %v4240_v13, 0.0  ;;  %s4425_s16 = sld [smem:[#allocation2 + $0x74]] }
  0xf6   :  { %6983 = vst [vmem:[#allocation178_spill] sm:$0xff] %v4243_v48  ;;  %6985 = vst [vmem:[#allocation180_spill] sm:$0xff] %v4251_v22  ;;  %v6574_v31 = vmax.f32 %v4243_v48, 0.0  ;;  %v1722_v33 = vadd.f32 %v1718_v40, %v1712_v44  ;;  %v1723_v60 = vadd.f32 %v1719_v20, %v1713_v41  ;;  %v1728_v24 = vmul.f32 %v4248_v16, %v2799_v10  ;;  %s4441_s17 = sld [smem:[#allocation2 + $0x75]] }
  0xf7   :  { %6986 = vst [vmem:[#allocation181_spill] sm:$0xff] %v4254_v59  ;;  %6987 = vst [vmem:[#allocation182_spill] sm:$0xff] %v4257_v49  ;;  %v1729_v23 = vmul.f32 %v4248_v16, %v2801_v11  ;;  %v1768_v46 = vmul.f32 %v4257_v49, %v2785_v3  ;;  %v1769_v52 = vmul.f32 %v4257_v49, %v2787_v4  ;;  %v4280_v20 = vstv %s4201_s3  ;;  %s4451_s2 = sld [smem:[#allocation2 + $0x76]] }
  0xf8   :  { %v1682_v40 = vmul.f32 %v4194_v17, %v6573_v5  ;;  %v1683_v41 = vmul.f32 %v4194_v17, %v6574_v31  ;;  %6988 = vst [vmem:[#allocation183_spill] sm:$0xff] %v4280_v20  ;;  %v4283_v44 = vstv %s4211_s18  ;;  %v1732_v16 = vadd.f32 %v1728_v24, %v1722_v33  ;;  %s4465_s3 = sld [smem:[#allocation2 + $0x77]] }
  0xf9   :  { %6989 = vst [vmem:[#allocation184_spill] sm:$0xff] %v4283_v44  ;;  %v1733_v49 = vadd.f32 %v1729_v23, %v1723_v60  ;;  %v1774_v13 = vmul.f32 %v4280_v20, %v2789_v6  ;;  %v1775_v5 = vmul.f32 %v4280_v20, %v2791_v7  ;;  %v1784_v17 = vmul.f32 %v4283_v44, %v2793_v8  ;;  %s4471_s18 = sld [smem:[#allocation6 + $0x1d]] }
  0xfa   :  { %v1686_v31 = vadd.f32 %v1682_v40, %v1620_v58  ;;  %v1687_v48 = vadd.f32 %v1683_v41, %v1621_v30  ;;  %v1785_v33 = vmul.f32 %v4283_v44, %v2795_v9  ;;  %v4300_v60 = vadd.f32 %v4251_v22, %v1732_v16 }
  0xfb   :  { %v4303_v24 = vadd.f32 %v4251_v22, %v1733_v49  ;;  %v1778_v23 = vadd.f32 %v1774_v13, %v1768_v46  ;;  %v1779_v20 = vadd.f32 %v1775_v5, %v1769_v52  ;;  %v4308_v58 = vstv %s4225_s19  ;;  %s4477_s19 = sld [smem:[#allocation8 + $0x1d]] }
  0xfc   :  { %6990 = vst [vmem:[#allocation185_spill] sm:$0xff] %v4300_v60  ;;  %6992 = vst [vmem:[#allocation187_spill] sm:$0xff] %v4308_v58  ;;  %v4311_v30 = vstv %s4231_s22  ;;  %v4314_v40 = vstv %s4237_s23  ;;  %v4317_v41 = vstv %s4245_s24  ;;  %v6589_v16 = vmax.f32 %v4300_v60, 0.0  ;;  %s4485_s22 = sld [smem:[#allocation2 + $0x78]] }
  0xfd   :  { %6991 = vst [vmem:[#allocation186_spill] sm:$0xff] %v4303_v24  ;;  %6993 = vst [vmem:[#allocation188_spill] sm:$0xff] %v4311_v30  ;;  %v6590_v44 = vmax.f32 %v4303_v24, 0.0  ;;  %v1788_v49 = vadd.f32 %v1784_v17, %v1778_v23  ;;  %v1789_v22 = vadd.f32 %v1785_v33, %v1779_v20  ;;  %v1794_v13 = vmul.f32 %v4308_v58, %v2799_v10  ;;  %s4501_s23 = sld [smem:[#allocation2 + $0x79]] }
  0xfe   :  { %6994 = vst [vmem:[#allocation189_spill] sm:$0xff] %v4314_v40  ;;  %6995 = vst [vmem:[#allocation190_spill] sm:$0xff] %v4317_v41  ;;  %v1795_v5 = vmul.f32 %v4308_v58, %v2801_v11  ;;  %v1834_v46 = vmul.f32 %v4317_v41, %v2785_v3  ;;  %v1835_v52 = vmul.f32 %v4317_v41, %v2787_v4  ;;  %v4340_v33 = vstv %s4261_s25  ;;  %s4511_s24 = sld [smem:[#allocation2 + $0x7a]] }
  0xff   :  { %v1748_v17 = vmul.f32 %v4254_v59, %v6589_v16  ;;  %v1749_v20 = vmul.f32 %v4254_v59, %v6590_v44  ;;  %6996 = vst [vmem:[#allocation191_spill] sm:$0xff] %v4340_v33  ;;  %v4343_v23 = vstv %s4271_s26  ;;  %v1798_v58 = vadd.f32 %v1794_v13, %v1788_v49  ;;  %s4525_s25 = sld [smem:[#allocation2 + $0x7b]] }
 0x100   :  { %6997 = vst [vmem:[#allocation192_spill] sm:$0xff] %v4343_v23  ;;  %v1799_v41 = vadd.f32 %v1795_v5, %v1789_v22  ;;  %v1840_v60 = vmul.f32 %v4340_v33, %v2789_v6  ;;  %v1841_v16 = vmul.f32 %v4340_v33, %v2791_v7  ;;  %v1850_v59 = vmul.f32 %v4343_v23, %v2793_v8  ;;  %s4531_s26 = sld [smem:[#allocation6 + $0x1e]] }
 0x101   :  { %v1752_v44 = vadd.f32 %v1748_v17, %v1686_v31  ;;  %v1753_v24 = vadd.f32 %v1749_v20, %v1687_v48  ;;  %v1851_v49 = vmul.f32 %v4343_v23, %v2795_v9  ;;  %v4360_v22 = vadd.f32 %v4311_v30, %v1798_v58 }
 0x102   :  { %v4363_v13 = vadd.f32 %v4311_v30, %v1799_v41  ;;  %v1844_v5 = vadd.f32 %v1840_v60, %v1834_v46  ;;  %v1845_v33 = vadd.f32 %v1841_v16, %v1835_v52  ;;  %v4368_v31 = vstv %s4285_s4  ;;  %s4537_s4 = sld [smem:[#allocation8 + $0x1e]] }
 0x103   :  { %6998 = vst [vmem:[#allocation193_spill] sm:$0xff] %v4360_v22  ;;  %7000 = vst [vmem:[#allocation195_spill] sm:$0xff] %v4368_v31  ;;  %v4371_v48 = vstv %s4291_s27  ;;  %v4374_v17 = vstv %s4297_s28  ;;  %v4377_v20 = vstv %s4305_s29  ;;  %v6605_v58 = vmax.f32 %v4360_v22, 0.0  ;;  %s4545_s27 = sld [smem:[#allocation2 + $0x7c]] }
 0x104   :  { %6999 = vst [vmem:[#allocation194_spill] sm:$0xff] %v4363_v13  ;;  %7001 = vst [vmem:[#allocation196_spill] sm:$0xff] %v4371_v48  ;;  %v6606_v23 = vmax.f32 %v4363_v13, 0.0  ;;  %v1854_v41 = vadd.f32 %v1850_v59, %v1844_v5  ;;  %v1855_v30 = vadd.f32 %v1851_v49, %v1845_v33  ;;  %v1860_v60 = vmul.f32 %v4368_v31, %v2799_v10  ;;  %s4561_s28 = sld [smem:[#allocation2 + $0x7d]] }
 0x105   :  { %7002 = vst [vmem:[#allocation197_spill] sm:$0xff] %v4374_v17  ;;  %7003 = vst [vmem:[#allocation198_spill] sm:$0xff] %v4377_v20  ;;  %v1861_v16 = vmul.f32 %v4368_v31, %v2801_v11  ;;  %v1900_v46 = vmul.f32 %v4377_v20, %v2785_v3  ;;  %v1901_v52 = vmul.f32 %v4377_v20, %v2787_v4  ;;  %v4400_v49 = vstv %s4321_s30  ;;  %s4571_s29 = sld [smem:[#allocation2 + $0x7e]] }
 0x106   :  { %v1814_v59 = vmul.f32 %v4314_v40, %v6605_v58  ;;  %v1815_v33 = vmul.f32 %v4314_v40, %v6606_v23  ;;  %7004 = vst [vmem:[#allocation199_spill] sm:$0xff] %v4400_v49  ;;  %v4403_v5 = vstv %s4331_s8  ;;  %v1864_v31 = vadd.f32 %v1860_v60, %v1854_v41  ;;  %s4585_s30 = sld [smem:[#allocation2 + $0x7f]] }
 0x107   :  { %7005 = vst [vmem:[#allocation200_spill] sm:$0xff] %v4403_v5  ;;  %v1865_v20 = vadd.f32 %v1861_v16, %v1855_v30  ;;  %v1906_v22 = vmul.f32 %v4400_v49, %v2789_v6  ;;  %v1907_v58 = vmul.f32 %v4400_v49, %v2791_v7  ;;  %v1916_v40 = vmul.f32 %v4403_v5, %v2793_v8  ;;  %s4591_s8 = sld [smem:[#allocation6 + $0x1f]] }
 0x108   :  { %v1818_v23 = vadd.f32 %v1814_v59, %v1752_v44  ;;  %v1819_v13 = vadd.f32 %v1815_v33, %v1753_v24  ;;  %v1917_v41 = vmul.f32 %v4403_v5, %v2795_v9  ;;  %v4420_v30 = vadd.f32 %v4371_v48, %v1864_v31 }
 0x109   :  { %v4423_v60 = vadd.f32 %v4371_v48, %v1865_v20  ;;  %v1910_v16 = vadd.f32 %v1906_v22, %v1900_v46  ;;  %v1911_v49 = vadd.f32 %v1907_v58, %v1901_v52  ;;  %v4428_v44 = vstv %s4345_s9  ;;  %s4597_s9 = sld [smem:[#allocation8 + $0x1f]] }
 0x10a   :  { %7006 = vst [vmem:[#allocation201_spill] sm:$0xff] %v4420_v30  ;;  %7008 = vst [vmem:[#allocation203_spill] sm:$0xff] %v4428_v44  ;;  %v4431_v24 = vstv %s4351_s1  ;;  %v4434_v59 = vstv %s4357_s0  ;;  %v4437_v33 = vstv %s4365_s10  ;;  %v6621_v31 = vmax.f32 %v4420_v30, 0.0  ;;  %s4605_s1 = sld [smem:[#allocation9]] }
 0x10b   :  { %7007 = vst [vmem:[#allocation202_spill] sm:$0xff] %v4423_v60  ;;  %7009 = vst [vmem:[#allocation204_spill] sm:$0xff] %v4431_v24  ;;  %v6622_v5 = vmax.f32 %v4423_v60, 0.0  ;;  %v1920_v20 = vadd.f32 %v1916_v40, %v1910_v16  ;;  %v1921_v48 = vadd.f32 %v1917_v41, %v1911_v49  ;;  %v1926_v22 = vmul.f32 %v4428_v44, %v2799_v10  ;;  %s5618_s0 = sld [smem:[#allocation8 + $0x20]] }
 0x10c   :  { %7010 = vst [vmem:[#allocation205_spill] sm:$0xff] %v4434_v59  ;;  %7011 = vst [vmem:[#allocation206_spill] sm:$0xff] %v4437_v33  ;;  %v1927_v58 = vmul.f32 %v4428_v44, %v2801_v11  ;;  %v1966_v46 = vmul.f32 %v4437_v33, %v2785_v3  ;;  %v1967_v52 = vmul.f32 %v4437_v33, %v2787_v4  ;;  %v4460_v41 = vstv %s4381_s11  ;;  %s5625_s10 = sld [smem:[#allocation8 + $0x21]] }
 0x10d   :  { %v1880_v40 = vmul.f32 %v4374_v17, %v6621_v31  ;;  %v1881_v49 = vmul.f32 %v4374_v17, %v6622_v5  ;;  %7012 = vst [vmem:[#allocation207_spill] sm:$0xff] %v4460_v41  ;;  %v4463_v16 = vstv %s4391_s12  ;;  %v1930_v44 = vadd.f32 %v1926_v22, %v1920_v20  ;;  %s5630_s11 = sld [smem:[#allocation8 + $0x22]] }
 0x10e   :  { %7013 = vst [vmem:[#allocation208_spill] sm:$0xff] %v4463_v16  ;;  %v1931_v33 = vadd.f32 %v1927_v58, %v1921_v48  ;;  %v1972_v30 = vmul.f32 %v4460_v41, %v2789_v6  ;;  %v1973_v31 = vmul.f32 %v4460_v41, %v2791_v7  ;;  %v1982_v17 = vmul.f32 %v4463_v16, %v2793_v8  ;;  %s5639_s12 = sld [smem:[#allocation8 + $0x23]] }
 0x10f   :  { %v1884_v5 = vadd.f32 %v1880_v40, %v1818_v23  ;;  %v1885_v60 = vadd.f32 %v1881_v49, %v1819_v13  ;;  %v1983_v20 = vmul.f32 %v4463_v16, %v2795_v9  ;;  %v4480_v48 = vadd.f32 %v4431_v24, %v1930_v44 }
 0x110   :  { %v4483_v22 = vadd.f32 %v4431_v24, %v1931_v33  ;;  %v1976_v58 = vadd.f32 %v1972_v30, %v1966_v46  ;;  %v1977_v41 = vadd.f32 %v1973_v31, %v1967_v52  ;;  %v4488_v23 = vstv %s4405_s13  ;;  %s5659_s13 = sld [smem:[#allocation8 + $0x24]] }
 0x111   :  { %7014 = vst [vmem:[#allocation209_spill] sm:$0xff] %v4480_v48  ;;  %7016 = vst [vmem:[#allocation211_spill] sm:$0xff] %v4488_v23  ;;  %v4491_v13 = vstv %s4411_s14  ;;  %v4494_v40 = vstv %s4417_s15  ;;  %v4497_v49 = vstv %s4425_s16  ;;  %v6637_v44 = vmax.f32 %v4480_v48, 0.0  ;;  %s5665_s14 = sld [smem:[#allocation8 + $0x25]] }
 0x112   :  { %7015 = vst [vmem:[#allocation210_spill] sm:$0xff] %v4483_v22  ;;  %7017 = vst [vmem:[#allocation212_spill] sm:$0xff] %v4491_v13  ;;  %v6638_v16 = vmax.f32 %v4483_v22, 0.0  ;;  %v1986_v33 = vadd.f32 %v1982_v17, %v1976_v58  ;;  %v1987_v24 = vadd.f32 %v1983_v20, %v1977_v41  ;;  %v1992_v30 = vmul.f32 %v4488_v23, %v2799_v10  ;;  %s5672_s15 = sld [smem:[#allocation8 + $0x26]] }
 0x113   :  { %7018 = vst [vmem:[#allocation213_spill] sm:$0xff] %v4494_v40  ;;  %7019 = vst [vmem:[#allocation214_spill] sm:$0xff] %v4497_v49  ;;  %v1993_v31 = vmul.f32 %v4488_v23, %v2801_v11  ;;  %v2032_v46 = vmul.f32 %v4497_v49, %v2785_v3  ;;  %v2033_v52 = vmul.f32 %v4497_v49, %v2787_v4  ;;  %v4520_v20 = vstv %s4441_s17  ;;  %s5704_s16 = sld [smem:[#allocation8 + $0x27]] }
 0x114   :  { %v1946_v17 = vmul.f32 %v4434_v59, %v6637_v44  ;;  %v1947_v41 = vmul.f32 %v4434_v59, %v6638_v16  ;;  %7020 = vst [vmem:[#allocation215_spill] sm:$0xff] %v4520_v20  ;;  %v4523_v58 = vstv %s4451_s2  ;;  %v1996_v23 = vadd.f32 %v1992_v30, %v1986_v33  ;;  %s5709_s17 = sld [smem:[#allocation8 + $0x28]] }
 0x115   :  { %7021 = vst [vmem:[#allocation216_spill] sm:$0xff] %v4523_v58  ;;  %v1997_v49 = vadd.f32 %v1993_v31, %v1987_v24  ;;  %v2038_v48 = vmul.f32 %v4520_v20, %v2789_v6  ;;  %v2039_v44 = vmul.f32 %v4520_v20, %v2791_v7  ;;  %v2048_v59 = vmul.f32 %v4523_v58, %v2793_v8  ;;  %s5728_s2 = sld [smem:[#allocation8 + $0x29]] }
 0x116   :  { %v1950_v16 = vadd.f32 %v1946_v17, %v1884_v5  ;;  %v1951_v22 = vadd.f32 %v1947_v41, %v1885_v60  ;;  %v2049_v33 = vmul.f32 %v4523_v58, %v2795_v9  ;;  %v4540_v24 = vadd.f32 %v4491_v13, %v1996_v23 }
 0x117   :  { %v4543_v30 = vadd.f32 %v4491_v13, %v1997_v49  ;;  %v2042_v31 = vadd.f32 %v2038_v48, %v2032_v46  ;;  %v2043_v20 = vadd.f32 %v2039_v44, %v2033_v52  ;;  %v4548_v5 = vstv %s4465_s3  ;;  %s5736_s3 = sld [smem:[#allocation8 + $0x2a]] }
 0x118   :  { %7022 = vst [vmem:[#allocation217_spill] sm:$0xff] %v4540_v24  ;;  %7024 = vst [vmem:[#allocation219_spill] sm:$0xff] %v4548_v5  ;;  %v4551_v60 = vstv %s4471_s18  ;;  %v4554_v17 = vstv %s4477_s19  ;;  %v4557_v41 = vstv %s4485_s22  ;;  %v6653_v23 = vmax.f32 %v4540_v24, 0.0  ;;  %s2454_s18 = sld [smem:[#allocation8 + $0x2b]] }
 0x119   :  { %7023 = vst [vmem:[#allocation218_spill] sm:$0xff] %v4543_v30  ;;  %7025 = vst [vmem:[#allocation220_spill] sm:$0xff] %v4551_v60  ;;  %v6654_v58 = vmax.f32 %v4543_v30, 0.0  ;;  %v2052_v49 = vadd.f32 %v2048_v59, %v2042_v31  ;;  %v2053_v13 = vadd.f32 %v2049_v33, %v2043_v20  ;;  %v2058_v48 = vmul.f32 %v4548_v5, %v2799_v10  ;;  %s2461_s19 = sld [smem:[#allocation8 + $0x2c]] }
 0x11a   :  { %7026 = vst [vmem:[#allocation221_spill] sm:$0xff] %v4554_v17  ;;  %7027 = vst [vmem:[#allocation222_spill] sm:$0xff] %v4557_v41  ;;  %v2059_v44 = vmul.f32 %v4548_v5, %v2801_v11  ;;  %v2098_v46 = vmul.f32 %v4557_v41, %v2785_v3  ;;  %v2099_v52 = vmul.f32 %v4557_v41, %v2787_v4  ;;  %v4580_v33 = vstv %s4501_s23  ;;  %s2468_s22 = sld [smem:[#allocation8 + $0x2d]] }
 0x11b   :  { %v2012_v59 = vmul.f32 %v4494_v40, %v6653_v23  ;;  %v2013_v20 = vmul.f32 %v4494_v40, %v6654_v58  ;;  %7028 = vst [vmem:[#allocation223_spill] sm:$0xff] %v4580_v33  ;;  %v4583_v31 = vstv %s4511_s24  ;;  %v2062_v5 = vadd.f32 %v2058_v48, %v2052_v49  ;;  %s2475_s23 = sld [smem:[#allocation8 + $0x2e]] }
 0x11c   :  { %7029 = vst [vmem:[#allocation224_spill] sm:$0xff] %v4583_v31  ;;  %v2063_v41 = vadd.f32 %v2059_v44, %v2053_v13  ;;  %v2104_v24 = vmul.f32 %v4580_v33, %v2789_v6  ;;  %v2105_v23 = vmul.f32 %v4580_v33, %v2791_v7  ;;  %v2114_v40 = vmul.f32 %v4583_v31, %v2793_v8  ;;  %s2482_s24 = sld [smem:[#allocation8 + $0x2f]] }
 0x11d   :  { %v2016_v58 = vadd.f32 %v2012_v59, %v1950_v16  ;;  %v2017_v30 = vadd.f32 %v2013_v20, %v1951_v22  ;;  %v2115_v49 = vmul.f32 %v4583_v31, %v2795_v9  ;;  %v4600_v13 = vadd.f32 %v4551_v60, %v2062_v5 }
 0x11e   :  { %v4603_v48 = vadd.f32 %v4551_v60, %v2063_v41  ;;  %v2108_v44 = vadd.f32 %v2104_v24, %v2098_v46  ;;  %v2109_v33 = vadd.f32 %v2105_v23, %v2099_v52  ;;  %v4608_v16 = vstv %s4525_s25  ;;  %s5805_s25 = sld [smem:[#allocation8 + $0x30]] }
 0x11f   :  { %7030 = vst [vmem:[#allocation225_spill] sm:$0xff] %v4600_v13  ;;  %7032 = vst [vmem:[#allocation227_spill] sm:$0xff] %v4608_v16  ;;  %v4611_v22 = vstv %s4531_s26  ;;  %v4614_v59 = vstv %s4537_s4  ;;  %v4617_v20 = vstv %s4545_s27  ;;  %v6666_v5 = vmax.f32 %v4600_v13, 0.0  ;;  %s2496_s26 = sld [smem:[#allocation8 + $0x31]] }
 0x120   :  { %7031 = vst [vmem:[#allocation226_spill] sm:$0xff] %v4603_v48  ;;  %7033 = vst [vmem:[#allocation228_spill] sm:$0xff] %v4611_v22  ;;  %v6669_v31 = vmax.f32 %v4603_v48, 0.0  ;;  %v2118_v41 = vadd.f32 %v2114_v40, %v2108_v44  ;;  %v2119_v60 = vadd.f32 %v2115_v49, %v2109_v33  ;;  %v2124_v24 = vmul.f32 %v4608_v16, %v2799_v10  ;;  %s5815_s4 = sld [smem:[#allocation8 + $0x32]] }
 0x121   :  { %7034 = vst [vmem:[#allocation229_spill] sm:$0xff] %v4617_v20  ;;  %v2125_v23 = vmul.f32 %v4608_v16, %v2801_v11  ;;  %v2164_v46 = vmul.f32 %v4617_v20, %v2785_v3  ;;  %v2165_v52 = vmul.f32 %v4617_v20, %v2787_v4  ;;  %v2078_v45 = vmul.f32 %v4554_v17, %v6666_v5  ;;  %s5822_s27 = sld [smem:[#allocation8 + $0x33]] }
 0x122   :  { %v2079_v40 = vmul.f32 %v4554_v17, %v6669_v31  ;;  %v4636_v33 = vstv %s4561_s28  ;;  %v4639_v49 = vstv %s4571_s29  ;;  %v2128_v44 = vadd.f32 %v2124_v24, %v2118_v41  ;;  %s5827_s28 = sld [smem:[#allocation8 + $0x34]] }
 0x123   :  { %7035 = vst [vmem:[#allocation230_spill] sm:$0xff] %v4636_v33  ;;  %7036 = vst [vmem:[#allocation231_spill] sm:$0xff] %v4639_v49  ;;  %v2129_v3 = vadd.f32 %v2125_v23, %v2119_v60  ;;  %v2170_v4 = vmul.f32 %v4636_v33, %v2789_v6  ;;  %v2171_v5 = vmul.f32 %v4636_v33, %v2791_v7  ;;  %v90_v6 = vld [vmem:[#allocation11 + $0x8] sm:$0xff]  ;;  %v4656_v23 = vstv %s4585_s30  ;;  %s5834_s29 = sld [smem:[#allocation8 + $0x35]] }
 0x124   :  { %v2082_v13 = vadd.f32 %v2078_v45, %v2016_v58  ;;  %v2083_v48 = vadd.f32 %v2079_v40, %v2017_v30  ;;  %v2180_v31 = vmul.f32 %v4639_v49, %v2793_v8  ;;  %v2181_v17 = vmul.f32 %v4639_v49, %v2795_v9  ;;  %7039 = vst [vmem:[#allocation234_spill] sm:$0xff] %v4656_v23  ;;  %v97_v8 = vld [vmem:[#allocation11 + $0x18] sm:$0xff]  ;;  %s5839_s30 = sld [smem:[#allocation8 + $0x36]] }
 0x125   :  { %v4650_v20 = vadd.f32 %v4611_v22, %v2128_v44  ;;  %v4653_v41 = vadd.f32 %v4611_v22, %v2129_v3  ;;  %v2174_v60 = vadd.f32 %v2170_v4, %v2164_v46  ;;  %v2175_v24 = vadd.f32 %v2171_v5, %v2165_v52  ;;  %v104_v3 = vld [vmem:[#allocation11 + $0x28] sm:$0xff]  ;;  %v111_v22 = vld [vmem:[#allocation11 + $0x38] sm:$0xff] }
 0x126   :  { %v4659_v7 = vstv %s4591_s8  ;;  %v4662_v45 = vstv %s4597_s9  ;;  %v4665_v58 = vstv %s4605_s1  ;;  %v2190_v5 = vmul.f32 %v4656_v23, %v2799_v10  ;;  %s2538_s8 = sld [smem:[#allocation8 + $0x37]] }
 0x127   :  { %7037 = vst [vmem:[#allocation232_spill] sm:$0xff] %v4650_v20  ;;  %7038 = vst [vmem:[#allocation233_spill] sm:$0xff] %v4653_v41  ;;  %v6685_v9 = vmax.f32 %v4650_v20, 0.0  ;;  %v6686_v30 = vmax.f32 %v4653_v41, 0.0  ;;  %v2184_v40 = vadd.f32 %v2180_v31, %v2174_v60  ;;  %v2185_v44 = vadd.f32 %v2181_v17, %v2175_v24  ;;  %s5860_s9 = sld [smem:[#allocation8 + $0x38]] }
 0x128   :  { %7040 = vst [vmem:[#allocation235_spill] sm:$0xff] %v4659_v7  ;;  %7041 = vst [vmem:[#allocation236_spill] sm:$0xff] %v4662_v45  ;;  %v2191_v46 = vmul.f32 %v4656_v23, %v2801_v11  ;;  %v4673_v52 = vunpack.c.l.bf16 %v90_v6  ;;  %v4675_v4 = vunpack.c.h.bf16 %v90_v6  ;;  %v4683_v31 = vunpack.c.l.bf16 %v97_v8  ;;  %s5883_s1 = sld [smem:[#allocation8 + $0x39]] }
 0x129   :  { %v2144_v49 = vmul.f32 %v4614_v59, %v6685_v9  ;;  %v2145_v17 = vmul.f32 %v4614_v59, %v6686_v30  ;;  %v4685_v60 = vunpack.c.h.bf16 %v97_v8  ;;  %v2194_v10 = vadd.f32 %v2190_v5, %v2184_v40 }
 0x12a   :  { %v2195_v24 = vadd.f32 %v2191_v46, %v2185_v44  ;;  %v4687_v11 = vunpack.c.l.bf16 %v104_v3  ;;  %v4689_v23 = vunpack.c.h.bf16 %v104_v3  ;;  %v4691_v16 = vunpack.c.l.bf16 %v111_v22 }
 0x12b   :  { %v2148_v6 = vadd.f32 %v2144_v49, %v2082_v13  ;;  %v2149_v33 = vadd.f32 %v2145_v17, %v2083_v48  ;;  %v4693_v20 = vunpack.c.h.bf16 %v111_v22  ;;  %v4696_v9 = vadd.f32 %v4659_v7, %v2194_v10 }
 0x12c   :  { %v4699_v30 = vadd.f32 %v4659_v7, %v2195_v24  ;;  %v120_v8 = vmul.f32 %v2803_v12, %v4673_v52  ;;  %v121_v40 = vmul.f32 %v2803_v12, %v4675_v4  ;;  %v126_v13 = vmul.f32 %v2809_v15, %v4683_v31 }
 0x12d   :  { %7042 = vst [vmem:[#allocation237_spill] sm:$0xff] %v4696_v9  ;;  %v127_v48 = vmul.f32 %v2809_v15, %v4685_v60  ;;  %v136_v22 = vmul.f32 %v2815_v18, %v4687_v11  ;;  %v137_v49 = vmul.f32 %v2815_v18, %v4689_v23  ;;  %v6688_v44 = vmax.f32 %v4696_v9, 0.0 }
 0x12e   :  { %7043 = vst [vmem:[#allocation238_spill] sm:$0xff] %v4699_v30  ;;  %v6693_v3 = vmax.f32 %v4699_v30, 0.0  ;;  %v146_v5 = vmul.f32 %v2821_v21, %v4691_v16  ;;  %v147_v12 = vmul.f32 %v2821_v21, %v4693_v20  ;;  %v130_v46 = vadd.f32 %v126_v13, %v120_v8 }
 0x12f   :  { %v131_v17 = vadd.f32 %v127_v48, %v121_v40  ;;  %v186_v15 = vmul.f32 %v2831_v28, %v4673_v52  ;;  %v187_v10 = vmul.f32 %v2831_v28, %v4675_v4  ;;  %v2210_v18 = vmul.f32 %v4662_v45, %v6688_v44 }
 0x130   :  { %v2211_v24 = vmul.f32 %v4662_v45, %v6693_v3  ;;  %v192_v41 = vmul.f32 %v2841_v32, %v4683_v31  ;;  %v193_v21 = vmul.f32 %v2841_v32, %v4685_v60  ;;  %v140_v8 = vadd.f32 %v136_v22, %v130_v46 }
 0x131   :  { %v141_v40 = vadd.f32 %v137_v49, %v131_v17  ;;  %v202_v13 = vmul.f32 %v2852_v38, %v4687_v11  ;;  %v203_v28 = vmul.f32 %v2852_v38, %v4689_v23  ;;  %v2214_v48 = vadd.f32 %v2210_v18, %v2148_v6 }
 0x132   :  { %v2215_v44 = vadd.f32 %v2211_v24, %v2149_v33  ;;  %v196_v9 = vadd.f32 %v192_v41, %v186_v15  ;;  %v197_v30 = vadd.f32 %v193_v21, %v187_v10  ;;  %v150_v7 = vadd.f32 %v146_v5, %v140_v8 }
 0x133   :  { %v151_v3 = vadd.f32 %v147_v12, %v141_v40  ;;  %v212_v45 = vmul.f32 %v2854_v39, %v4691_v16  ;;  %v213_v32 = vmul.f32 %v2854_v39, %v4693_v20  ;;  %v4742_v22 = vadd.f32 %v4665_v58, %v2214_v48 }
 0x134   :  { %v4745_v49 = vadd.f32 %v4665_v58, %v2215_v44  ;;  %v206_v46 = vadd.f32 %v202_v13, %v196_v9  ;;  %v207_v38 = vadd.f32 %v203_v28, %v197_v30  ;;  %v4748_v33 = vadd.f32 %v2835_v29, %v150_v7 }
 0x135   :  { %7044 = vst [vmem:[#allocation239_spill] sm:$0xff] %v4742_v22  ;;  %v4751_v41 = vadd.f32 %v2835_v29, %v151_v3  ;;  %v252_v6 = vmul.f32 %v2882_v53, %v4673_v52  ;;  %v253_v39 = vmul.f32 %v2882_v53, %v4675_v4  ;;  %v258_v9 = vmul.f32 %v2884_v54, %v4683_v31 }
 0x136   :  { %7045 = vst [vmem:[#allocation240_spill] sm:$0xff] %v4745_v49  ;;  %v2234_v5 = vmax.f32 %v4742_v22, %v4745_v49  ;;  %v216_v12 = vadd.f32 %v212_v45, %v206_v46  ;;  %v217_v44 = vadd.f32 %v213_v32, %v207_v38  ;;  %v6721_v7 = vmax.f32 %v4748_v33, 0.0 }
 0x137   :  { %v6719_v30 = vmax.f32 %v4751_v41, 0.0  ;;  %v259_v29 = vmul.f32 %v2884_v54, %v4685_v60  ;;  %v268_v3 = vmul.f32 %v2910_v0, %v4687_v11  ;;  %v262_v17 = vadd.f32 %v258_v9, %v252_v6 }
 0x138   :  { %2235 = vmax.xlane.f32.xlu0 %v2234_v5  ;;  %v4768_v53 = vadd.f32 %v2877_v50, %v216_v12  ;;  %v4771_v45 = vadd.f32 %v2877_v50, %v217_v44  ;;  %v269_v15 = vmul.f32 %v2910_v0, %v4689_v23  ;;  %v166_v10 = vmul.f32 %v2850_v37, %v6721_v7  ;;  %v7108_v7 = vld [vmem:[#allocation100_spill] sm:$0xff] }
 0x139   :  { %v167_v54 = vmul.f32 %v2850_v37, %v6719_v30  ;;  %v263_v18 = vadd.f32 %v259_v29, %v253_v39  ;;  %v278_v24 = vmul.f32 %v2913_v1, %v4691_v16  ;;  %v272_v8 = vadd.f32 %v268_v3, %v262_v17  ;;  %v7103_v30 = vld [vmem:[#allocation99_spill] sm:$0xff] }
 0x13a   :  { %v6717_v21 = vmax.f32 %v4768_v53, 0.0  ;;  %v6714_v50 = vmax.f32 %v4771_v45, 0.0  ;;  %v279_v0 = vmul.f32 %v2913_v1, %v4693_v20  ;;  %v318_v13 = vmul.f32 %v2943_v26, %v4673_v52 }
 0x13b   :  { %v273_v40 = vadd.f32 %v269_v15, %v263_v18  ;;  %v319_v28 = vmul.f32 %v2943_v26, %v4675_v4  ;;  %v324_v37 = vmul.f32 %v2960_v36, %v4683_v31  ;;  %v282_v46 = vadd.f32 %v278_v24, %v272_v8 }
 0x13c   :  { %v232_v48 = vmul.f32 %v2892_v56, %v6717_v21  ;;  %v233_v32 = vmul.f32 %v2892_v56, %v6714_v50  ;;  %v325_v1 = vmul.f32 %v2960_v36, %v4685_v60  ;;  %v334_v26 = vmul.f32 %v2963_v42, %v4687_v11 }
 0x13d   :  { %v283_v38 = vadd.f32 %v279_v0, %v273_v40  ;;  %v328_v6 = vadd.f32 %v324_v37, %v318_v13  ;;  %v335_v39 = vmul.f32 %v2963_v42, %v4689_v23  ;;  %v4806_v44 = vadd.f32 %v2915_v2, %v282_v46 }
 0x13e   :  { %v236_v5 = vadd.f32 %v232_v48, %v166_v10  ;;  %v237_v12 = vadd.f32 %v233_v32, %v167_v54  ;;  %v329_v9 = vadd.f32 %v325_v1, %v319_v28  ;;  %v344_v36 = vmul.f32 %v2988_v55, %v4691_v16 }
 0x13f   :  { %v4809_v56 = vadd.f32 %v2915_v2, %v283_v38  ;;  %v338_v29 = vadd.f32 %v334_v26, %v328_v6  ;;  %v345_v3 = vmul.f32 %v2988_v55, %v4693_v20  ;;  %v6713_v17 = vmax.f32 %v4806_v44, 0.0 }
 0x140   :  { %v339_v15 = vadd.f32 %v335_v39, %v329_v9  ;;  %v384_v42 = vmul.f32 %v2997_v14, %v4673_v52  ;;  %v385_v10 = vmul.f32 %v2997_v14, %v4675_v4  ;;  %v390_v18 = vmul.f32 %v3020_v35, %v4683_v31 }
 0x141   :  { %v6711_v54 = vmax.f32 %v4809_v56, 0.0  ;;  %v348_v2 = vadd.f32 %v344_v36, %v338_v29  ;;  %v391_v24 = vmul.f32 %v3020_v35, %v4685_v60  ;;  %v298_v55 = vmul.f32 %v2940_v25, %v6713_v17  ;;  %v7092_v17 = vld [vmem:[#allocation84_spill] sm:$0xff] }
 0x142   :  { %v349_v8 = vadd.f32 %v345_v3, %v339_v15  ;;  %v400_v0 = vmul.f32 %v3023_v43, %v4687_v11  ;;  %v401_v14 = vmul.f32 %v3023_v43, %v4689_v23  ;;  %v394_v28 = vadd.f32 %v390_v18, %v384_v42 }
 0x143   :  { %v299_v40 = vmul.f32 %v2940_v25, %v6711_v54  ;;  %v4836_v13 = vadd.f32 %v2991_v62, %v348_v2  ;;  %v395_v35 = vadd.f32 %v391_v24, %v385_v10  ;;  %v302_v37 = vadd.f32 %v298_v55, %v236_v5  ;;  %v7087_v54 = vld [vmem:[#allocation83_spill] sm:$0xff] }
 0x144   :  { %v4839_v48 = vadd.f32 %v2991_v62, %v349_v8  ;;  %v410_v32 = vmul.f32 %v3048_v47, %v4691_v16  ;;  %v411_v46 = vmul.f32 %v3048_v47, %v4693_v20  ;;  %v404_v38 = vadd.f32 %v400_v0, %v394_v28 }
 0x145   :  { %v303_v43 = vadd.f32 %v299_v40, %v237_v12  ;;  %v6709_v1 = vmax.f32 %v4836_v13, 0.0  ;;  %v405_v25 = vadd.f32 %v401_v14, %v395_v35  ;;  %v450_v26 = vmul.f32 %v3057_v34, %v4673_v52  ;;  %v7046_v40 = vld [vmem:[#allocation31_spill] sm:$0xff] }
 0x146   :  { %v6706_v6 = vmax.f32 %v4839_v48, 0.0  ;;  %v451_v62 = vmul.f32 %v3057_v34, %v4675_v4  ;;  %v456_v39 = vmul.f32 %v3080_v19, %v4683_v31  ;;  %v414_v5 = vadd.f32 %v410_v32, %v404_v38 }
 0x147   :  { %v364_v47 = vmul.f32 %v2994_v63, %v6709_v1  ;;  %v415_v12 = vadd.f32 %v411_v46, %v405_v25  ;;  %v457_v9 = vmul.f32 %v3080_v19, %v4685_v60  ;;  %v466_v34 = vmul.f32 %v3083_v27, %v4687_v11  ;;  %v7049_v25 = vld [vmem:[#allocation29_spill] sm:$0xff] }
 0x148   :  { %v365_v29 = vmul.f32 %v2994_v63, %v6706_v6  ;;  %v460_v36 = vadd.f32 %v456_v39, %v450_v26  ;;  %v467_v3 = vmul.f32 %v3083_v27, %v4689_v23  ;;  %v4866_v42 = vadd.f32 %v3051_v51, %v414_v5 }
 0x149   :  { %v368_v15 = vadd.f32 %v364_v47, %v302_v37  ;;  %v4869_v10 = vadd.f32 %v3051_v51, %v415_v12  ;;  %v461_v2 = vadd.f32 %v457_v9, %v451_v62  ;;  %v476_v63 = vmul.f32 %v3108_v57, %v4691_v16  ;;  %v7050_v9 = vld [vmem:[#allocation35_spill] sm:$0xff] }
 0x14a   :  { %v369_v19 = vadd.f32 %v365_v29, %v303_v43  ;;  %v470_v18 = vadd.f32 %v466_v34, %v460_v36  ;;  %v477_v24 = vmul.f32 %v3108_v57, %v4693_v20  ;;  %v6705_v55 = vmax.f32 %v4866_v42, 0.0  ;;  %v7047_v57 = vld [vmem:[#allocation26_spill] sm:$0xff]  ;;  %v7048_v43 = vld [vmem:[#allocation32_spill] sm:$0xff] }
 0x14b   :  { %v6703_v27 = vmax.f32 %v4869_v10, 0.0  ;;  %v471_v8 = vadd.f32 %v467_v3, %v461_v2  ;;  %v516_v0 = vmul.f32 %v3117_v61, %v4673_v52  ;;  %v517_v51 = vmul.f32 %v3117_v61, %v4675_v4 }
 0x14c   :  { %v480_v14 = vadd.f32 %v476_v63, %v470_v18  ;;  %v522_v28 = vmul.f32 %v7046_v40, %v4683_v31  ;;  %v523_v35 = vmul.f32 %v7046_v40, %v4685_v60  ;;  %v430_v37 = vmul.f32 %v7047_v57, %v6705_v55  ;;  %v7051_v63 = vld [vmem:[#allocation38_spill] sm:$0xff]  ;;  %v7079_v55 = vld [vmem:[#allocation68_spill] sm:$0xff] }
 0x14d   :  { %v431_v32 = vmul.f32 %v7047_v57, %v6703_v27  ;;  %v481_v46 = vadd.f32 %v477_v24, %v471_v8  ;;  %v532_v38 = vmul.f32 %v7048_v43, %v4687_v11  ;;  %v533_v39 = vmul.f32 %v7048_v43, %v4689_v23  ;;  %v7074_v27 = vld [vmem:[#allocation67_spill] sm:$0xff] }
 0x14e   :  { %v4894_v61 = vadd.f32 %v7049_v25, %v480_v14  ;;  %v526_v26 = vadd.f32 %v522_v28, %v516_v0  ;;  %v527_v62 = vadd.f32 %v523_v35, %v517_v51  ;;  %v434_v47 = vadd.f32 %v430_v37, %v368_v15  ;;  %v7053_v0 = vld [vmem:[#allocation30_spill] sm:$0xff]  ;;  %v7054_v37 = vld [vmem:[#allocation40_spill] sm:$0xff] }
 0x14f   :  { %v435_v5 = vadd.f32 %v431_v32, %v369_v19  ;;  %v4899_v12 = vadd.f32 %v7049_v25, %v481_v46  ;;  %v542_v29 = vmul.f32 %v7050_v9, %v4691_v16  ;;  %v543_v2 = vmul.f32 %v7050_v9, %v4693_v20  ;;  %v7052_v19 = vld [vmem:[#allocation39_spill] sm:$0xff] }
 0x150   :  { %v6701_v36 = vmax.f32 %v4894_v61, 0.0  ;;  %v536_v34 = vadd.f32 %v532_v38, %v526_v26  ;;  %v537_v3 = vadd.f32 %v533_v39, %v527_v62  ;;  %v582_v24 = vmul.f32 %v7051_v63, %v4673_v52  ;;  %v7055_v38 = vld [vmem:[#allocation36_spill] sm:$0xff] }
 0x151   :  { %v6698_v18 = vmax.f32 %v4899_v12, 0.0  ;;  %v583_v15 = vmul.f32 %v7051_v63, %v4675_v4  ;;  %v588_v8 = vmul.f32 %v7052_v19, %v4683_v31  ;;  %v589_v28 = vmul.f32 %v7052_v19, %v4685_v60 }
 0x152   :  { %v496_v14 = vmul.f32 %v7053_v0, %v6701_v36  ;;  %v546_v51 = vadd.f32 %v542_v29, %v536_v34  ;;  %v547_v40 = vadd.f32 %v543_v2, %v537_v3  ;;  %v598_v32 = vmul.f32 %v7054_v37, %v4687_v11  ;;  %v7056_v29 = vld [vmem:[#allocation43_spill] sm:$0xff] }
 0x153   :  { %v497_v35 = vmul.f32 %v7053_v0, %v6698_v18  ;;  %v592_v57 = vadd.f32 %v588_v8, %v582_v24  ;;  %v599_v46 = vmul.f32 %v7054_v37, %v4689_v23  ;;  %v593_v62 = vadd.f32 %v589_v28, %v583_v15  ;;  %v7057_v24 = vld [vmem:[#allocation46_spill] sm:$0xff] }
 0x154   :  { %v500_v43 = vadd.f32 %v496_v14, %v434_v47  ;;  %v4926_v25 = vadd.f32 %v7055_v38, %v546_v51  ;;  %v4929_v26 = vadd.f32 %v7055_v38, %v547_v40  ;;  %v608_v34 = vmul.f32 %v7056_v29, %v4691_v16  ;;  %v7059_v51 = vld [vmem:[#allocation37_spill] sm:$0xff] }
 0x155   :  { %v501_v39 = vadd.f32 %v497_v35, %v435_v5  ;;  %v602_v9 = vadd.f32 %v598_v32, %v592_v57  ;;  %v609_v3 = vmul.f32 %v7056_v29, %v4693_v20  ;;  %v603_v47 = vadd.f32 %v599_v46, %v593_v62  ;;  %v7058_v5 = vld [vmem:[#allocation47_spill] sm:$0xff]  ;;  %v7060_v57 = vld [vmem:[#allocation48_spill] sm:$0xff] }
 0x156   :  { %v6697_v2 = vmax.f32 %v4926_v25, 0.0  ;;  %v6696_v63 = vmax.f32 %v4929_v26, 0.0  ;;  %v648_v19 = vmul.f32 %v7057_v24, %v4673_v52  ;;  %v649_v15 = vmul.f32 %v7057_v24, %v4675_v4  ;;  %v7061_v32 = vld [vmem:[#allocation44_spill] sm:$0xff] }
 0x157   :  { %v612_v8 = vadd.f32 %v608_v34, %v602_v9  ;;  %v654_v0 = vmul.f32 %v7058_v5, %v4683_v31  ;;  %v655_v14 = vmul.f32 %v7058_v5, %v4685_v60  ;;  %v613_v35 = vadd.f32 %v609_v3, %v603_v47  ;;  %v7062_v5 = vld [vmem:[#allocation51_spill] sm:$0xff] }
 0x158   :  { %v562_v40 = vmul.f32 %v7059_v51, %v6697_v2  ;;  %v563_v28 = vmul.f32 %v7059_v51, %v6696_v63  ;;  %v664_v37 = vmul.f32 %v7060_v57, %v4687_v11  ;;  %v665_v9 = vmul.f32 %v7060_v57, %v4689_v23  ;;  %v7067_v2 = vld [vmem:[#allocation52_spill] sm:$0xff] }
 0x159   :  { %v4954_v46 = vadd.f32 %v7061_v32, %v612_v8  ;;  %v658_v38 = vadd.f32 %v654_v0, %v648_v19  ;;  %v659_v62 = vadd.f32 %v655_v14, %v649_v15  ;;  %v4959_v24 = vadd.f32 %v7061_v32, %v613_v35  ;;  %v7063_v15 = vld [vmem:[#allocation54_spill] sm:$0xff] }
 0x15a   :  { %v566_v29 = vadd.f32 %v562_v40, %v500_v43  ;;  %v567_v34 = vadd.f32 %v563_v28, %v501_v39  ;;  %v674_v51 = vmul.f32 %v7062_v5, %v4691_v16  ;;  %v675_v8 = vmul.f32 %v7062_v5, %v4693_v20  ;;  %v7064_v39 = vld [vmem:[#allocation55_spill] sm:$0xff]  ;;  %v7065_v40 = vld [vmem:[#allocation45_spill] sm:$0xff] }
 0x15b   :  { %v6700_v3 = vmax.f32 %v4954_v46, 0.0  ;;  %v668_v47 = vadd.f32 %v664_v37, %v658_v38  ;;  %v669_v63 = vadd.f32 %v665_v9, %v659_v62  ;;  %v6699_v19 = vmax.f32 %v4959_v24, 0.0  ;;  %v7066_v62 = vld [vmem:[#allocation56_spill] sm:$0xff] }
 0x15c   :  { %v714_v0 = vmul.f32 %v7063_v15, %v4673_v52  ;;  %v715_v43 = vmul.f32 %v7063_v15, %v4675_v4  ;;  %v720_v14 = vmul.f32 %v7064_v39, %v4683_v31  ;;  %v721_v37 = vmul.f32 %v7064_v39, %v4685_v60  ;;  %v7068_v39 = vld [vmem:[#allocation59_spill] sm:$0xff] }
 0x15d   :  { %v628_v28 = vmul.f32 %v7065_v40, %v6700_v3  ;;  %v678_v35 = vadd.f32 %v674_v51, %v668_v47  ;;  %v679_v57 = vadd.f32 %v675_v8, %v669_v63  ;;  %v629_v32 = vmul.f32 %v7065_v40, %v6699_v19 }
 0x15e   :  { %v724_v38 = vadd.f32 %v720_v14, %v714_v0  ;;  %v730_v9 = vmul.f32 %v7066_v62, %v4687_v11  ;;  %v731_v5 = vmul.f32 %v7066_v62, %v4689_v23  ;;  %v725_v51 = vadd.f32 %v721_v37, %v715_v43  ;;  %v7071_v37 = vld [vmem:[#allocation53_spill] sm:$0xff] }
 0x15f   :  { %v632_v15 = vadd.f32 %v628_v28, %v566_v29  ;;  %v4986_v18 = vadd.f32 %v7067_v2, %v678_v35  ;;  %v4989_v63 = vadd.f32 %v7067_v2, %v679_v57  ;;  %v633_v47 = vadd.f32 %v629_v32, %v567_v34  ;;  %v7069_v28 = vld [vmem:[#allocation62_spill] sm:$0xff]  ;;  %v7070_v34 = vld [vmem:[#allocation63_spill] sm:$0xff] }
 0x160   :  { %v734_v8 = vadd.f32 %v730_v9, %v724_v38  ;;  %v740_v40 = vmul.f32 %v7068_v39, %v4691_v16  ;;  %v741_v0 = vmul.f32 %v7068_v39, %v4693_v20  ;;  %v735_v29 = vadd.f32 %v731_v5, %v725_v51  ;;  %v7072_v5 = vld [vmem:[#allocation64_spill] sm:$0xff] }
 0x161   :  { %v6702_v14 = vmax.f32 %v4986_v18, 0.0  ;;  %v6704_v62 = vmax.f32 %v4989_v63, 0.0  ;;  %v780_v35 = vmul.f32 %v7069_v28, %v4673_v52  ;;  %v781_v2 = vmul.f32 %v7069_v28, %v4675_v4 }
 0x162   :  { %v744_v19 = vadd.f32 %v740_v40, %v734_v8  ;;  %v786_v43 = vmul.f32 %v7070_v34, %v4683_v31  ;;  %v787_v57 = vmul.f32 %v7070_v34, %v4685_v60  ;;  %v745_v9 = vadd.f32 %v741_v0, %v735_v29  ;;  %v7073_v8 = vld [vmem:[#allocation60_spill] sm:$0xff] }
 0x163   :  { %v694_v32 = vmul.f32 %v7071_v37, %v6702_v14  ;;  %v695_v38 = vmul.f32 %v7071_v37, %v6704_v62  ;;  %v796_v51 = vmul.f32 %v7072_v5, %v4687_v11  ;;  %v797_v34 = vmul.f32 %v7072_v5, %v4689_v23 }
 0x164   :  { %v5014_v39 = vadd.f32 %v7073_v8, %v744_v19  ;;  %v790_v40 = vadd.f32 %v786_v43, %v780_v35  ;;  %v791_v28 = vadd.f32 %v787_v57, %v781_v2  ;;  %v5019_v14 = vadd.f32 %v7073_v8, %v745_v9  ;;  %v7075_v2 = vld [vmem:[#allocation70_spill] sm:$0xff] }
 0x165   :  { %v698_v3 = vadd.f32 %v694_v32, %v632_v15  ;;  %v699_v36 = vadd.f32 %v695_v38, %v633_v47  ;;  %v806_v37 = vmul.f32 %v7074_v27, %v4691_v16  ;;  %v807_v19 = vmul.f32 %v7074_v27, %v4693_v20  ;;  %v7076_v47 = vld [vmem:[#allocation71_spill] sm:$0xff]  ;;  %v7077_v32 = vld [vmem:[#allocation61_spill] sm:$0xff] }
 0x166   :  { %v6708_v0 = vmax.f32 %v5014_v39, 0.0  ;;  %v800_v29 = vadd.f32 %v796_v51, %v790_v40  ;;  %v801_v62 = vadd.f32 %v797_v34, %v791_v28  ;;  %v6707_v35 = vmax.f32 %v5019_v14, 0.0  ;;  %v7078_v40 = vld [vmem:[#allocation72_spill] sm:$0xff] }
 0x167   :  { %v846_v43 = vmul.f32 %v7075_v2, %v4673_v52  ;;  %v847_v15 = vmul.f32 %v7075_v2, %v4675_v4  ;;  %v852_v57 = vmul.f32 %v7076_v47, %v4683_v31  ;;  %v853_v27 = vmul.f32 %v7076_v47, %v4685_v60  ;;  %v7080_v47 = vld [vmem:[#allocation75_spill] sm:$0xff] }
 0x168   :  { %v760_v38 = vmul.f32 %v7077_v32, %v6708_v0  ;;  %v810_v9 = vadd.f32 %v806_v37, %v800_v29  ;;  %v811_v5 = vadd.f32 %v807_v19, %v801_v62  ;;  %v761_v51 = vmul.f32 %v7077_v32, %v6707_v35 }
 0x169   :  { %v856_v8 = vadd.f32 %v852_v57, %v846_v43  ;;  %v862_v28 = vmul.f32 %v7078_v40, %v4687_v11  ;;  %v863_v34 = vmul.f32 %v7078_v40, %v4689_v23  ;;  %v857_v37 = vadd.f32 %v853_v27, %v847_v15  ;;  %v7083_v27 = vld [vmem:[#allocation69_spill] sm:$0xff] }
 0x16a   :  { %v764_v2 = vadd.f32 %v760_v38, %v698_v3  ;;  %v5046_v6 = vadd.f32 %v7079_v55, %v810_v9  ;;  %v5049_v62 = vadd.f32 %v7079_v55, %v811_v5  ;;  %v765_v29 = vadd.f32 %v761_v51, %v699_v36  ;;  %v7081_v38 = vld [vmem:[#allocation78_spill] sm:$0xff]  ;;  %v7082_v36 = vld [vmem:[#allocation79_spill] sm:$0xff] }
 0x16b   :  { %v866_v19 = vadd.f32 %v862_v28, %v856_v8  ;;  %v872_v32 = vmul.f32 %v7080_v47, %v4691_v16  ;;  %v873_v43 = vmul.f32 %v7080_v47, %v4693_v20  ;;  %v867_v3 = vadd.f32 %v863_v34, %v857_v37  ;;  %v7084_v34 = vld [vmem:[#allocation80_spill] sm:$0xff] }
 0x16c   :  { %v6710_v57 = vmax.f32 %v5046_v6, 0.0  ;;  %v6712_v40 = vmax.f32 %v5049_v62, 0.0  ;;  %v912_v9 = vmul.f32 %v7081_v38, %v4673_v52  ;;  %v913_v55 = vmul.f32 %v7081_v38, %v4675_v4 }
 0x16d   :  { %v876_v35 = vadd.f32 %v872_v32, %v866_v19  ;;  %v918_v15 = vmul.f32 %v7082_v36, %v4683_v31  ;;  %v919_v5 = vmul.f32 %v7082_v36, %v4685_v60  ;;  %v877_v28 = vadd.f32 %v873_v43, %v867_v3  ;;  %v7085_v19 = vld [vmem:[#allocation76_spill] sm:$0xff] }
 0x16e   :  { %v826_v51 = vmul.f32 %v7083_v27, %v6710_v57  ;;  %v827_v8 = vmul.f32 %v7083_v27, %v6712_v40  ;;  %v928_v37 = vmul.f32 %v7084_v34, %v4687_v11  ;;  %v929_v36 = vmul.f32 %v7084_v34, %v4689_v23 }
 0x16f   :  { %v5074_v47 = vadd.f32 %v7085_v19, %v876_v35  ;;  %v922_v32 = vadd.f32 %v918_v15, %v912_v9  ;;  %v923_v38 = vadd.f32 %v919_v5, %v913_v55  ;;  %v5079_v57 = vadd.f32 %v7085_v19, %v877_v28  ;;  %v7088_v55 = vld [vmem:[#allocation86_spill] sm:$0xff] }
 0x170   :  { %v830_v0 = vadd.f32 %v826_v51, %v764_v2  ;;  %v831_v1 = vadd.f32 %v827_v8, %v765_v29  ;;  %v938_v27 = vmul.f32 %v7087_v54, %v4691_v16  ;;  %v939_v35 = vmul.f32 %v7087_v54, %v4693_v20  ;;  %v7089_v29 = vld [vmem:[#allocation87_spill] sm:$0xff]  ;;  %v7090_v51 = vld [vmem:[#allocation77_spill] sm:$0xff] }
 0x171   :  { %7086 = vst [vmem:[#allocation31_spill] sm:$0xff] %v5079_v57  ;;  %v6716_v43 = vmax.f32 %v5074_v47, 0.0  ;;  %v932_v3 = vadd.f32 %v928_v37, %v922_v32  ;;  %v933_v40 = vadd.f32 %v929_v36, %v923_v38  ;;  %v6715_v9 = vmax.f32 %v5079_v57, 0.0  ;;  %v7091_v32 = vld [vmem:[#allocation88_spill] sm:$0xff] }
 0x172   :  { %v978_v15 = vmul.f32 %v7088_v55, %v4673_v52  ;;  %v979_v2 = vmul.f32 %v7088_v55, %v4675_v4  ;;  %v984_v5 = vmul.f32 %v7089_v29, %v4683_v31  ;;  %v985_v54 = vmul.f32 %v7089_v29, %v4685_v60  ;;  %v7095_v29 = vld [vmem:[#allocation91_spill] sm:$0xff] }
 0x173   :  { %v892_v8 = vmul.f32 %v7090_v51, %v6716_v43  ;;  %v942_v28 = vadd.f32 %v938_v27, %v932_v3  ;;  %v943_v34 = vadd.f32 %v939_v35, %v933_v40  ;;  %v893_v37 = vmul.f32 %v7090_v51, %v6715_v9 }
 0x174   :  { %v988_v19 = vadd.f32 %v984_v5, %v978_v15  ;;  %v994_v38 = vmul.f32 %v7091_v32, %v4687_v11  ;;  %v995_v36 = vmul.f32 %v7091_v32, %v4689_v23  ;;  %v989_v27 = vadd.f32 %v985_v54, %v979_v2  ;;  %v7098_v54 = vld [vmem:[#allocation85_spill] sm:$0xff] }
 0x175   :  { %v896_v55 = vadd.f32 %v892_v8, %v830_v0  ;;  %v5106_v50 = vadd.f32 %v7092_v17, %v942_v28  ;;  %v5109_v40 = vadd.f32 %v7092_v17, %v943_v34  ;;  %v897_v3 = vadd.f32 %v893_v37, %v831_v1  ;;  %v7096_v8 = vld [vmem:[#allocation94_spill] sm:$0xff]  ;;  %v7097_v1 = vld [vmem:[#allocation95_spill] sm:$0xff] }
 0x176   :  { %v998_v35 = vadd.f32 %v994_v38, %v988_v19  ;;  %v1004_v51 = vmul.f32 %v7095_v29, %v4691_v16  ;;  %v1005_v15 = vmul.f32 %v7095_v29, %v4693_v20  ;;  %v999_v0 = vadd.f32 %v995_v36, %v989_v27  ;;  %v7099_v36 = vld [vmem:[#allocation96_spill] sm:$0xff] }
 0x177   :  { %7093 = vst [vmem:[#allocation26_spill] sm:$0xff] %v5106_v50  ;;  %7094 = vst [vmem:[#allocation32_spill] sm:$0xff] %v5109_v40  ;;  %v6718_v5 = vmax.f32 %v5106_v50, 0.0  ;;  %v6720_v32 = vmax.f32 %v5109_v40, 0.0  ;;  %v1044_v28 = vmul.f32 %v7096_v8, %v4673_v52  ;;  %v1045_v17 = vmul.f32 %v7096_v8, %v4675_v4  ;;  %v7339_v50 = vld [vmem:[#allocation161_spill] sm:$0xff] }
 0x178   :  { %v1008_v9 = vadd.f32 %v1004_v51, %v998_v35  ;;  %v1050_v2 = vmul.f32 %v7097_v1, %v4683_v31  ;;  %v1051_v34 = vmul.f32 %v7097_v1, %v4685_v60  ;;  %v1009_v38 = vadd.f32 %v1005_v15, %v999_v0  ;;  %v7100_v35 = vld [vmem:[#allocation92_spill] sm:$0xff] }
 0x179   :  { %v958_v37 = vmul.f32 %v7098_v54, %v6718_v5  ;;  %v959_v19 = vmul.f32 %v7098_v54, %v6720_v32  ;;  %v1060_v27 = vmul.f32 %v7099_v36, %v4687_v11  ;;  %v1061_v1 = vmul.f32 %v7099_v36, %v4689_v23 }
 0x17a   :  { %v5134_v29 = vadd.f32 %v7100_v35, %v1008_v9  ;;  %v1054_v51 = vadd.f32 %v1050_v2, %v1044_v28  ;;  %v1055_v8 = vadd.f32 %v1051_v34, %v1045_v17  ;;  %v5139_v5 = vadd.f32 %v7100_v35, %v1009_v38  ;;  %v7104_v17 = vld [vmem:[#allocation102_spill] sm:$0xff] }
 0x17b   :  { %v962_v43 = vadd.f32 %v958_v37, %v896_v55  ;;  %v963_v21 = vadd.f32 %v959_v19, %v897_v3  ;;  %v1070_v54 = vmul.f32 %v7103_v30, %v4691_v16  ;;  %v1071_v9 = vmul.f32 %v7103_v30, %v4693_v20  ;;  %v7105_v3 = vld [vmem:[#allocation103_spill] sm:$0xff]  ;;  %v7106_v37 = vld [vmem:[#allocation93_spill] sm:$0xff] }
 0x17c   :  { %7101 = vst [vmem:[#allocation29_spill] sm:$0xff] %v5134_v29  ;;  %7102 = vst [vmem:[#allocation35_spill] sm:$0xff] %v5139_v5  ;;  %v6724_v15 = vmax.f32 %v5134_v29, 0.0  ;;  %v1064_v0 = vadd.f32 %v1060_v27, %v1054_v51  ;;  %v1065_v32 = vadd.f32 %v1061_v1, %v1055_v8  ;;  %v6723_v28 = vmax.f32 %v5139_v5, 0.0  ;;  %v7107_v51 = vld [vmem:[#allocation104_spill] sm:$0xff]  ;;  %v7322_v5 = vld [vmem:[#allocation129_spill] sm:$0xff] }
 0x17d   :  { %v1110_v2 = vmul.f32 %v7104_v17, %v4673_v52  ;;  %v1111_v55 = vmul.f32 %v7104_v17, %v4675_v4  ;;  %v1116_v34 = vmul.f32 %v7105_v3, %v4683_v31  ;;  %v1117_v30 = vmul.f32 %v7105_v3, %v4685_v60  ;;  %v7111_v3 = vld [vmem:[#allocation107_spill] sm:$0xff] }
 0x17e   :  { %v1024_v19 = vmul.f32 %v7106_v37, %v6724_v15  ;;  %v1074_v38 = vadd.f32 %v1070_v54, %v1064_v0  ;;  %v1075_v36 = vadd.f32 %v1071_v9, %v1065_v32  ;;  %v1025_v27 = vmul.f32 %v7106_v37, %v6723_v28 }
 0x17f   :  { %v1120_v35 = vadd.f32 %v1116_v34, %v1110_v2  ;;  %v1126_v8 = vmul.f32 %v7107_v51, %v4687_v11  ;;  %v1127_v1 = vmul.f32 %v7107_v51, %v4689_v23  ;;  %v1121_v54 = vadd.f32 %v1117_v30, %v1111_v55  ;;  %v7114_v30 = vld [vmem:[#allocation101_spill] sm:$0xff] }
 0x180   :  { %v1028_v17 = vadd.f32 %v1024_v19, %v962_v43  ;;  %v5166_v49 = vadd.f32 %v7108_v7, %v1074_v38  ;;  %v5169_v32 = vadd.f32 %v7108_v7, %v1075_v36  ;;  %v1029_v0 = vadd.f32 %v1025_v27, %v963_v21  ;;  %v7112_v19 = vld [vmem:[#allocation110_spill] sm:$0xff]  ;;  %v7113_v21 = vld [vmem:[#allocation111_spill] sm:$0xff] }
 0x181   :  { %v1130_v9 = vadd.f32 %v1126_v8, %v1120_v35  ;;  %v1136_v37 = vmul.f32 %v7111_v3, %v4691_v16  ;;  %v1137_v2 = vmul.f32 %v7111_v3, %v4693_v20  ;;  %v1131_v43 = vadd.f32 %v1127_v1, %v1121_v54  ;;  %v7115_v1 = vld [vmem:[#allocation112_spill] sm:$0xff] }
 0x182   :  { %7109 = vst [vmem:[#allocation38_spill] sm:$0xff] %v5166_v49  ;;  %7110 = vst [vmem:[#allocation39_spill] sm:$0xff] %v5169_v32  ;;  %v6726_v34 = vmax.f32 %v5166_v49, 0.0  ;;  %v6728_v51 = vmax.f32 %v5169_v32, 0.0  ;;  %v1176_v38 = vmul.f32 %v7112_v19, %v4673_v52  ;;  %v1177_v7 = vmul.f32 %v7112_v19, %v4675_v4  ;;  %v7119_v32 = vld [vmem:[#allocation115_spill] sm:$0xff] }
 0x183   :  { %v1140_v28 = vadd.f32 %v1136_v37, %v1130_v9  ;;  %v1182_v55 = vmul.f32 %v7113_v21, %v4683_v31  ;;  %v1183_v36 = vmul.f32 %v7113_v21, %v4685_v60  ;;  %v1141_v8 = vadd.f32 %v1137_v2, %v1131_v43  ;;  %v7116_v9 = vld [vmem:[#allocation108_spill] sm:$0xff] }
 0x184   :  { %v1090_v27 = vmul.f32 %v7114_v30, %v6726_v34  ;;  %v1091_v35 = vmul.f32 %v7114_v30, %v6728_v51  ;;  %v1192_v54 = vmul.f32 %v7115_v1, %v4687_v11  ;;  %v1193_v21 = vmul.f32 %v7115_v1, %v4689_v23 }
 0x185   :  { %v5194_v3 = vadd.f32 %v7116_v9, %v1140_v28  ;;  %v1186_v37 = vadd.f32 %v1182_v55, %v1176_v38  ;;  %v1187_v19 = vadd.f32 %v1183_v36, %v1177_v7  ;;  %v5199_v34 = vadd.f32 %v7116_v9, %v1141_v8  ;;  %v7120_v7 = vld [vmem:[#allocation118_spill] sm:$0xff] }
 0x186   :  { %v1094_v15 = vadd.f32 %v1090_v27, %v1028_v17  ;;  %v1095_v22 = vadd.f32 %v1091_v35, %v1029_v0  ;;  %v1202_v30 = vmul.f32 %v7119_v32, %v4691_v16  ;;  %v1203_v28 = vmul.f32 %v7119_v32, %v4693_v20  ;;  %v7121_v0 = vld [vmem:[#allocation119_spill] sm:$0xff]  ;;  %v7122_v27 = vld [vmem:[#allocation109_spill] sm:$0xff] }
 0x187   :  { %7117 = vst [vmem:[#allocation30_spill] sm:$0xff] %v5194_v3  ;;  %7118 = vst [vmem:[#allocation40_spill] sm:$0xff] %v5199_v34  ;;  %v6732_v2 = vmax.f32 %v5194_v3, 0.0  ;;  %v1196_v43 = vadd.f32 %v1192_v54, %v1186_v37  ;;  %v1197_v51 = vadd.f32 %v1193_v21, %v1187_v19  ;;  %v6731_v38 = vmax.f32 %v5199_v34, 0.0  ;;  %v7123_v37 = vld [vmem:[#allocation120_spill] sm:$0xff] }
 0x188   :  { %v1242_v55 = vmul.f32 %v7120_v7, %v4673_v52  ;;  %v1243_v17 = vmul.f32 %v7120_v7, %v4675_v4  ;;  %v1248_v36 = vmul.f32 %v7121_v0, %v4683_v31  ;;  %v1249_v32 = vmul.f32 %v7121_v0, %v4685_v60  ;;  %v7124_v3 = vld [vmem:[#allocation116_spill] sm:$0xff]  ;;  %v7127_v0 = vld [vmem:[#allocation123_spill] sm:$0xff] }
 0x189   :  { %v1156_v35 = vmul.f32 %v7122_v27, %v6732_v2  ;;  %v1206_v8 = vadd.f32 %v1202_v30, %v1196_v43  ;;  %v1207_v1 = vadd.f32 %v1203_v28, %v1197_v51  ;;  %v1157_v54 = vmul.f32 %v7122_v27, %v6731_v38 }
 0x18a   :  { %v1252_v9 = vadd.f32 %v1248_v36, %v1242_v55  ;;  %v1258_v19 = vmul.f32 %v7123_v37, %v4687_v11  ;;  %v1259_v21 = vmul.f32 %v7123_v37, %v4689_v23  ;;  %v1253_v30 = vadd.f32 %v1249_v32, %v1243_v17  ;;  %v7130_v32 = vld [vmem:[#allocation117_spill] sm:$0xff] }
 0x18b   :  { %v1160_v7 = vadd.f32 %v1156_v35, %v1094_v15  ;;  %v5226_v49 = vadd.f32 %v7124_v3, %v1206_v8  ;;  %v5229_v51 = vadd.f32 %v7124_v3, %v1207_v1  ;;  %v1161_v43 = vadd.f32 %v1157_v54, %v1095_v22  ;;  %v7128_v35 = vld [vmem:[#allocation126_spill] sm:$0xff]  ;;  %v7129_v22 = vld [vmem:[#allocation127_spill] sm:$0xff] }
 0x18c   :  { %v1262_v28 = vadd.f32 %v1258_v19, %v1252_v9  ;;  %v1268_v27 = vmul.f32 %v7127_v0, %v4691_v16  ;;  %v1269_v55 = vmul.f32 %v7127_v0, %v4693_v20  ;;  %v1263_v15 = vadd.f32 %v1259_v21, %v1253_v30  ;;  %v7131_v21 = vld [vmem:[#allocation128_spill] sm:$0xff] }
 0x18d   :  { %7125 = vst [vmem:[#allocation36_spill] sm:$0xff] %v5226_v49  ;;  %7126 = vst [vmem:[#allocation43_spill] sm:$0xff] %v5229_v51  ;;  %v6734_v36 = vmax.f32 %v5226_v49, 0.0  ;;  %v6736_v37 = vmax.f32 %v5229_v51, 0.0  ;;  %v1308_v8 = vmul.f32 %v7128_v35, %v4673_v52  ;;  %v1309_v3 = vmul.f32 %v7128_v35, %v4675_v4  ;;  %v7135_v51 = vld [vmem:[#allocation131_spill] sm:$0xff] }
 0x18e   :  { %v1272_v38 = vadd.f32 %v1268_v27, %v1262_v28  ;;  %v1314_v17 = vmul.f32 %v7129_v22, %v4683_v31  ;;  %v1315_v1 = vmul.f32 %v7129_v22, %v4685_v60  ;;  %v1273_v19 = vadd.f32 %v1269_v55, %v1263_v15  ;;  %v7132_v28 = vld [vmem:[#allocation124_spill] sm:$0xff] }
 0x18f   :  { %v1222_v54 = vmul.f32 %v7130_v32, %v6734_v36  ;;  %v1223_v9 = vmul.f32 %v7130_v32, %v6736_v37  ;;  %v1324_v30 = vmul.f32 %v7131_v21, %v4687_v11  ;;  %v1325_v22 = vmul.f32 %v7131_v21, %v4689_v23 }
 0x190   :  { %v5254_v0 = vadd.f32 %v7132_v28, %v1272_v38  ;;  %v1318_v27 = vadd.f32 %v1314_v17, %v1308_v8  ;;  %v1319_v35 = vadd.f32 %v1315_v1, %v1309_v3  ;;  %v5259_v36 = vadd.f32 %v7132_v28, %v1273_v19  ;;  %v7136_v3 = vld [vmem:[#allocation134_spill] sm:$0xff] }
 0x191   :  { %v1226_v2 = vadd.f32 %v1222_v54, %v1160_v7  ;;  %v1227_v49 = vadd.f32 %v1223_v9, %v1161_v43  ;;  %v1334_v32 = vmul.f32 %v7135_v51, %v4691_v16  ;;  %v1335_v38 = vmul.f32 %v7135_v51, %v4693_v20  ;;  %v7137_v43 = vld [vmem:[#allocation135_spill] sm:$0xff]  ;;  %v7138_v54 = vld [vmem:[#allocation125_spill] sm:$0xff] }
 0x192   :  { %7133 = vst [vmem:[#allocation46_spill] sm:$0xff] %v5254_v0  ;;  %7134 = vst [vmem:[#allocation47_spill] sm:$0xff] %v5259_v36  ;;  %v6740_v55 = vmax.f32 %v5254_v0, 0.0  ;;  %v1328_v15 = vadd.f32 %v1324_v30, %v1318_v27  ;;  %v1329_v37 = vadd.f32 %v1325_v22, %v1319_v35  ;;  %v6739_v8 = vmax.f32 %v5259_v36, 0.0  ;;  %v7139_v27 = vld [vmem:[#allocation136_spill] sm:$0xff] }
 0x193   :  { %v1374_v17 = vmul.f32 %v7136_v3, %v4673_v52  ;;  %v1375_v7 = vmul.f32 %v7136_v3, %v4675_v4  ;;  %v1380_v1 = vmul.f32 %v7137_v43, %v4683_v31  ;;  %v1381_v51 = vmul.f32 %v7137_v43, %v4685_v60  ;;  %v7140_v0 = vld [vmem:[#allocation132_spill] sm:$0xff]  ;;  %v7143_v43 = vld [vmem:[#allocation139_spill] sm:$0xff] }
 0x194   :  { %v1288_v9 = vmul.f32 %v7138_v54, %v6740_v55  ;;  %v1338_v19 = vadd.f32 %v1334_v32, %v1328_v15  ;;  %v1339_v21 = vadd.f32 %v1335_v38, %v1329_v37  ;;  %v1289_v30 = vmul.f32 %v7138_v54, %v6739_v8 }
 0x195   :  { %v1384_v28 = vadd.f32 %v1380_v1, %v1374_v17  ;;  %v1390_v35 = vmul.f32 %v7139_v27, %v4687_v11  ;;  %v1391_v22 = vmul.f32 %v7139_v27, %v4689_v23  ;;  %v1385_v32 = vadd.f32 %v1381_v51, %v1375_v7  ;;  %v7146_v51 = vld [vmem:[#allocation133_spill] sm:$0xff] }
 0x196   :  { %v1292_v3 = vadd.f32 %v1288_v9, %v1226_v2  ;;  %v5286_v34 = vadd.f32 %v7140_v0, %v1338_v19  ;;  %v5289_v37 = vadd.f32 %v7140_v0, %v1339_v21  ;;  %v1293_v15 = vadd.f32 %v1289_v30, %v1227_v49  ;;  %v7144_v9 = vld [vmem:[#allocation142_spill] sm:$0xff]  ;;  %v7145_v49 = vld [vmem:[#allocation143_spill] sm:$0xff] }
 0x197   :  { %v1394_v38 = vadd.f32 %v1390_v35, %v1384_v28  ;;  %v1400_v54 = vmul.f32 %v7143_v43, %v4691_v16  ;;  %v1401_v17 = vmul.f32 %v7143_v43, %v4693_v20  ;;  %v1395_v2 = vadd.f32 %v1391_v22, %v1385_v32  ;;  %v7147_v22 = vld [vmem:[#allocation144_spill] sm:$0xff] }
 0x198   :  { %7141 = vst [vmem:[#allocation37_spill] sm:$0xff] %v5286_v34  ;;  %7142 = vst [vmem:[#allocation48_spill] sm:$0xff] %v5289_v37  ;;  %v6742_v1 = vmax.f32 %v5286_v34, 0.0  ;;  %v6744_v27 = vmax.f32 %v5289_v37, 0.0  ;;  %v1440_v19 = vmul.f32 %v7144_v9, %v4673_v52  ;;  %v1441_v0 = vmul.f32 %v7144_v9, %v4675_v4  ;;  %v7151_v37 = vld [vmem:[#allocation147_spill] sm:$0xff] }
 0x199   :  { %v1404_v8 = vadd.f32 %v1400_v54, %v1394_v38  ;;  %v1446_v7 = vmul.f32 %v7145_v49, %v4683_v31  ;;  %v1447_v21 = vmul.f32 %v7145_v49, %v4685_v60  ;;  %v1405_v35 = vadd.f32 %v1401_v17, %v1395_v2  ;;  %v7148_v38 = vld [vmem:[#allocation140_spill] sm:$0xff] }
 0x19a   :  { %v1354_v30 = vmul.f32 %v7146_v51, %v6742_v1  ;;  %v1355_v28 = vmul.f32 %v7146_v51, %v6744_v27  ;;  %v1456_v32 = vmul.f32 %v7147_v22, %v4687_v11  ;;  %v1457_v49 = vmul.f32 %v7147_v22, %v4689_v23 }
 0x19b   :  { %v5314_v43 = vadd.f32 %v7148_v38, %v1404_v8  ;;  %v1450_v54 = vadd.f32 %v1446_v7, %v1440_v19  ;;  %v1451_v9 = vadd.f32 %v1447_v21, %v1441_v0  ;;  %v5319_v1 = vadd.f32 %v7148_v38, %v1405_v35  ;;  %v7152_v0 = vld [vmem:[#allocation150_spill] sm:$0xff] }
 0x19c   :  { %v1358_v55 = vadd.f32 %v1354_v30, %v1292_v3  ;;  %v1359_v34 = vadd.f32 %v1355_v28, %v1293_v15  ;;  %v1466_v51 = vmul.f32 %v7151_v37, %v4691_v16  ;;  %v1467_v8 = vmul.f32 %v7151_v37, %v4693_v20  ;;  %v7153_v15 = vld [vmem:[#allocation151_spill] sm:$0xff]  ;;  %v7154_v30 = vld [vmem:[#allocation141_spill] sm:$0xff] }
 0x19d   :  { %7149 = vst [vmem:[#allocation44_spill] sm:$0xff] %v5314_v43  ;;  %7150 = vst [vmem:[#allocation51_spill] sm:$0xff] %v5319_v1  ;;  %v6748_v17 = vmax.f32 %v5314_v43, 0.0  ;;  %v1460_v2 = vadd.f32 %v1456_v32, %v1450_v54  ;;  %v1461_v27 = vadd.f32 %v1457_v49, %v1451_v9  ;;  %v6747_v19 = vmax.f32 %v5319_v1, 0.0  ;;  %v7155_v54 = vld [vmem:[#allocation152_spill] sm:$0xff] }
 0x19e   :  { %v1506_v7 = vmul.f32 %v7152_v0, %v4673_v52  ;;  %v1507_v3 = vmul.f32 %v7152_v0, %v4675_v4  ;;  %v1512_v21 = vmul.f32 %v7153_v15, %v4683_v31  ;;  %v1513_v37 = vmul.f32 %v7153_v15, %v4685_v60  ;;  %v7156_v43 = vld [vmem:[#allocation148_spill] sm:$0xff]  ;;  %v7159_v15 = vld [vmem:[#allocation155_spill] sm:$0xff] }
 0x19f   :  { %v1420_v28 = vmul.f32 %v7154_v30, %v6748_v17  ;;  %v1470_v35 = vadd.f32 %v1466_v51, %v1460_v2  ;;  %v1471_v22 = vadd.f32 %v1467_v8, %v1461_v27  ;;  %v1421_v32 = vmul.f32 %v7154_v30, %v6747_v19 }
 0x1a0   :  { %v1516_v38 = vadd.f32 %v1512_v21, %v1506_v7  ;;  %v1522_v9 = vmul.f32 %v7155_v54, %v4687_v11  ;;  %v1523_v49 = vmul.f32 %v7155_v54, %v4689_v23  ;;  %v1517_v51 = vadd.f32 %v1513_v37, %v1507_v3  ;;  %v7162_v37 = vld [vmem:[#allocation149_spill] sm:$0xff] }
 0x1a1   :  { %v1424_v0 = vadd.f32 %v1420_v28, %v1358_v55  ;;  %v5346_v36 = vadd.f32 %v7156_v43, %v1470_v35  ;;  %v5349_v27 = vadd.f32 %v7156_v43, %v1471_v22  ;;  %v1425_v2 = vadd.f32 %v1421_v32, %v1359_v34  ;;  %v7160_v28 = vld [vmem:[#allocation158_spill] sm:$0xff]  ;;  %v7161_v34 = vld [vmem:[#allocation159_spill] sm:$0xff] }
 0x1a2   :  { %v1526_v8 = vadd.f32 %v1522_v9, %v1516_v38  ;;  %v1532_v30 = vmul.f32 %v7159_v15, %v4691_v16  ;;  %v1533_v7 = vmul.f32 %v7159_v15, %v4693_v20  ;;  %v1527_v55 = vadd.f32 %v1523_v49, %v1517_v51  ;;  %v7163_v49 = vld [vmem:[#allocation160_spill] sm:$0xff] }
 0x1a3   :  { %7157 = vst [vmem:[#allocation54_spill] sm:$0xff] %v5346_v36  ;;  %7158 = vst [vmem:[#allocation55_spill] sm:$0xff] %v5349_v27  ;;  %v6750_v21 = vmax.f32 %v5346_v36, 0.0  ;;  %v6752_v54 = vmax.f32 %v5349_v27, 0.0  ;;  %v1572_v35 = vmul.f32 %v7160_v28, %v4673_v52  ;;  %v1573_v43 = vmul.f32 %v7160_v28, %v4675_v4  ;;  %v7167_v27 = vld [vmem:[#allocation163_spill] sm:$0xff] }
 0x1a4   :  { %v1536_v19 = vadd.f32 %v1532_v30, %v1526_v8  ;;  %v1578_v3 = vmul.f32 %v7161_v34, %v4683_v31  ;;  %v1579_v22 = vmul.f32 %v7161_v34, %v4685_v60  ;;  %v1537_v9 = vadd.f32 %v1533_v7, %v1527_v55  ;;  %v7164_v8 = vld [vmem:[#allocation156_spill] sm:$0xff] }
 0x1a5   :  { %v1486_v32 = vmul.f32 %v7162_v37, %v6750_v21  ;;  %v1487_v38 = vmul.f32 %v7162_v37, %v6752_v54  ;;  %v1588_v51 = vmul.f32 %v7163_v49, %v4687_v11  ;;  %v1589_v34 = vmul.f32 %v7163_v49, %v4689_v23 }
 0x1a6   :  { %v5374_v15 = vadd.f32 %v7164_v8, %v1536_v19  ;;  %v1582_v30 = vadd.f32 %v1578_v3, %v1572_v35  ;;  %v1583_v28 = vadd.f32 %v1579_v22, %v1573_v43  ;;  %v5379_v21 = vadd.f32 %v7164_v8, %v1537_v9  ;;  %v7168_v43 = vld [vmem:[#allocation166_spill] sm:$0xff] }
 0x1a7   :  { %v1490_v17 = vadd.f32 %v1486_v32, %v1424_v0  ;;  %v1491_v36 = vadd.f32 %v1487_v38, %v1425_v2  ;;  %v1598_v37 = vmul.f32 %v7167_v27, %v4691_v16  ;;  %v1599_v19 = vmul.f32 %v7167_v27, %v4693_v20  ;;  %v7169_v2 = vld [vmem:[#allocation167_spill] sm:$0xff]  ;;  %v7170_v32 = vld [vmem:[#allocation157_spill] sm:$0xff] }
 0x1a8   :  { %7165 = vst [vmem:[#allocation45_spill] sm:$0xff] %v5374_v15  ;;  %7166 = vst [vmem:[#allocation56_spill] sm:$0xff] %v5379_v21  ;;  %v6756_v7 = vmax.f32 %v5374_v15, 0.0  ;;  %v1592_v55 = vadd.f32 %v1588_v51, %v1582_v30  ;;  %v1593_v54 = vadd.f32 %v1589_v34, %v1583_v28  ;;  %v6755_v35 = vmax.f32 %v5379_v21, 0.0  ;;  %v7171_v30 = vld [vmem:[#allocation168_spill] sm:$0xff] }
 0x1a9   :  { %v1638_v3 = vmul.f32 %v7168_v43, %v4673_v52  ;;  %v1639_v0 = vmul.f32 %v7168_v43, %v4675_v4  ;;  %v1644_v22 = vmul.f32 %v7169_v2, %v4683_v31  ;;  %v1645_v27 = vmul.f32 %v7169_v2, %v4685_v60  ;;  %v7172_v15 = vld [vmem:[#allocation164_spill] sm:$0xff]  ;;  %v7175_v2 = vld [vmem:[#allocation171_spill] sm:$0xff] }
 0x1aa   :  { %v1552_v38 = vmul.f32 %v7170_v32, %v6756_v7  ;;  %v1602_v9 = vadd.f32 %v1598_v37, %v1592_v55  ;;  %v1603_v49 = vadd.f32 %v1599_v19, %v1593_v54  ;;  %v1553_v51 = vmul.f32 %v7170_v32, %v6755_v35 }
 0x1ab   :  { %v1648_v8 = vadd.f32 %v1644_v22, %v1638_v3  ;;  %v1654_v28 = vmul.f32 %v7171_v30, %v4687_v11  ;;  %v1655_v34 = vmul.f32 %v7171_v30, %v4689_v23  ;;  %v1649_v37 = vadd.f32 %v1645_v27, %v1639_v0  ;;  %v7178_v27 = vld [vmem:[#allocation165_spill] sm:$0xff] }
 0x1ac   :  { %v1556_v43 = vadd.f32 %v1552_v38, %v1490_v17  ;;  %v5406_v1 = vadd.f32 %v7172_v15, %v1602_v9  ;;  %v5409_v54 = vadd.f32 %v7172_v15, %v1603_v49  ;;  %v1557_v55 = vadd.f32 %v1553_v51, %v1491_v36  ;;  %v7176_v38 = vld [vmem:[#allocation174_spill] sm:$0xff]  ;;  %v7177_v36 = vld [vmem:[#allocation175_spill] sm:$0xff] }
 0x1ad   :  { %v1658_v19 = vadd.f32 %v1654_v28, %v1648_v8  ;;  %v1664_v32 = vmul.f32 %v7175_v2, %v4691_v16  ;;  %v1665_v3 = vmul.f32 %v7175_v2, %v4693_v20  ;;  %v1659_v17 = vadd.f32 %v1655_v34, %v1649_v37  ;;  %v7179_v34 = vld [vmem:[#allocation176_spill] sm:$0xff] }
 0x1ae   :  { %7173 = vst [vmem:[#allocation52_spill] sm:$0xff] %v5406_v1  ;;  %7174 = vst [vmem:[#allocation59_spill] sm:$0xff] %v5409_v54  ;;  %v6758_v22 = vmax.f32 %v5406_v1, 0.0  ;;  %v6760_v30 = vmax.f32 %v5409_v54, 0.0  ;;  %v1704_v9 = vmul.f32 %v7176_v38, %v4673_v52  ;;  %v1705_v15 = vmul.f32 %v7176_v38, %v4675_v4  ;;  %v7183_v54 = vld [vmem:[#allocation179_spill] sm:$0xff] }
 0x1af   :  { %v1668_v35 = vadd.f32 %v1664_v32, %v1658_v19  ;;  %v1710_v0 = vmul.f32 %v7177_v36, %v4683_v31  ;;  %v1711_v49 = vmul.f32 %v7177_v36, %v4685_v60  ;;  %v1669_v28 = vadd.f32 %v1665_v3, %v1659_v17  ;;  %v7180_v19 = vld [vmem:[#allocation172_spill] sm:$0xff] }
 0x1b0   :  { %v1618_v51 = vmul.f32 %v7178_v27, %v6758_v22  ;;  %v1619_v8 = vmul.f32 %v7178_v27, %v6760_v30  ;;  %v1720_v37 = vmul.f32 %v7179_v34, %v4687_v11  ;;  %v1721_v36 = vmul.f32 %v7179_v34, %v4689_v23 }
 0x1b1   :  { %v5434_v2 = vadd.f32 %v7180_v19, %v1668_v35  ;;  %v1714_v32 = vadd.f32 %v1710_v0, %v1704_v9  ;;  %v1715_v38 = vadd.f32 %v1711_v49, %v1705_v15  ;;  %v5439_v22 = vadd.f32 %v7180_v19, %v1669_v28  ;;  %v7184_v15 = vld [vmem:[#allocation182_spill] sm:$0xff] }
 0x1b2   :  { %v1622_v7 = vadd.f32 %v1618_v51, %v1556_v43  ;;  %v1623_v1 = vadd.f32 %v1619_v8, %v1557_v55  ;;  %v1730_v27 = vmul.f32 %v7183_v54, %v4691_v16  ;;  %v1731_v35 = vmul.f32 %v7183_v54, %v4693_v20  ;;  %v7185_v55 = vld [vmem:[#allocation183_spill] sm:$0xff]  ;;  %v7186_v51 = vld [vmem:[#allocation173_spill] sm:$0xff] }
 0x1b3   :  { %7181 = vst [vmem:[#allocation62_spill] sm:$0xff] %v5434_v2  ;;  %7182 = vst [vmem:[#allocation63_spill] sm:$0xff] %v5439_v22  ;;  %v6764_v3 = vmax.f32 %v5434_v2, 0.0  ;;  %v1724_v17 = vadd.f32 %v1720_v37, %v1714_v32  ;;  %v1725_v30 = vadd.f32 %v1721_v36, %v1715_v38  ;;  %v6763_v9 = vmax.f32 %v5439_v22, 0.0  ;;  %v7187_v32 = vld [vmem:[#allocation184_spill] sm:$0xff] }
 0x1b4   :  { %v1770_v0 = vmul.f32 %v7184_v15, %v4673_v52  ;;  %v1771_v43 = vmul.f32 %v7184_v15, %v4675_v4  ;;  %v1776_v49 = vmul.f32 %v7185_v55, %v4683_v31  ;;  %v1777_v54 = vmul.f32 %v7185_v55, %v4685_v60  ;;  %v7188_v2 = vld [vmem:[#allocation180_spill] sm:$0xff]  ;;  %v7191_v55 = vld [vmem:[#allocation187_spill] sm:$0xff] }
 0x1b5   :  { %v1684_v8 = vmul.f32 %v7186_v51, %v6764_v3  ;;  %v1734_v28 = vadd.f32 %v1730_v27, %v1724_v17  ;;  %v1735_v34 = vadd.f32 %v1731_v35, %v1725_v30  ;;  %v1685_v37 = vmul.f32 %v7186_v51, %v6763_v9 }
 0x1b6   :  { %v1780_v19 = vadd.f32 %v1776_v49, %v1770_v0  ;;  %v1786_v38 = vmul.f32 %v7187_v32, %v4687_v11  ;;  %v1787_v36 = vmul.f32 %v7187_v32, %v4689_v23  ;;  %v1781_v27 = vadd.f32 %v1777_v54, %v1771_v43  ;;  %v7194_v54 = vld [vmem:[#allocation181_spill] sm:$0xff] }
 0x1b7   :  { %v1688_v15 = vadd.f32 %v1684_v8, %v1622_v7  ;;  %v5466_v21 = vadd.f32 %v7188_v2, %v1734_v28  ;;  %v5469_v30 = vadd.f32 %v7188_v2, %v1735_v34  ;;  %v1689_v17 = vadd.f32 %v1685_v37, %v1623_v1  ;;  %v7192_v8 = vld [vmem:[#allocation190_spill] sm:$0xff]  ;;  %v7193_v1 = vld [vmem:[#allocation191_spill] sm:$0xff] }
 0x1b8   :  { %v1790_v35 = vadd.f32 %v1786_v38, %v1780_v19  ;;  %v1796_v51 = vmul.f32 %v7191_v55, %v4691_v16  ;;  %v1797_v0 = vmul.f32 %v7191_v55, %v4693_v20  ;;  %v1791_v7 = vadd.f32 %v1787_v36, %v1781_v27  ;;  %v7195_v36 = vld [vmem:[#allocation192_spill] sm:$0xff] }
 0x1b9   :  { %7189 = vst [vmem:[#allocation53_spill] sm:$0xff] %v5466_v21  ;;  %7190 = vst [vmem:[#allocation64_spill] sm:$0xff] %v5469_v30  ;;  %v6766_v49 = vmax.f32 %v5466_v21, 0.0  ;;  %v6768_v32 = vmax.f32 %v5469_v30, 0.0  ;;  %v1836_v28 = vmul.f32 %v7192_v8, %v4673_v52  ;;  %v1837_v2 = vmul.f32 %v7192_v8, %v4675_v4  ;;  %v7199_v30 = vld [vmem:[#allocation195_spill] sm:$0xff] }
 0x1ba   :  { %v1800_v9 = vadd.f32 %v1796_v51, %v1790_v35  ;;  %v1842_v43 = vmul.f32 %v7193_v1, %v4683_v31  ;;  %v1843_v34 = vmul.f32 %v7193_v1, %v4685_v60  ;;  %v1801_v38 = vadd.f32 %v1797_v0, %v1791_v7  ;;  %v7196_v35 = vld [vmem:[#allocation188_spill] sm:$0xff] }
 0x1bb   :  { %v1750_v37 = vmul.f32 %v7194_v54, %v6766_v49  ;;  %v1751_v19 = vmul.f32 %v7194_v54, %v6768_v32  ;;  %v1852_v27 = vmul.f32 %v7195_v36, %v4687_v11  ;;  %v1853_v1 = vmul.f32 %v7195_v36, %v4689_v23 }
 0x1bc   :  { %v5494_v55 = vadd.f32 %v7196_v35, %v1800_v9  ;;  %v1846_v51 = vadd.f32 %v1842_v43, %v1836_v28  ;;  %v1847_v8 = vadd.f32 %v1843_v34, %v1837_v2  ;;  %v5499_v49 = vadd.f32 %v7196_v35, %v1801_v38  ;;  %v7200_v2 = vld [vmem:[#allocation198_spill] sm:$0xff] }
 0x1bd   :  { %v1754_v3 = vadd.f32 %v1750_v37, %v1688_v15  ;;  %v1755_v21 = vadd.f32 %v1751_v19, %v1689_v17  ;;  %v1862_v54 = vmul.f32 %v7199_v30, %v4691_v16  ;;  %v1863_v9 = vmul.f32 %v7199_v30, %v4693_v20  ;;  %v7201_v17 = vld [vmem:[#allocation199_spill] sm:$0xff]  ;;  %v7202_v37 = vld [vmem:[#allocation189_spill] sm:$0xff] }
 0x1be   :  { %7197 = vst [vmem:[#allocation60_spill] sm:$0xff] %v5494_v55  ;;  %7198 = vst [vmem:[#allocation67_spill] sm:$0xff] %v5499_v49  ;;  %v6772_v0 = vmax.f32 %v5494_v55, 0.0  ;;  %v1856_v7 = vadd.f32 %v1852_v27, %v1846_v51  ;;  %v1857_v32 = vadd.f32 %v1853_v1, %v1847_v8  ;;  %v6771_v28 = vmax.f32 %v5499_v49, 0.0  ;;  %v7203_v51 = vld [vmem:[#allocation200_spill] sm:$0xff] }
 0x1bf   :  { %v1902_v43 = vmul.f32 %v7200_v2, %v4673_v52  ;;  %v1903_v15 = vmul.f32 %v7200_v2, %v4675_v4  ;;  %v1908_v34 = vmul.f32 %v7201_v17, %v4683_v31  ;;  %v1909_v30 = vmul.f32 %v7201_v17, %v4685_v60  ;;  %v7204_v55 = vld [vmem:[#allocation196_spill] sm:$0xff]  ;;  %v7207_v17 = vld [vmem:[#allocation203_spill] sm:$0xff] }
 0x1c0   :  { %v1816_v19 = vmul.f32 %v7202_v37, %v6772_v0  ;;  %v1866_v38 = vadd.f32 %v1862_v54, %v1856_v7  ;;  %v1867_v36 = vadd.f32 %v1863_v9, %v1857_v32  ;;  %v1817_v27 = vmul.f32 %v7202_v37, %v6771_v28 }
 0x1c1   :  { %v1912_v35 = vadd.f32 %v1908_v34, %v1902_v43  ;;  %v1918_v8 = vmul.f32 %v7203_v51, %v4687_v11  ;;  %v1919_v1 = vmul.f32 %v7203_v51, %v4689_v23  ;;  %v1913_v54 = vadd.f32 %v1909_v30, %v1903_v15  ;;  %v7210_v30 = vld [vmem:[#allocation197_spill] sm:$0xff] }
 0x1c2   :  { %v1820_v2 = vadd.f32 %v1816_v19, %v1754_v3  ;;  %v5526_v22 = vadd.f32 %v7204_v55, %v1866_v38  ;;  %v5529_v32 = vadd.f32 %v7204_v55, %v1867_v36  ;;  %v1821_v7 = vadd.f32 %v1817_v27, %v1755_v21  ;;  %v7208_v19 = vld [vmem:[#allocation206_spill] sm:$0xff]  ;;  %v7209_v21 = vld [vmem:[#allocation207_spill] sm:$0xff] }
 0x1c3   :  { %v1922_v9 = vadd.f32 %v1918_v8, %v1912_v35  ;;  %v1928_v37 = vmul.f32 %v7207_v17, %v4691_v16  ;;  %v1929_v43 = vmul.f32 %v7207_v17, %v4693_v20  ;;  %v1923_v3 = vadd.f32 %v1919_v1, %v1913_v54  ;;  %v7211_v1 = vld [vmem:[#allocation208_spill] sm:$0xff] }
 0x1c4   :  { %7205 = vst [vmem:[#allocation70_spill] sm:$0xff] %v5526_v22  ;;  %7206 = vst [vmem:[#allocation71_spill] sm:$0xff] %v5529_v32  ;;  %v6774_v34 = vmax.f32 %v5526_v22, 0.0  ;;  %v6776_v51 = vmax.f32 %v5529_v32, 0.0  ;;  %v1968_v38 = vmul.f32 %v7208_v19, %v4673_v52  ;;  %v1969_v55 = vmul.f32 %v7208_v19, %v4675_v4  ;;  %v7215_v32 = vld [vmem:[#allocation211_spill] sm:$0xff] }
 0x1c5   :  { %v1932_v28 = vadd.f32 %v1928_v37, %v1922_v9  ;;  %v1974_v15 = vmul.f32 %v7209_v21, %v4683_v31  ;;  %v1975_v36 = vmul.f32 %v7209_v21, %v4685_v60  ;;  %v1933_v8 = vadd.f32 %v1929_v43, %v1923_v3  ;;  %v7212_v9 = vld [vmem:[#allocation204_spill] sm:$0xff] }
 0x1c6   :  { %v1882_v27 = vmul.f32 %v7210_v30, %v6774_v34  ;;  %v1883_v35 = vmul.f32 %v7210_v30, %v6776_v51  ;;  %v1984_v54 = vmul.f32 %v7211_v1, %v4687_v11  ;;  %v1985_v21 = vmul.f32 %v7211_v1, %v4689_v23 }
 0x1c7   :  { %v5554_v17 = vadd.f32 %v7212_v9, %v1932_v28  ;;  %v1978_v37 = vadd.f32 %v1974_v15, %v1968_v38  ;;  %v1979_v19 = vadd.f32 %v1975_v36, %v1969_v55  ;;  %v5559_v34 = vadd.f32 %v7212_v9, %v1933_v8  ;;  %v7216_v55 = vld [vmem:[#allocation214_spill] sm:$0xff] }
 0x1c8   :  { %v1886_v0 = vadd.f32 %v1882_v27, %v1820_v2  ;;  %v1887_v22 = vadd.f32 %v1883_v35, %v1821_v7  ;;  %v1994_v30 = vmul.f32 %v7215_v32, %v4691_v16  ;;  %v1995_v28 = vmul.f32 %v7215_v32, %v4693_v20  ;;  %v7217_v7 = vld [vmem:[#allocation215_spill] sm:$0xff]  ;;  %v7218_v27 = vld [vmem:[#allocation205_spill] sm:$0xff] }
 0x1c9   :  { %7213 = vst [vmem:[#allocation61_spill] sm:$0xff] %v5554_v17  ;;  %7214 = vst [vmem:[#allocation72_spill] sm:$0xff] %v5559_v34  ;;  %v6780_v43 = vmax.f32 %v5554_v17, 0.0  ;;  %v1988_v3 = vadd.f32 %v1984_v54, %v1978_v37  ;;  %v1989_v51 = vadd.f32 %v1985_v21, %v1979_v19  ;;  %v6779_v38 = vmax.f32 %v5559_v34, 0.0  ;;  %v7219_v37 = vld [vmem:[#allocation216_spill] sm:$0xff] }
 0x1ca   :  { %v2034_v15 = vmul.f32 %v7216_v55, %v4673_v52  ;;  %v2035_v2 = vmul.f32 %v7216_v55, %v4675_v4  ;;  %v2040_v36 = vmul.f32 %v7217_v7, %v4683_v31  ;;  %v2041_v32 = vmul.f32 %v7217_v7, %v4685_v60  ;;  %v7220_v17 = vld [vmem:[#allocation212_spill] sm:$0xff]  ;;  %v7223_v7 = vld [vmem:[#allocation219_spill] sm:$0xff] }
 0x1cb   :  { %v1948_v35 = vmul.f32 %v7218_v27, %v6780_v43  ;;  %v1998_v8 = vadd.f32 %v1994_v30, %v1988_v3  ;;  %v1999_v1 = vadd.f32 %v1995_v28, %v1989_v51  ;;  %v1949_v54 = vmul.f32 %v7218_v27, %v6779_v38 }
 0x1cc   :  { %v2044_v9 = vadd.f32 %v2040_v36, %v2034_v15  ;;  %v2050_v19 = vmul.f32 %v7219_v37, %v4687_v11  ;;  %v2051_v21 = vmul.f32 %v7219_v37, %v4689_v23  ;;  %v2045_v30 = vadd.f32 %v2041_v32, %v2035_v2  ;;  %v7226_v32 = vld [vmem:[#allocation213_spill] sm:$0xff] }
 0x1cd   :  { %v1952_v55 = vadd.f32 %v1948_v35, %v1886_v0  ;;  %v5586_v49 = vadd.f32 %v7220_v17, %v1998_v8  ;;  %v5589_v51 = vadd.f32 %v7220_v17, %v1999_v1  ;;  %v1953_v3 = vadd.f32 %v1949_v54, %v1887_v22  ;;  %v7224_v35 = vld [vmem:[#allocation222_spill] sm:$0xff]  ;;  %v7225_v22 = vld [vmem:[#allocation223_spill] sm:$0xff] }
 0x1ce   :  { %v2054_v28 = vadd.f32 %v2050_v19, %v2044_v9  ;;  %v2060_v27 = vmul.f32 %v7223_v7, %v4691_v16  ;;  %v2061_v15 = vmul.f32 %v7223_v7, %v4693_v20  ;;  %v2055_v0 = vadd.f32 %v2051_v21, %v2045_v30  ;;  %v7227_v21 = vld [vmem:[#allocation224_spill] sm:$0xff] }
 0x1cf   :  { %7221 = vst [vmem:[#allocation68_spill] sm:$0xff] %v5586_v49  ;;  %7222 = vst [vmem:[#allocation75_spill] sm:$0xff] %v5589_v51  ;;  %v6781_v36 = vmax.f32 %v5586_v49, 0.0  ;;  %v6787_v37 = vmax.f32 %v5589_v51, 0.0  ;;  %v2100_v8 = vmul.f32 %v7224_v35, %v4673_v52  ;;  %v2101_v17 = vmul.f32 %v7224_v35, %v4675_v4 }
 0x1d0   :  { %v2064_v38 = vadd.f32 %v2060_v27, %v2054_v28  ;;  %v2106_v2 = vmul.f32 %v7225_v22, %v4683_v31  ;;  %v2107_v1 = vmul.f32 %v7225_v22, %v4685_v60  ;;  %v2065_v19 = vadd.f32 %v2061_v15, %v2055_v0  ;;  %v7228_v28 = vld [vmem:[#allocation220_spill] sm:$0xff]  ;;  %v7231_v15 = vld [vmem:[#allocation227_spill] sm:$0xff] }
 0x1d1   :  { %v2014_v54 = vmul.f32 %v7226_v32, %v6781_v36  ;;  %v2015_v9 = vmul.f32 %v7226_v32, %v6787_v37  ;;  %v2116_v30 = vmul.f32 %v7227_v21, %v4687_v11  ;;  %v2117_v22 = vmul.f32 %v7227_v21, %v4689_v23 }
 0x1d2   :  { %v5614_v7 = vadd.f32 %v7228_v28, %v2064_v38  ;;  %v2110_v27 = vadd.f32 %v2106_v2, %v2100_v8  ;;  %v2111_v35 = vadd.f32 %v2107_v1, %v2101_v17  ;;  %v5621_v51 = vadd.f32 %v7228_v28, %v2065_v19  ;;  %v7234_v19 = vld [vmem:[#allocation221_spill] sm:$0xff] }
 0x1d3   :  { %v2018_v43 = vadd.f32 %v2014_v54, %v1952_v55  ;;  %v2019_v36 = vadd.f32 %v2015_v9, %v1953_v3  ;;  %v2126_v0 = vmul.f32 %v7231_v15, %v4691_v16  ;;  %v2127_v17 = vmul.f32 %v7231_v15, %v4693_v20  ;;  %v7232_v3 = vld [vmem:[#allocation229_spill] sm:$0xff]  ;;  %v7233_v54 = vld [vmem:[#allocation230_spill] sm:$0xff] }
 0x1d4   :  { %7229 = vst [vmem:[#allocation78_spill] sm:$0xff] %v5614_v7  ;;  %7230 = vst [vmem:[#allocation79_spill] sm:$0xff] %v5621_v51  ;;  %v6783_v38 = vmax.f32 %v5614_v7, 0.0  ;;  %v2120_v32 = vadd.f32 %v2116_v30, %v2110_v27  ;;  %v2121_v8 = vadd.f32 %v2117_v22, %v2111_v35  ;;  %v6786_v55 = vmax.f32 %v5621_v51, 0.0  ;;  %v7309_v7 = vld [vmem:[#allocation106_spill] sm:$0xff] }
 0x1d5   :  { %v2166_v2 = vmul.f32 %v7232_v3, %v4673_v52  ;;  %v2167_v1 = vmul.f32 %v7232_v3, %v4675_v4  ;;  %v2172_v9 = vmul.f32 %v7233_v54, %v4683_v31  ;;  %v2173_v27 = vmul.f32 %v7233_v54, %v4685_v60  ;;  %v7235_v4 = vld [vmem:[#allocation231_spill] sm:$0xff]  ;;  %v7236_v3 = vld [vmem:[#allocation228_spill] sm:$0xff] }
 0x1d6   :  { %v2080_v21 = vmul.f32 %v7234_v19, %v6783_v38  ;;  %v2130_v30 = vadd.f32 %v2126_v0, %v2120_v32  ;;  %v2131_v28 = vadd.f32 %v2127_v17, %v2121_v8  ;;  %v2081_v52 = vmul.f32 %v7234_v19, %v6786_v55  ;;  %v7239_v17 = vld [vmem:[#allocation234_spill] sm:$0xff] }
 0x1d7   :  { %v2176_v35 = vadd.f32 %v2172_v9, %v2166_v2  ;;  %v2182_v31 = vmul.f32 %v7235_v4, %v4687_v11  ;;  %v2183_v22 = vmul.f32 %v7235_v4, %v4689_v23  ;;  %v2177_v60 = vadd.f32 %v2173_v27, %v2167_v1  ;;  %v7240_v9 = vld [vmem:[#allocation18_spill] sm:$0xff]  ;;  %v7244_v4 = vld [vmem:[#allocation20_spill] sm:$0xff] }
 0x1d8   :  { %v2084_v15 = vadd.f32 %v2080_v21, %v2018_v43  ;;  %v5654_v38 = vadd.f32 %v7236_v3, %v2130_v30  ;;  %v5657_v0 = vadd.f32 %v7236_v3, %v2131_v28  ;;  %v2085_v32 = vadd.f32 %v2081_v52, %v2019_v36  ;;  %v7242_v21 = vld [vmem:[#allocation19_spill] sm:$0xff] }
 0x1d9   :  { %v2186_v8 = vadd.f32 %v2182_v31, %v2176_v35  ;;  %v2192_v2 = vmul.f32 %v7239_v17, %v4691_v16  ;;  %v2193_v11 = vmul.f32 %v7239_v17, %v4693_v20  ;;  %v2187_v54 = vadd.f32 %v2183_v22, %v2177_v60  ;;  %v7246_v3 = vld [vmem:[#allocation235_spill] sm:$0xff] }
 0x1da   :  { %7237 = vst [vmem:[#allocation69_spill] sm:$0xff] %v5654_v38  ;;  %7238 = vst [vmem:[#allocation80_spill] sm:$0xff] %v5657_v0  ;;  %v6785_v23 = vmax.f32 %v5654_v38, 0.0  ;;  %v6784_v43 = vmax.f32 %v5657_v0, 0.0  ;;  %v5670_v1 = vstv %s5618_s0  ;;  %v7241_v19 = vmax.f32 %v7240_v9, 0.0  ;;  %v7270_v38 = vld [vmem:[#allocation42_spill] sm:$0xff] }
 0x1db   :  { %v2196_v36 = vadd.f32 %v2192_v2, %v2186_v8  ;;  %v7243_v20 = vmax.f32 %v7242_v21, 0.0  ;;  %v5681_v28 = vstv %s5625_s10  ;;  %v2197_v35 = vadd.f32 %v2193_v11, %v2187_v54  ;;  %v7248_v8 = vld [vmem:[#allocation21_spill] sm:$0xff]  ;;  %s5920_s0 = sld [smem:[#allocation8 + $0x3a]] }
 0x1dc   :  { %v174_v16 = vmul.f32 %v5670_v1, %v7241_v19  ;;  %v2146_v27 = vmul.f32 %v4614_v59, %v6785_v23  ;;  %v2147_v52 = vmul.f32 %v4614_v59, %v6784_v43  ;;  %v7245_v31 = vmax.f32 %v7244_v4, 0.0  ;;  %v7251_v4 = vld [vmem:[#allocation22_spill] sm:$0xff]  ;;  %s5934_s10 = sld [smem:[#allocation8 + $0x3b]] }
 0x1dd   :  { %v175_v30 = vmul.f32 %v5670_v1, %v7243_v20  ;;  %v5693_v60 = vadd.f32 %v7246_v3, %v2196_v36  ;;  %v7249_v17 = vmax.f32 %v7248_v8, 0.0  ;;  %v5699_v9 = vstv %s5630_s11  ;;  %s5972_s11 = sld [smem:[#allocation8 + $0x3c]] }
 0x1de   :  { %v240_v22 = vmul.f32 %v5681_v28, %v7245_v31  ;;  %v5702_v19 = vstv %s5639_s12  ;;  %v2150_v59 = vadd.f32 %v2146_v27, %v2084_v15  ;;  %v2151_v11 = vadd.f32 %v2147_v52, %v2085_v32  ;;  %v7255_v27 = vld [vmem:[#allocation24_spill] sm:$0xff]  ;;  %s5986_s12 = sld [smem:[#allocation8 + $0x3d]] }
 0x1df   :  { %7247 = vst [vmem:[#allocation76_spill] sm:$0xff] %v5693_v60  ;;  %v241_v2 = vmul.f32 %v5681_v28, %v7249_v17  ;;  %v5707_v54 = vadd.f32 %v7246_v3, %v2197_v35  ;;  %v6788_v36 = vmax.f32 %v5693_v60, 0.0  ;;  %v7252_v31 = vmax.f32 %v7251_v4, 0.0  ;;  %v7253_v17 = vld [vmem:[#allocation23_spill] sm:$0xff]  ;;  %v7257_v35 = vld [vmem:[#allocation25_spill] sm:$0xff] }
 0x1e0   :  { %v244_v21 = vadd.f32 %v240_v22, %v174_v16  ;;  %v7254_v43 = vmax.f32 %v7253_v17, 0.0  ;;  %v7256_v52 = vmax.f32 %v7255_v27, 0.0  ;;  %v7258_v22 = vmax.f32 %v7257_v35, 0.0  ;;  %v7260_v17 = vld [vmem:[#allocation27_spill] sm:$0xff]  ;;  %v7262_v35 = vld [vmem:[#allocation28_spill] sm:$0xff]  ;;  %v7268_v60 = vld [vmem:[#allocation41_spill] sm:$0xff] }
 0x1e1   :  { %7250 = vst [vmem:[#allocation83_spill] sm:$0xff] %v5707_v54  ;;  %v245_v20 = vadd.f32 %v241_v2, %v175_v30  ;;  %v306_v8 = vmul.f32 %v5699_v9, %v7252_v31  ;;  %v6790_v32 = vmax.f32 %v5707_v54, 0.0  ;;  %v5726_v30 = vstv %s5659_s13  ;;  %v7259_v2 = vld [vmem:[#allocation236_spill] sm:$0xff]  ;;  %s6012_s13 = sld [smem:[#allocation8 + $0x3e]] }
 0x1e2   :  { %v307_v15 = vmul.f32 %v5699_v9, %v7254_v43  ;;  %v372_v16 = vmul.f32 %v5702_v19, %v7256_v52  ;;  %v373_v3 = vmul.f32 %v5702_v19, %v7258_v22  ;;  %v2212_v4 = vmul.f32 %v7259_v2, %v6788_v36 }
 0x1e3   :  { %v310_v31 = vadd.f32 %v306_v8, %v244_v21  ;;  %v7261_v23 = vmax.f32 %v7260_v17, 0.0  ;;  %v2213_v52 = vmul.f32 %v7259_v2, %v6790_v32  ;;  %v7263_v22 = vmax.f32 %v7262_v35, 0.0  ;;  %v7264_v8 = vld [vmem:[#allocation33_spill] sm:$0xff]  ;;  %v7266_v2 = vld [vmem:[#allocation34_spill] sm:$0xff] }
 0x1e4   :  { %v311_v43 = vadd.f32 %v307_v15, %v245_v20  ;;  %v5745_v37 = vstv %s5665_s14  ;;  %v5748_v36 = vstv %s5672_s15  ;;  %v2216_v21 = vadd.f32 %v2212_v4, %v2150_v59  ;;  %s6026_s14 = sld [smem:[#allocation8 + $0x3f]] }
 0x1e5   :  { %v438_v27 = vmul.f32 %v5726_v30, %v7261_v23  ;;  %v439_v55 = vmul.f32 %v5726_v30, %v7263_v22  ;;  %v376_v20 = vadd.f32 %v372_v16, %v310_v31  ;;  %v7265_v15 = vmax.f32 %v7264_v8, 0.0  ;;  %v7276_v8 = vld [vmem:[#allocation50_spill] sm:$0xff] }
 0x1e6   :  { %v377_v23 = vadd.f32 %v373_v3, %v311_v43  ;;  %v2217_v54 = vadd.f32 %v2213_v52, %v2151_v11  ;;  %v7267_v32 = vmax.f32 %v7266_v2, 0.0  ;;  %v7269_v22 = vmax.f32 %v7268_v60, 0.0  ;;  %v7280_v2 = vld [vmem:[#allocation58_spill] sm:$0xff] }
 0x1e7   :  { %v504_v17 = vmul.f32 %v5745_v37, %v7265_v15  ;;  %v7271_v51 = vmax.f32 %v7270_v38, 0.0  ;;  %v5763_v16 = vadd.f32 %v4665_v58, %v2216_v21  ;;  %v442_v3 = vadd.f32 %v438_v27, %v376_v20  ;;  %v7274_v38 = vld [vmem:[#allocation49_spill] sm:$0xff] }
 0x1e8   :  { %v505_v35 = vmul.f32 %v5745_v37, %v7267_v32  ;;  %v570_v0 = vmul.f32 %v5748_v36, %v7269_v22  ;;  %v443_v4 = vadd.f32 %v439_v55, %v377_v23  ;;  %v5766_v11 = vstv %s5704_s16  ;;  %v7278_v20 = vld [vmem:[#allocation57_spill] sm:$0xff] }
 0x1e9   :  { %v571_v59 = vmul.f32 %v5748_v36, %v7271_v51  ;;  %7272 = vst [vmem:[#allocation86_spill] sm:$0xff] %v5763_v16  ;;  %v5769_v32 = vadd.f32 %v4665_v58, %v2217_v54  ;;  %v5772_v60 = vstv %s5709_s17  ;;  %v508_v31 = vadd.f32 %v504_v17, %v442_v3 }
 0x1ea   :  { %v509_v43 = vadd.f32 %v505_v35, %v443_v4  ;;  %v7275_v52 = vmax.f32 %v7274_v38, 0.0  ;;  %v7277_v21 = vmax.f32 %v7276_v8, 0.0  ;;  %v7279_v23 = vmax.f32 %v7278_v20, 0.0  ;;  %v7283_v8 = vld [vmem:[#allocation65_spill] sm:$0xff] }
 0x1eb   :  { %7273 = vst [vmem:[#allocation87_spill] sm:$0xff] %v5769_v32  ;;  %v2237_v55 = vmax.f32 %v5763_v16, %v5769_v32  ;;  %v5786_v54 = vstv %s5728_s2  ;;  %v574_v15 = vadd.f32 %v570_v0, %v508_v31  ;;  %v7281_v35 = vmax.f32 %v7280_v2, 0.0 }
 0x1ec   :  { %v636_v51 = vmul.f32 %v5766_v11, %v7275_v52  ;;  %v637_v27 = vmul.f32 %v5766_v11, %v7277_v21  ;;  %v702_v58 = vmul.f32 %v5772_v60, %v7279_v23  ;;  %v575_v17 = vadd.f32 %v571_v59, %v509_v43  ;;  %v7285_v23 = vld [vmem:[#allocation66_spill] sm:$0xff]  ;;  %v7287_v59 = vld [vmem:[#allocation73_spill] sm:$0xff] }
 0x1ed   :  { %v703_v22 = vmul.f32 %v5772_v60, %v7281_v35  ;;  %v5792_v3 = vstv %s5736_s3  ;;  %2238 = vmax.xlane.f32.xlu0 %v2237_v55  ;;  %v5794_v4 = vstv %s2454_s18  ;;  %v7284_v21 = vmax.f32 %v7283_v8, 0.0  ;;  %v7289_v35 = vld [vmem:[#allocation74_spill] sm:$0xff] }
 0x1ee   :  { %7282 = vst [vmem:[#allocation77_spill] sm:$0xff] %v5794_v4  ;;  %v640_v38 = vadd.f32 %v636_v51, %v574_v15  ;;  %v641_v52 = vadd.f32 %v637_v27, %v575_v17  ;;  %v7286_v32 = vmax.f32 %v7285_v23, 0.0  ;;  %v7288_v31 = vmax.f32 %v7287_v59, 0.0  ;;  %v7292_v17 = vld [vmem:[#allocation81_spill] sm:$0xff]  ;;  %v7294_v59 = vld [vmem:[#allocation82_spill] sm:$0xff] }
 0x1ef   :  { %v768_v20 = vmul.f32 %v5786_v54, %v7284_v21  ;;  %v7290_v51 = vmax.f32 %v7289_v35, 0.0  ;;  %v5810_v15 = vstv %s2461_s19  ;;  %v7293_v8 = vmax.f32 %v7292_v17, 0.0 }
 0x1f0   :  { %v769_v0 = vmul.f32 %v5786_v54, %v7286_v32  ;;  %v834_v43 = vmul.f32 %v5792_v3, %v7288_v31  ;;  %v706_v55 = vadd.f32 %v702_v58, %v640_v38  ;;  %v707_v2 = vadd.f32 %v703_v22, %v641_v52  ;;  %7291 = vst [vmem:[#allocation88_spill] sm:$0xff] %v5810_v15  ;;  %v7297_v38 = vld [vmem:[#allocation89_spill] sm:$0xff] }
 0x1f1   :  { %v835_v27 = vmul.f32 %v5792_v3, %v7290_v51  ;;  %v900_v32 = vmul.f32 %v5794_v4, %v7293_v8  ;;  %v7295_v31 = vmax.f32 %v7294_v59, 0.0  ;;  %v5820_v22 = vstv %s2468_s22  ;;  %v7299_v8 = vld [vmem:[#allocation90_spill] sm:$0xff] }
 0x1f2   :  { %v772_v21 = vadd.f32 %v768_v20, %v706_v55  ;;  %v773_v23 = vadd.f32 %v769_v0, %v707_v2  ;;  %7296 = vst [vmem:[#allocation84_spill] sm:$0xff] %v5820_v22  ;;  %v7298_v52 = vmax.f32 %v7297_v38, 0.0  ;;  %v7300_v20 = vmax.f32 %v7299_v8, 0.0  ;;  %v7302_v2 = vld [vmem:[#allocation97_spill] sm:$0xff] }
 0x1f3   :  { %v901_v58 = vmul.f32 %v5794_v4, %v7295_v31  ;;  %v5832_v55 = vstv %s2475_s23  ;;  %v7303_v59 = vmax.f32 %v7302_v2, 0.0  ;;  %v7307_v8 = vld [vmem:[#allocation105_spill] sm:$0xff]  ;;  %v7310_v2 = vmax.f32 %v7309_v7, 0.0  ;;  %v7315_v7 = vld [vmem:[#allocation114_spill] sm:$0xff] }
 0x1f4   :  { %v966_v35 = vmul.f32 %v5810_v15, %v7298_v52  ;;  %v838_v51 = vadd.f32 %v834_v43, %v772_v21  ;;  %v839_v17 = vadd.f32 %v835_v27, %v773_v23  ;;  %v967_v0 = vmul.f32 %v5810_v15, %v7300_v20  ;;  %7301 = vst [vmem:[#allocation91_spill] sm:$0xff] %v5832_v55  ;;  %v7304_v43 = vld [vmem:[#allocation98_spill] sm:$0xff] }
 0x1f5   :  { %v1032_v31 = vmul.f32 %v5820_v22, %v7303_v59  ;;  %v7305_v21 = vmax.f32 %v7304_v43, 0.0  ;;  %v5844_v23 = vstv %s2482_s24  ;;  %v7308_v20 = vmax.f32 %v7307_v8, 0.0  ;;  %v7341_v4 = vld [vmem:[#allocation162_spill] sm:$0xff] }
 0x1f6   :  { %v904_v38 = vadd.f32 %v900_v32, %v838_v51  ;;  %v905_v52 = vadd.f32 %v901_v58, %v839_v17  ;;  %7306 = vst [vmem:[#allocation94_spill] sm:$0xff] %v5844_v23  ;;  %v1099_v59 = vmul.f32 %v5832_v55, %v7310_v2  ;;  %v5853_v58 = vstv %s5805_s25  ;;  %v7313_v17 = vld [vmem:[#allocation113_spill] sm:$0xff] }
 0x1f7   :  { %v1033_v27 = vmul.f32 %v5820_v22, %v7305_v21  ;;  %v1098_v16 = vmul.f32 %v5832_v55, %v7308_v20  ;;  %7311 = vst [vmem:[#allocation95_spill] sm:$0xff] %v5853_v58  ;;  %v5855_v51 = vstv %s2496_s26  ;;  %v7314_v43 = vmax.f32 %v7313_v17, 0.0  ;;  %v7320_v55 = vld [vmem:[#allocation122_spill] sm:$0xff] }
 0x1f8   :  { %v970_v49 = vadd.f32 %v966_v35, %v904_v38  ;;  %v971_v32 = vadd.f32 %v967_v0, %v905_v52  ;;  %7312 = vst [vmem:[#allocation85_spill] sm:$0xff] %v5855_v51  ;;  %v7316_v34 = vmax.f32 %v7315_v7, 0.0  ;;  %v5866_v35 = vstv %s5815_s4  ;;  %v7318_v0 = vld [vmem:[#allocation121_spill] sm:$0xff]  ;;  %v7325_v7 = vld [vmem:[#allocation130_spill] sm:$0xff] }
 0x1f9   :  { %v1164_v21 = vmul.f32 %v5844_v23, %v7314_v43  ;;  %7317 = vst [vmem:[#allocation96_spill] sm:$0xff] %v5866_v35  ;;  %v7319_v38 = vmax.f32 %v7318_v0, 0.0  ;;  %v7321_v17 = vmax.f32 %v7320_v55, 0.0  ;;  %v7323_v22 = vmax.f32 %v7322_v5, 0.0 }
 0x1fa   :  { %v1036_v8 = vadd.f32 %v1032_v31, %v970_v49  ;;  %v1037_v20 = vadd.f32 %v1033_v27, %v971_v32  ;;  %v1165_v2 = vmul.f32 %v5844_v23, %v7316_v34  ;;  %v5878_v32 = vstv %s5822_s27  ;;  %v7327_v23 = vld [vmem:[#allocation137_spill] sm:$0xff] }
 0x1fb   :  { %v1230_v52 = vmul.f32 %v5853_v58, %v7319_v38  ;;  %v1231_v43 = vmul.f32 %v5853_v58, %v7321_v17  ;;  %v1296_v49 = vmul.f32 %v5855_v51, %v7323_v22  ;;  %7324 = vst [vmem:[#allocation92_spill] sm:$0xff] %v5878_v32  ;;  %v5881_v34 = vstv %s5827_s28  ;;  %v7329_v58 = vld [vmem:[#allocation138_spill] sm:$0xff] }
 0x1fc   :  { %v1102_v31 = vadd.f32 %v1098_v16, %v1036_v8  ;;  %v1103_v27 = vadd.f32 %v1099_v59, %v1037_v20  ;;  %v7326_v0 = vmax.f32 %v7325_v7, 0.0  ;;  %v7328_v55 = vmax.f32 %v7327_v23, 0.0  ;;  %v7331_v7 = vld [vmem:[#allocation145_spill] sm:$0xff]  ;;  %v7333_v23 = vld [vmem:[#allocation146_spill] sm:$0xff] }
 0x1fd   :  { %v7330_v5 = vmax.f32 %v7329_v58, 0.0  ;;  %v5895_v16 = vstv %s5834_s29  ;;  %v5898_v20 = vstv %s5839_s30  ;;  %v5900_v29 = vstv %s2538_s8  ;;  %v7335_v58 = vld [vmem:[#allocation153_spill] sm:$0xff] }
 0x1fe   :  { %v1297_v38 = vmul.f32 %v5855_v51, %v7326_v0  ;;  %v1362_v17 = vmul.f32 %v5866_v35, %v7328_v55  ;;  %v1168_v59 = vadd.f32 %v1164_v21, %v1102_v31  ;;  %v1169_v8 = vadd.f32 %v1165_v2, %v1103_v27 }
 0x1ff   :  { %v1363_v22 = vmul.f32 %v5866_v35, %v7330_v5  ;;  %v7332_v40 = vmax.f32 %v7331_v7, 0.0  ;;  %v7334_v51 = vmax.f32 %v7333_v23, 0.0  ;;  %v7336_v15 = vmax.f32 %v7335_v58, 0.0  ;;  %v7337_v35 = vld [vmem:[#allocation154_spill] sm:$0xff] }
 0x200   :  { %v7338_v21 = vmax.f32 %v7337_v35, 0.0  ;;  %v1234_v31 = vadd.f32 %v1230_v52, %v1168_v59  ;;  %v1235_v27 = vadd.f32 %v1231_v43, %v1169_v8  ;;  %v7340_v57 = vmax.f32 %v7339_v50, 0.0  ;;  %v7347_v43 = vld [vmem:[#allocation177_spill] sm:$0xff] }
 0x201   :  { %v1428_v0 = vmul.f32 %v5878_v32, %v7332_v40  ;;  %v1429_v55 = vmul.f32 %v5878_v32, %v7334_v51  ;;  %v1494_v5 = vmul.f32 %v5881_v34, %v7336_v15  ;;  %v7342_v40 = vmax.f32 %v7341_v4, 0.0  ;;  %v7343_v51 = vld [vmem:[#allocation169_spill] sm:$0xff]  ;;  %v7345_v32 = vld [vmem:[#allocation170_spill] sm:$0xff] }
 0x202   :  { %v1495_v2 = vmul.f32 %v5881_v34, %v7338_v21  ;;  %v1560_v7 = vmul.f32 %v5895_v16, %v7340_v57  ;;  %v7344_v58 = vmax.f32 %v7343_v51, 0.0  ;;  %v7346_v35 = vmax.f32 %v7345_v32, 0.0 }
 0x203   :  { %v1561_v23 = vmul.f32 %v5895_v16, %v7342_v40  ;;  %v7348_v59 = vmax.f32 %v7347_v43, 0.0  ;;  %v5932_v57 = vstv %s5860_s9  ;;  %v1300_v4 = vadd.f32 %v1296_v49, %v1234_v31 }
 0x204   :  { %v1626_v15 = vmul.f32 %v5898_v20, %v7344_v58  ;;  %v1627_v52 = vmul.f32 %v5898_v20, %v7346_v35  ;;  %v1301_v8 = vadd.f32 %v1297_v38, %v1235_v27  ;;  %v7349_v21 = vmax.f32 %v4748_v33, 0.0 }
 0x205   :  { %v1692_v50 = vmul.f32 %v5900_v29, %v7348_v59  ;;  %v7350_v51 = vmax.f32 %v4751_v41, 0.0  ;;  %v7351_v58 = vmax.f32 %v4768_v53, 0.0  ;;  %v7352_v43 = vmax.f32 %v4771_v45, 0.0 }
 0x206   :  { %v176_v40 = vmul.f32 %v5670_v1, %v7349_v21  ;;  %v7353_v49 = vmax.f32 %v4806_v44, 0.0  ;;  %v7354_v33 = vmax.f32 %v4809_v56, 0.0  ;;  %v1366_v27 = vadd.f32 %v1362_v17, %v1300_v4  ;;  %v7355_v21 = vld [vmem:[#allocation178_spill] sm:$0xff] }
 0x207   :  { %v177_v32 = vmul.f32 %v5670_v1, %v7350_v51  ;;  %v242_v35 = vmul.f32 %v5681_v28, %v7351_v58  ;;  %v243_v59 = vmul.f32 %v5681_v28, %v7352_v43  ;;  %v1367_v41 = vadd.f32 %v1363_v22, %v1301_v8  ;;  %v7359_v22 = vld [vmem:[#allocation185_spill] sm:$0xff] }
 0x208   :  { %v308_v38 = vmul.f32 %v5699_v9, %v7353_v49  ;;  %v309_v31 = vmul.f32 %v5699_v9, %v7354_v33  ;;  %v7356_v1 = vmax.f32 %v7355_v21, 0.0  ;;  %v5958_v51 = vstv %s5883_s1  ;;  %v7361_v49 = vld [vmem:[#allocation186_spill] sm:$0xff] }
 0x209   :  { %v246_v58 = vadd.f32 %v242_v35, %v176_v40  ;;  %v247_v45 = vadd.f32 %v243_v59, %v177_v32  ;;  %v7357_v28 = vmax.f32 %v4836_v13, 0.0  ;;  %v7358_v43 = vmax.f32 %v4839_v48, 0.0 }
 0x20a   :  { %v1693_v53 = vmul.f32 %v5900_v29, %v7356_v1  ;;  %v1432_v9 = vadd.f32 %v1428_v0, %v1366_v27  ;;  %v1433_v17 = vadd.f32 %v1429_v55, %v1367_v41  ;;  %v7360_v4 = vmax.f32 %v7359_v22, 0.0  ;;  %v7365_v27 = vld [vmem:[#allocation193_spill] sm:$0xff] }
 0x20b   :  { %v374_v44 = vmul.f32 %v5702_v19, %v7357_v28  ;;  %v375_v56 = vmul.f32 %v5702_v19, %v7358_v43  ;;  %v7362_v33 = vmax.f32 %v7361_v49, 0.0  ;;  %v312_v32 = vadd.f32 %v308_v38, %v246_v58 }
 0x20c   :  { %v1758_v8 = vmul.f32 %v5932_v57, %v7360_v4  ;;  %v313_v13 = vadd.f32 %v309_v31, %v247_v45  ;;  %v7363_v35 = vmax.f32 %v4866_v42, 0.0  ;;  %v7364_v19 = vmax.f32 %v4869_v10, 0.0  ;;  %v7369_v45 = vld [vmem:[#allocation194_spill] sm:$0xff] }
 0x20d   :  { %v1759_v40 = vmul.f32 %v5932_v57, %v7362_v33  ;;  %v1498_v55 = vadd.f32 %v1494_v5, %v1432_v9  ;;  %v1499_v59 = vadd.f32 %v1495_v2, %v1433_v17  ;;  %v7366_v41 = vmax.f32 %v7365_v27, 0.0  ;;  %v7375_v33 = vld [vmem:[#allocation202_spill] sm:$0xff] }
 0x20e   :  { %v440_v48 = vmul.f32 %v5726_v30, %v7363_v35  ;;  %v441_v0 = vmul.f32 %v5726_v30, %v7364_v19  ;;  %v5984_v1 = vstv %s5920_s0  ;;  %v378_v38 = vadd.f32 %v374_v44, %v312_v32 }
 0x20f   :  { %v1824_v21 = vmul.f32 %v5958_v51, %v7366_v41  ;;  %v379_v31 = vadd.f32 %v375_v56, %v313_v13  ;;  %v7367_v42 = vmax.f32 %v4894_v61, 0.0  ;;  %v7368_v10 = vmax.f32 %v4899_v12, 0.0 }
 0x210   :  { %v1564_v5 = vadd.f32 %v1560_v7, %v1498_v55  ;;  %v1565_v2 = vadd.f32 %v1561_v23, %v1499_v59  ;;  %v7370_v28 = vmax.f32 %v7369_v45, 0.0  ;;  %v5998_v9 = vstv %s5934_s10  ;;  %v7373_v23 = vld [vmem:[#allocation201_spill] sm:$0xff] }
 0x211   :  { %v506_v58 = vmul.f32 %v5745_v37, %v7367_v42  ;;  %v507_v30 = vmul.f32 %v5745_v37, %v7368_v10  ;;  %v444_v17 = vadd.f32 %v440_v48, %v378_v38  ;;  %v445_v44 = vadd.f32 %v441_v0, %v379_v31  ;;  %v7379_v0 = vld [vmem:[#allocation209_spill] sm:$0xff]  ;;  %v7383_v42 = vld [vmem:[#allocation210_spill] sm:$0xff] }
 0x212   :  { %v1825_v43 = vmul.f32 %v5958_v51, %v7370_v28  ;;  %v7371_v56 = vmax.f32 %v4926_v25, 0.0  ;;  %v7372_v22 = vmax.f32 %v4929_v26, 0.0  ;;  %v1630_v37 = vadd.f32 %v1626_v15, %v1564_v5 }
 0x213   :  { %v1631_v7 = vadd.f32 %v1627_v52, %v1565_v2  ;;  %v7374_v4 = vmax.f32 %v7373_v23, 0.0  ;;  %v7376_v32 = vmax.f32 %v7375_v33, 0.0  ;;  %v510_v35 = vadd.f32 %v506_v58, %v444_v17  ;;  %v7393_v23 = vld [vmem:[#allocation225_spill] sm:$0xff] }
 0x214   :  { %v572_v61 = vmul.f32 %v5748_v36, %v7371_v56  ;;  %v573_v12 = vmul.f32 %v5748_v36, %v7372_v22  ;;  %v511_v25 = vadd.f32 %v507_v30, %v445_v44  ;;  %v7377_v48 = vmax.f32 %v4954_v46, 0.0  ;;  %v7389_v56 = vld [vmem:[#allocation218_spill] sm:$0xff] }
 0x215   :  { %v1890_v49 = vmul.f32 %v5984_v1, %v7374_v4  ;;  %v1891_v13 = vmul.f32 %v5984_v1, %v7376_v32  ;;  %v7378_v36 = vmax.f32 %v4959_v24, 0.0  ;;  %v1696_v52 = vadd.f32 %v1692_v50, %v1630_v37 }
 0x216   :  { %v638_v26 = vmul.f32 %v5766_v11, %v7377_v48  ;;  %v1697_v19 = vadd.f32 %v1693_v53, %v1631_v7  ;;  %v7380_v55 = vmax.f32 %v7379_v0, 0.0  ;;  %v6024_v27 = vstv %s5972_s11 }
 0x217   :  { %v639_v15 = vmul.f32 %v5766_v11, %v7378_v36  ;;  %v576_v41 = vadd.f32 %v572_v61, %v510_v35  ;;  %v577_v38 = vadd.f32 %v573_v12, %v511_v25  ;;  %v7381_v46 = vmax.f32 %v4986_v18, 0.0  ;;  %v7397_v36 = vld [vmem:[#allocation31_spill] sm:$0xff] }
 0x218   :  { %v1956_v59 = vmul.f32 %v5998_v9, %v7380_v55  ;;  %v7382_v24 = vmax.f32 %v4989_v63, 0.0  ;;  %v1762_v50 = vadd.f32 %v1758_v8, %v1696_v52  ;;  %v1763_v53 = vadd.f32 %v1759_v40, %v1697_v19  ;;  %v7387_v40 = vld [vmem:[#allocation217_spill] sm:$0xff] }
 0x219   :  { %v704_v31 = vmul.f32 %v5772_v60, %v7381_v46  ;;  %v7384_v58 = vmax.f32 %v7383_v42, 0.0  ;;  %v6038_v30 = vstv %s5986_s12  ;;  %v642_v5 = vadd.f32 %v638_v26, %v576_v41  ;;  %v7396_v26 = vld [vmem:[#allocation77_spill] sm:$0xff] }
 0x21a   :  { %v705_v11 = vmul.f32 %v5772_v60, %v7382_v24  ;;  %v643_v2 = vadd.f32 %v639_v15, %v577_v38  ;;  %v7385_v45 = vmax.f32 %v5014_v39, 0.0  ;;  %v7386_v28 = vmax.f32 %v5019_v14, 0.0  ;;  %v7401_v38 = vld [vmem:[#allocation26_spill] sm:$0xff]  ;;  %v7404_v24 = vld [vmem:[#allocation32_spill] sm:$0xff] }
 0x21b   :  { %v1957_v10 = vmul.f32 %v5998_v9, %v7384_v58  ;;  %v1828_v60 = vadd.f32 %v1824_v21, %v1762_v50  ;;  %v1829_v8 = vadd.f32 %v1825_v43, %v1763_v53  ;;  %v7388_v17 = vmax.f32 %v7387_v40, 0.0 }
 0x21c   :  { %v770_v18 = vmul.f32 %v5786_v54, %v7385_v45  ;;  %v771_v63 = vmul.f32 %v5786_v54, %v7386_v28  ;;  %v7390_v61 = vmax.f32 %v7389_v56, 0.0  ;;  %v708_v12 = vadd.f32 %v704_v31, %v642_v5  ;;  %v7403_v31 = vld [vmem:[#allocation88_spill] sm:$0xff]  ;;  %v7408_v5 = vld [vmem:[#allocation233_spill] sm:$0xff] }
 0x21d   :  { %v2022_v44 = vmul.f32 %v6024_v27, %v7388_v17  ;;  %v709_v37 = vadd.f32 %v705_v11, %v643_v2  ;;  %v7391_v39 = vmax.f32 %v5046_v6, 0.0  ;;  %v7392_v14 = vmax.f32 %v5049_v62, 0.0  ;;  %v7413_v17 = vld [vmem:[#allocation35_spill] sm:$0xff] }
 0x21e   :  { %v2023_v22 = vmul.f32 %v6024_v27, %v7390_v61  ;;  %v1894_v21 = vadd.f32 %v1890_v49, %v1828_v60  ;;  %v1895_v43 = vadd.f32 %v1891_v13, %v1829_v8  ;;  %v7394_v4 = vmax.f32 %v7393_v23, 0.0  ;;  %v7399_v49 = vld [vmem:[#allocation226_spill] sm:$0xff]  ;;  %v7412_v8 = vld [vmem:[#allocation84_spill] sm:$0xff] }
 0x21f   :  { %v836_v7 = vmul.f32 %v5792_v3, %v7391_v39  ;;  %v837_v54 = vmul.f32 %v5792_v3, %v7392_v14  ;;  %v6062_v32 = vstv %s6012_s13  ;;  %v774_v35 = vadd.f32 %v770_v18, %v708_v12  ;;  %v7415_v12 = vld [vmem:[#allocation237_spill] sm:$0xff]  ;;  %v7419_v23 = vld [vmem:[#allocation38_spill] sm:$0xff] }
 0x220   :  { %v2088_v33 = vmul.f32 %v6038_v30, %v7394_v4  ;;  %v775_v25 = vadd.f32 %v771_v63, %v709_v37  ;;  %v7395_v48 = vmax.f32 %v5074_v47, 0.0  ;;  %v7398_v15 = vmax.f32 %v7397_v36, 0.0  ;;  %v7410_v63 = vld [vmem:[#allocation29_spill] sm:$0xff] }
 0x221   :  { %v1960_v52 = vadd.f32 %v1956_v59, %v1894_v21  ;;  %v1961_v3 = vadd.f32 %v1957_v10, %v1895_v43  ;;  %v7400_v13 = vmax.f32 %v7399_v49, 0.0  ;;  %v6074_v0 = vstv %s6026_s14  ;;  %v7406_v59 = vld [vmem:[#allocation232_spill] sm:$0xff]  ;;  %v7426_v49 = vld [vmem:[#allocation94_spill] sm:$0xff] }
 0x222   :  { %v902_v6 = vmul.f32 %v7396_v26, %v7395_v48  ;;  %v903_v62 = vmul.f32 %v7396_v26, %v7398_v15  ;;  %v840_v55 = vadd.f32 %v836_v7, %v774_v35  ;;  %v841_v41 = vadd.f32 %v837_v54, %v775_v25  ;;  %v7417_v7 = vld [vmem:[#allocation238_spill] sm:$0xff]  ;;  %v7421_v35 = vld [vmem:[#allocation91_spill] sm:$0xff] }
 0x223   :  { %v2089_v19 = vmul.f32 %v6038_v30, %v7400_v13  ;;  %v7402_v46 = vmax.f32 %v7401_v38, 0.0  ;;  %v7405_v11 = vmax.f32 %v7404_v24, 0.0  ;;  %v2026_v53 = vadd.f32 %v2022_v44, %v1960_v52  ;;  %v7422_v48 = vld [vmem:[#allocation39_spill] sm:$0xff]  ;;  %v7424_v52 = vld [vmem:[#allocation30_spill] sm:$0xff]  ;;  %v2236_v38 = vpop.xlane.xlu0 %2235 }
 0x224   :  { %v2027_v42 = vadd.f32 %v2023_v22, %v1961_v3  ;;  %v7407_v58 = vmax.f32 %v7406_v59, 0.0  ;;  %v7409_v2 = vmax.f32 %v7408_v5, 0.0  ;;  %v906_v18 = vadd.f32 %v902_v6, %v840_v55  ;;  %v7432_v59 = vld [vmem:[#allocation43_spill] sm:$0xff] }
 0x225   :  { %v968_v47 = vmul.f32 %v7403_v31, %v7402_v46  ;;  %v969_v50 = vmul.f32 %v7403_v31, %v7405_v11  ;;  %v907_v28 = vadd.f32 %v903_v62, %v841_v41  ;;  %v7411_v60 = vmax.f32 %v7410_v63, 0.0  ;;  %v7429_v11 = vld [vmem:[#allocation36_spill] sm:$0xff]  ;;  %v7437_v63 = vld [vmem:[#allocation239_spill] sm:$0xff] }
 0x226   :  { %v2154_v10 = vmul.f32 %v6062_v32, %v7407_v58  ;;  %v2155_v45 = vmul.f32 %v6062_v32, %v7409_v2  ;;  %v7414_v56 = vmax.f32 %v7413_v17, 0.0  ;;  %v2092_v44 = vadd.f32 %v2088_v33, %v2026_v53  ;;  %v7431_v53 = vld [vmem:[#allocation95_spill] sm:$0xff]  ;;  %v7434_v2 = vld [vmem:[#allocation46_spill] sm:$0xff] }
 0x227   :  { %v1034_v40 = vmul.f32 %v7412_v8, %v7411_v60  ;;  %v2093_v22 = vadd.f32 %v2089_v19, %v2027_v42  ;;  %v7416_v37 = vmax.f32 %v7415_v12, 0.0  ;;  %v7418_v14 = vmax.f32 %v7417_v7, 0.0  ;;  %v7427_v19 = vld [vmem:[#allocation40_spill] sm:$0xff]  ;;  %v7438_v17 = vld [vmem:[#allocation47_spill] sm:$0xff]  ;;  %v7441_v12 = vld [vmem:[#allocation37_spill] sm:$0xff] }
 0x228   :  { %v1035_v61 = vmul.f32 %v7412_v8, %v7414_v56  ;;  %v972_v21 = vadd.f32 %v968_v47, %v906_v18  ;;  %v973_v43 = vadd.f32 %v969_v50, %v907_v28  ;;  %v7420_v4 = vmax.f32 %v7419_v23, 0.0  ;;  %v7436_v18 = vld [vmem:[#allocation85_spill] sm:$0xff]  ;;  %v7444_v23 = vld [vmem:[#allocation48_spill] sm:$0xff] }
 0x229   :  { %v2220_v39 = vmul.f32 %v6074_v0, %v7416_v37  ;;  %v2221_v54 = vmul.f32 %v6074_v0, %v7418_v14  ;;  %v7423_v26 = vmax.f32 %v7422_v48, 0.0  ;;  %v2158_v33 = vadd.f32 %v2154_v10, %v2092_v44  ;;  %v7440_v44 = vld [vmem:[#allocation240_spill] sm:$0xff] }
 0x22a   :  { %v1100_v25 = vmul.f32 %v7421_v35, %v7420_v4  ;;  %v2159_v36 = vadd.f32 %v2155_v45, %v2093_v22  ;;  %v1038_v15 = vadd.f32 %v1034_v40, %v972_v21  ;;  %v1039_v62 = vadd.f32 %v1035_v61, %v973_v43  ;;  %v7446_v48 = vld [vmem:[#allocation44_spill] sm:$0xff] }
 0x22b   :  { %v1101_v6 = vmul.f32 %v7421_v35, %v7423_v26  ;;  %v7425_v3 = vmax.f32 %v7424_v52, 0.0  ;;  %v7428_v55 = vmax.f32 %v7427_v19, 0.0  ;;  %v2224_v46 = vadd.f32 %v2220_v39, %v2158_v33  ;;  %v7443_v39 = vld [vmem:[#allocation96_spill] sm:$0xff] }
 0x22c   :  { %v2225_v31 = vadd.f32 %v2221_v54, %v2159_v36  ;;  %v1104_v47 = vadd.f32 %v1100_v25, %v1038_v15  ;;  %v7430_v50 = vmax.f32 %v7429_v11, 0.0  ;;  %v7433_v58 = vmax.f32 %v7432_v59, 0.0  ;;  %v7457_v59 = vld [vmem:[#allocation56_spill] sm:$0xff] }
 0x22d   :  { %v1166_v13 = vmul.f32 %v7426_v49, %v7425_v3  ;;  %v1167_v41 = vmul.f32 %v7426_v49, %v7428_v55  ;;  %v1105_v24 = vadd.f32 %v1101_v6, %v1039_v62  ;;  %v7435_v45 = vmax.f32 %v7434_v2, 0.0  ;;  %v7448_v6 = vld [vmem:[#allocation92_spill] sm:$0xff]  ;;  %v7449_v62 = vld [vmem:[#allocation51_spill] sm:$0xff]  ;;  %v7451_v55 = vld [vmem:[#allocation54_spill] sm:$0xff] }
 0x22e   :  { %v1232_v42 = vmul.f32 %v7431_v53, %v7430_v50  ;;  %v1233_v10 = vmul.f32 %v7431_v53, %v7433_v58  ;;  %v2315_v5 = vadd.f32 %v2225_v31, %v2224_v46  ;;  %v2240_v60 = vsub.f32 %v7437_v63, %v2236_v38  ;;  %v7453_v46 = vld [vmem:[#allocation55_spill] sm:$0xff]  ;;  %v7455_v50 = vld [vmem:[#allocation45_spill] sm:$0xff] }
 0x22f   :  { %v1298_v28 = vmul.f32 %v7436_v18, %v7435_v45  ;;  %v1170_v8 = vadd.f32 %v1166_v13, %v1104_v47  ;;  %v1171_v40 = vadd.f32 %v1167_v41, %v1105_v24  ;;  %v7439_v56 = vmax.f32 %v7438_v17, 0.0  ;;  %v2595_v17 = vld [vmem:[%s6252_s6 + $0x1] ss:$2 sm:$0x3] }
 0x230   :  { %v2241_v22 = vsub.f32 %v7440_v44, %v2236_v38  ;;  %2316 = vadd.xlane.f32.xlu1 %v2315_v5  ;;  %v7442_v37 = vmax.f32 %v7441_v12, 0.0  ;;  %v2244_v14 = vmul.f32 1.442695, %v2240_v60  ;;  %v2268_v54 = vlaneseq  ;;  %v7459_v5 = vld [vmem:[#allocation52_spill] sm:$0xff]  ;;  %v7461_v60 = vld [vmem:[#allocation59_spill] sm:$0xff]  ;;  %v7463_v44 = vld [vmem:[#allocation62_spill] sm:$0xff] }
 0x231   :  { %v1299_v61 = vmul.f32 %v7436_v18, %v7439_v56  ;;  %v1236_v21 = vadd.f32 %v1232_v42, %v1170_v8  ;;  %v1237_v43 = vadd.f32 %v1233_v10, %v1171_v40  ;;  %v7445_v4 = vmax.f32 %v7444_v23, 0.0  ;;  %v7465_v12 = vld [vmem:[#allocation63_spill] sm:$0xff] }
 0x232   :  { %v1364_v7 = vmul.f32 %v7443_v39, %v7442_v37  ;;  %v2246_v25 = vmul.f32 1.442695, %v2241_v22  ;;  %v7447_v26 = vmax.f32 %v7446_v48, 0.0  ;;  %2608 = vpow2.f32 %v2244_v14 }
 0x233   :  { %v1365_v35 = vmul.f32 %v7443_v39, %v7445_v4  ;;  %v1302_v36 = vadd.f32 %v1298_v28, %v1236_v21  ;;  %v1303_v15 = vadd.f32 %v1299_v61, %v1237_v43  ;;  %v7450_v52 = vmax.f32 %v7449_v62, 0.0  ;;  %v7469_v4 = vld [vmem:[#allocation64_spill] sm:$0xff] }
 0x234   :  { %v1430_v33 = vmul.f32 %v7448_v6, %v7447_v26  ;;  %2610 = vpow2.f32 %v2246_v25  ;;  %v2269_v49 = vshrl.u32 %v2268_v54, 7  ;;  %v7452_v41 = vmax.f32 %v7451_v55, 0.0  ;;  %v2266_v26 = vld [vmem:[%s6252_s6] ss:$2 sm:$0x3]  ;;  %s2596_s6 = sld [smem:[#allocation9 + $0x1]] }
 0x235   :  { %v1431_v3 = vmul.f32 %v7448_v6, %v7450_v52  ;;  %v1368_v13 = vadd.f32 %v1364_v7, %v1302_v36  ;;  %v1369_v19 = vadd.f32 %v1365_v35, %v1303_v15  ;;  %v7454_v31 = vmax.f32 %v7453_v46, 0.0  ;;  %v7467_v7 = vld [vmem:[#allocation53_spill] sm:$0xff]  ;;  %v7471_v6 = vld [vmem:[#allocation60_spill] sm:$0xff]  ;;  %v7473_v52 = vld [vmem:[#allocation67_spill] sm:$0xff] }
 0x236   :  { %v1496_v38 = vmul.f32 %v5881_v34, %v7452_v41  ;;  %v7456_v53 = vmax.f32 %v7455_v50, 0.0  ;;  %v7458_v58 = vmax.f32 %v7457_v59, 0.0  ;;  %v7460_v2 = vmax.f32 %v7459_v5, 0.0  ;;  %v7477_v41 = vld [vmem:[#allocation71_spill] sm:$0xff] }
 0x237   :  { %v1497_v47 = vmul.f32 %v5881_v34, %v7454_v31  ;;  %v1434_v24 = vadd.f32 %v1430_v33, %v1368_v13  ;;  %v1435_v11 = vadd.f32 %v1431_v3, %v1369_v19  ;;  %v2270_v18 = vsub.s32 0, %v2269_v49  ;;  %v7475_v13 = vld [vmem:[#allocation70_spill] sm:$0xff] }
 0x238   :  { %v1562_v42 = vmul.f32 %v5895_v16, %v7456_v53  ;;  %v1563_v10 = vmul.f32 %v5895_v16, %v7458_v58  ;;  %v1628_v45 = vmul.f32 %v5898_v20, %v7460_v2  ;;  %v7462_v8 = vmax.f32 %v7461_v60, 0.0  ;;  %v7479_v58 = vld [vmem:[#allocation61_spill] sm:$0xff]  ;;  %v7481_v2 = vld [vmem:[#allocation72_spill] sm:$0xff]  ;;  %v7485_v60 = vld [vmem:[#allocation75_spill] sm:$0xff] }
 0x239   :  { %v1500_v28 = vadd.f32 %v1496_v38, %v1434_v24  ;;  %v1501_v63 = vadd.f32 %v1497_v47, %v1435_v11  ;;  %v2274_v40 = vsub.s32 1, %v2269_v49  ;;  %v7464_v16 = vmax.f32 %v7463_v44, 0.0 }
 0x23a   :  { %v1629_v34 = vmul.f32 %v5898_v20, %v7462_v8  ;;  %v7466_v37 = vmax.f32 %v7465_v12, 0.0  ;;  %v7468_v14 = vmax.f32 %v7467_v7, 0.0  ;;  %v6169_v20 = vrot.slane %v2595_v17, %v2270_v18  ;;  %v7487_v12 = vld [vmem:[#allocation78_spill] sm:$0xff] }
 0x23b   :  { %v1566_v56 = vadd.f32 %v1562_v42, %v1500_v28  ;;  %v1567_v61 = vadd.f32 %v1563_v10, %v1501_v63  ;;  %v1694_v22 = vmul.f32 %v5900_v29, %v7464_v16  ;;  %v7470_v35 = vmax.f32 %v7469_v4, 0.0 }
 0x23c   :  { %v1695_v39 = vmul.f32 %v5900_v29, %v7466_v37  ;;  %v1760_v21 = vmul.f32 %v5932_v57, %v7468_v14  ;;  %v6174_v48 = vrot.slane %v2595_v17, %v2274_v40  ;;  %v7472_v29 = vmax.f32 %v7471_v6, 0.0 }
 0x23d   :  { %v1632_v43 = vadd.f32 %v1628_v45, %v1566_v56  ;;  %v1633_v23 = vadd.f32 %v1629_v34, %v1567_v61  ;;  %v1761_v25 = vmul.f32 %v5932_v57, %v7470_v35  ;;  %v7474_v3 = vmax.f32 %v7473_v52, 0.0  ;;  %v7493_v35 = vld [vmem:[#allocation80_spill] sm:$0xff]  ;;  %v7497_v52 = vld [vmem:[#allocation83_spill] sm:$0xff] }
 0x23e   :  { %v1826_v33 = vmul.f32 %v5958_v51, %v7472_v29  ;;  %v7476_v19 = vmax.f32 %v7475_v13, 0.0  ;;  %v7478_v38 = vmax.f32 %v7477_v41, 0.0  ;;  %v2271_v47 = vrot.slane %v2266_v26, %v2270_v18 }
 0x23f   :  { %v2609_v36 = vpop.eup %2608  ;;  %v1698_v15 = vadd.f32 %v1694_v22, %v1632_v43  ;;  %v1699_v62 = vadd.f32 %v1695_v39, %v1633_v23  ;;  %v1827_v49 = vmul.f32 %v5958_v51, %v7474_v3  ;;  %v2275_v24 = vrot.slane %v2266_v26, %v2274_v40  ;;  %v7489_v39 = vld [vmem:[#allocation79_spill] sm:$0xff] }
 0x240   :  { %v1892_v57 = vmul.f32 %v5984_v1, %v7476_v19  ;;  %v1893_v46 = vmul.f32 %v5984_v1, %v7478_v38  ;;  %v2303_v31 = vmul.f32 %v2609_v36, %v6169_v20  ;;  %v7480_v10 = vmax.f32 %v7479_v58, 0.0  ;;  %v7483_v1 = vld [vmem:[#allocation68_spill] sm:$0xff]  ;;  %v7499_v38 = vld [vmem:[#allocation86_spill] sm:$0xff] }
 0x241   :  { %v2611_v55 = vpop.eup %2610  ;;  %v1764_v11 = vadd.f32 %v1760_v21, %v1698_v15  ;;  %v1765_v50 = vadd.f32 %v1761_v25, %v1699_v62  ;;  %v7482_v45 = vmax.f32 %v7481_v2, 0.0  ;;  %v7484_v63 = vmax.f32 %v7483_v1, 0.0  ;;  %v7491_v21 = vld [vmem:[#allocation69_spill] sm:$0xff] }
 0x242   :  { %v2252_v53 = vadd.f32 %v2611_v55, %v2609_v36  ;;  %v2304_v42 = vmul.f32 %v2611_v55, %v6174_v48  ;;  %v1958_v5 = vmul.f32 %v5998_v9, %v7480_v10  ;;  %v7486_v8 = vmax.f32 %v7485_v60, 0.0 }
 0x243   :  { %v1830_v59 = vadd.f32 %v1826_v33, %v1764_v11  ;;  %v1831_v51 = vadd.f32 %v1827_v49, %v1765_v50  ;;  %v1959_v28 = vmul.f32 %v5998_v9, %v7482_v45  ;;  %v2024_v18 = vmul.f32 %v6024_v27, %v7484_v63 }
 0x244   :  { %2253 = vadd.xlane.f32.xlu0 %v2252_v53  ;;  %v2025_v34 = vmul.f32 %v6024_v27, %v7486_v8  ;;  %v2278_v40 = vmul.f32 %v2609_v36, %v2271_v47  ;;  %v2307_v61 = vadd.f32 %v2304_v42, %v2303_v31  ;;  %v2279_v44 = vmul.f32 %v2611_v55, %v2275_v24  ;;  %v7495_v36 = vld [vmem:[#allocation76_spill] sm:$0xff]  ;;  %v7500_v31 = vld [vmem:[#allocation87_spill] sm:$0xff] }
 0x245   :  { %v1896_v17 = vadd.f32 %v1892_v57, %v1830_v59  ;;  %v1897_v56 = vadd.f32 %v1893_v46, %v1831_v51  ;;  %v7488_v37 = vmax.f32 %v7487_v12, 0.0  ;;  %v7490_v7 = vmax.f32 %v7489_v39, 0.0 }
 0x246   :  { %v7492_v43 = vmax.f32 %v7491_v21, 0.0  ;;  %v7494_v25 = vmax.f32 %v7493_v35, 0.0  ;;  %v2282_v6 = vadd.f32 %v2279_v44, %v2278_v40  ;;  %v7496_v15 = vmax.f32 %v7495_v36, 0.0 }
 0x247   :  { %v1962_v16 = vadd.f32 %v1958_v5, %v1896_v17  ;;  %v1963_v22 = vadd.f32 %v1959_v28, %v1897_v56  ;;  %v2090_v9 = vmul.f32 %v6038_v30, %v7488_v37  ;;  %v2091_v14 = vmul.f32 %v6038_v30, %v7490_v7 }
 0x248   :  { %2308 = vadd.xlane.f32.xlu0 %v2307_v61  ;;  %v2156_v27 = vmul.f32 %v6062_v32, %v7492_v43  ;;  %v2157_v26 = vmul.f32 %v6062_v32, %v7494_v25  ;;  %v2222_v62 = vmul.f32 %v6074_v0, %v7496_v15  ;;  %v7498_v30 = vmax.f32 %v7497_v52, 0.0 }
 0x249   :  { %v2028_v23 = vadd.f32 %v2024_v18, %v1962_v16  ;;  %v2029_v4 = vadd.f32 %v2025_v34, %v1963_v22  ;;  %v2725_v41 = vmov 0   ;;  %v2324_v1 = vstv %s2596_s6  ;;  %v2327_v18 = vld [vmem:[%s6251_s5] sm:$0xff] }
 0x24a   :  { %v2223_v3 = vmul.f32 %v6074_v0, %v7498_v30  ;;  %2606 = vset.pattern.permute.xlu0 %v2725_v41  ;;  %2607 = vset.pattern.permute.xlu1 %v2725_v41  ;;  %v2332_v22 = vand.u32 127, %v2268_v54 }
 0x24b   :  { %v2094_v29 = vadd.f32 %v2090_v9, %v2028_v23  ;;  %v2095_v33 = vadd.f32 %v2091_v14, %v2029_v4 }
 0x24c   :  { %2283 = vadd.xlane.f32.xlu0 %v2282_v6  ;;  %vm2335_vm0 = vcmp.eq.s32.totalorder %v2332_v22, 2  ;;  %vm2334_vm1 = vcmp.eq.s32.totalorder %v2332_v22, 1  ;;  %vm2333_vm2 = vcmp.eq.s32.totalorder %v2332_v22, 0 }
 0x24d   :  { %v2160_v49 = vadd.f32 %v2156_v27, %v2094_v29  ;;  %v2161_v13 = vadd.f32 %v2157_v26, %v2095_v33 }
 0x24f   :  { %v2226_v19 = vadd.f32 %v2222_v62, %v2160_v49  ;;  %v2227_v57 = vadd.f32 %v2223_v3, %v2161_v13 }
 0x251   :  { %v2318_v55 = vadd.f32 %v2227_v57, %v2226_v19 }
 0x253   :  { %2319 = vadd.xlane.f32.xlu1 %v2318_v55 }
 0x276   :  { %v2239_v32 = vpop.xlane.xlu0 %2238 }
 0x277   :  { %v2242_v46 = vsub.f32 %v7499_v38, %v2239_v32  ;;  %v2243_v11 = vsub.f32 %v7500_v31, %v2239_v32 }
 0x279   :  { %v2248_v50 = vmul.f32 1.442695, %v2242_v46  ;;  %v2250_v53 = vmul.f32 1.442695, %v2243_v11 }
 0x27b   :  { %2612 = vpow2.f32 %v2248_v50 }
 0x27c   :  { %2614 = vpow2.f32 %v2250_v53 }
 0x288   :  { %v2613_v0 = vpop.eup %2612 }
 0x289   :  { %v2615_v42 = vpop.eup %2614  ;;  %v2305_v51 = vmul.f32 %v2613_v0, %v6169_v20  ;;  %v2280_v5 = vmul.f32 %v2613_v0, %v2271_v47  ;;  %v2328_v47 = vld [vmem:[%s6251_s5 + $0x8] sm:$0xff]  ;;  %s2726_s5 = smov [#allocation12]  }
 0x28a   :  { %v2255_v59 = vadd.f32 %v2615_v42, %v2613_v0  ;;  %v2306_v58 = vmul.f32 %v2615_v42, %v6174_v48  ;;  %v2281_v2 = vmul.f32 %v2615_v42, %v2275_v24  ;;  %s2359_s23 = sshll.u32 %s2726_s5, 4  ;;  %s2360_s23 = int_to_ptr.vmem [resolvable:$true] %s2359_s23 }
 0x28b   :  { %s2688_s24 = scalar_lea.vmem %s2360_s23, 256  ;;  %p2693_p12 = scmp.lt.s32.totalorder %s2360_s23, %s2360_s23 }
 0x28c   :  { %2256 = vadd.xlane.f32.xlu1 %v2255_v59  ;;  %v2310_v10 = vadd.f32 %v2306_v58, %v2305_v51  ;;  %v2285_v45 = vadd.f32 %v2281_v2, %v2280_v5  ;;  %p2689_p11 = scmp.ne.s32.totalorder %s2360_s23, %s2688_s24  ;;  %p2694_p13 = scmp.lt.s32.totalorder %s2688_s24, %s2688_s24 }
 0x28e   :  { %p2695_p0 = por %p2694_p13, %p2693_p12 }
 0x290   :  { %2311 = vadd.xlane.f32.xlu1 %v2310_v10  ;;  %p2696_p1 = pnand %p2695_p0, %p2689_p11 }
 0x294   :  { %2286 = vadd.xlane.f32.xlu1 %v2285_v45 }
 0x2b9   :  { %v2317_v28 = vpop.xlane.xlu1 %2316 }
 0x2ba   :  { %v2321_v63 = vmul.f32 0.00390625, %v2317_v28 }
 0x2bc   :  { %v2325_v60 = vadd.f32 %v2324_v1, %v2321_v63 }
 0x2be   :  { %v2329_v8 = vmul.f32 %v2327_v18, %v2325_v60 }
 0x2c0   :  { %2338 = vperm.xlu0 %2606, %v2329_v8  }
 0x2cd   :  { %v2254_v40 = vpop.xlane.xlu0 %2253 }
 0x2ce   :  { %2616 = vrcp.f32 %v2254_v40 }
 0x2d1   :  { %v2309_v61 = vpop.xlane.xlu0 %2308 }
 0x2d5   :  { %v2284_v12 = vpop.xlane.xlu0 %2283 }
 0x2db   :  { %v2617_v17 = vpop.eup %2616 }
 0x2dc   :  { %v2320_v20 = vpop.xlane.xlu1 %2319  ;;  %v2260_v56 = vmul.f32 %v2617_v17, %v2254_v40 }
 0x2dd   :  { %v2322_v48 = vmul.f32 0.00390625, %v2320_v20 }
 0x2de   :  { %v2262_v44 = vsub.f32 2.0, %v2260_v56 }
 0x2df   :  { %v2326_v24 = vadd.f32 %v2324_v1, %v2322_v48 }
 0x2e0   :  { %v2264_v16 = vmul.f32 %v2617_v17, %v2262_v44 }
 0x2e1   :  { %v2330_v34 = vmul.f32 %v2328_v47, %v2326_v24 }
 0x2e2   :  { %v2313_v37 = vmul.f32 %v2309_v61, %v2264_v16  ;;  %v2288_v9 = vmul.f32 %v2284_v12, %v2264_v16 }
 0x2e3   :  { %2343 = vperm.xlu1 %2607, %v2330_v34  }
 0x315   :  { %v2257_v14 = vpop.xlane.xlu1 %2256 }
 0x316   :  { %2618 = vrcp.f32 %v2257_v14 }
 0x319   :  { %v2312_v4 = vpop.xlane.xlu1 %2311 }
 0x31d   :  { %v2287_v25 = vpop.xlane.xlu1 %2286 }
 0x323   :  { %v2619_v27 = vpop.eup %2618 }
 0x324   :  { %v2261_v23 = vmul.f32 %v2619_v27, %v2257_v14 }
 0x326   :  { %v2263_v54 = vsub.f32 2.0, %v2261_v23 }
 0x328   :  { %v2265_v35 = vmul.f32 %v2619_v27, %v2263_v54 }
 0x32a   :  { %v2314_v26 = vmul.f32 %v2312_v4, %v2265_v35  ;;  %v2289_v6 = vmul.f32 %v2287_v25, %v2265_v35 }
 0x33b   :  { %v2339_v39 = vpop.permute.xlu0 %2338 }
 0x33c   :  { %v2346_v7 = vsel %vm2335_vm0, %v2339_v39, 0.0 }
 0x33d   :  { %v2348_v21 = vsel %vm2334_vm1, %v2313_v37, %v2346_v7 }
 0x33e   :  { %v2350_v43 = vsel %vm2333_vm2, %v2288_v9, %v2348_v21 }
 0x33f   :  { %2352 = vst [vmem:[#allocation12] sm:$0xff] %v2350_v43 }
 0x35e   :  { %v2344_v29 = vpop.permute.xlu1 %2343 }
 0x35f   :  { %v2347_v33 = vsel %vm2335_vm0, %v2344_v29, 0.0 }
 0x360   :  { %v2349_v36 = vsel %vm2334_vm1, %v2314_v26, %v2347_v33 }
 0x361   :  { %v2351_v15 = vsel %vm2333_vm2, %v2289_v6, %v2349_v36 }
 0x362   :  { %2353 = vst [vmem:[#allocation12 + $0x8] sm:$0xff] %v2351_v15 }
 0x363   :  { %2699 = shalt.err (!%p2696_p1)
}
 0x364   :  { %2365 = dma.vmem_to_hbm [thread:$0]  %s2360_s23, 256, %s6253_s7, [#allocation4], %s2723_s20, %s2723_s20, %s2724_s21  }
 0x365   :  { %2716 = dma.done.wait [#allocation4], 256  }
 0x366   :  { %2717 = vsyncadd [#allocation4], 4294967040 }
 0x367   :  { %2369 = vsyncpa [#allocation3], 1 }
 0x368   :  { %2370 = vsyncpa [#allocation4], 1 }
 0x369   :  { %2371 = vsyncpa [#allocation5], 1 }
 0x36a   :  { %2372 = vsyncpa [#allocation7], 1 }
 0x36b   :  { %2373 = vsyncpa [#allocation10], 1 }

</bundles_post_ra>
